<compile_context>
chip_gen: v5e
topology: v5e:2x2
jax: 0.10.0
libtpu: 0.0.40
codegen_flags: <defaults>
</compile_context>

<pallas_src>
import functools

import jax
import jax.numpy as jnp
from jax.experimental import pallas as pl
from jax.experimental.pallas import tpu as pltpu


def _round_up(x, m):
    return (x + m - 1) // m * m


def _pick_tile(n_pad, pref):
    """Largest multiple of 128 that divides n_pad and is <= pref."""
    t = min(pref, n_pad)
    while n_pad % t:
        t -= 128
    return t


# ---------------------------------------------------------------------------
# Fused path: all layers in one kernel (A and E stay resident in VMEM).
# ---------------------------------------------------------------------------
def _fused_kernel(a_ref, x_ref, o_ref, *, layers, inv_scale, compute_dtype):
    x = x_ref[...]                       # (Np, Dp) f32
    acc = x                              # layer-0 contribution (exact f32)
    e = x
    for _ in range(layers):              # static unroll; layers is small
        e = jnp.dot(a_ref[...], e.astype(compute_dtype),
                    preferred_element_type=jnp.float32)
        acc = acc + e
    o_ref[...] = acc * inv_scale         # fold the final /(layers+1)


def _hyperconv_fused(a_c, x0, *, layers, inv_scale, compute_dtype, vmem_limit):
    n_pad, _ = a_c.shape
    _, d_pad = x0.shape
    return pl.pallas_call(
        functools.partial(_fused_kernel, layers=layers, inv_scale=inv_scale,
                          compute_dtype=compute_dtype),
        out_shape=jax.ShapeDtypeStruct((n_pad, d_pad), jnp.float32),
        grid_spec=pltpu.PrefetchScalarGridSpec(
            num_scalar_prefetch=0,
            grid=(1,),
            in_specs=[
                pl.BlockSpec((n_pad, n_pad), lambda i: (0, 0)),   # A (whole)
                pl.BlockSpec((n_pad, d_pad), lambda i: (0, 0)),   # E_0 (whole)
            ],
            out_specs=pl.BlockSpec((n_pad, d_pad), lambda i: (0, 0)),
        ),
        compiler_params=pltpu.CompilerParams(
            dimension_semantics=("arbitrary",),
            vmem_limit_bytes=vmem_limit),
    )(a_c, x0)


# ---------------------------------------------------------------------------
# Tiled path: one propagation layer, grid = (rows, reduction).  The embedding
# axis is kept whole per block (lane-dense, A read exactly once per layer).
# ---------------------------------------------------------------------------
def _layer_kernel(a_ref, x_ref, acc_ref, y_ref, acc_out_ref, mm_scratch, *,
                  scale):
    k = pl.program_id(1)

    @pl.when(k == 0)
    def _():
        mm_scratch[...] = jnp.zeros_like(mm_scratch)

    mm_scratch[...] += jnp.dot(a_ref[...], x_ref[...],
                               preferred_element_type=jnp.float32)

    @pl.when(k == pl.num_programs(1) - 1)
    def _():
        y = mm_scratch[...]
        y_ref[...] = y.astype(y_ref.dtype)
        # Running sum (+ final average fold when scale != 1 on the last layer).
        acc_out_ref[...] = (acc_ref[...] + y) * scale


def _hyperconv_layer(a_c, x, acc, *, scale, alias_acc, tm, tk, vmem_limit):
    n_pad, _ = a_c.shape
    _, d_pad = x.shape
    grid = (n_pad // tm, n_pad // tk)

    return pl.pallas_call(
        functools.partial(_layer_kernel, scale=scale),
        out_shape=(
            jax.ShapeDtypeStruct((n_pad, d_pad), x.dtype),       # next E
            jax.ShapeDtypeStruct((n_pad, d_pad), jnp.float32),   # running sum
        ),
        grid_spec=pltpu.PrefetchScalarGridSpec(
            num_scalar_prefetch=0,
            grid=grid,
            in_specs=[
                pl.BlockSpec((tm, tk), lambda i, k: (i, k)),      # A tile
                pl.BlockSpec((tk, d_pad), lambda i, k: (k, 0)),   # E rows
                pl.BlockSpec((tm, d_pad), lambda i, k: (i, 0)),   # acc_in
            ],
            out_specs=[
                pl.BlockSpec((tm, d_pad), lambda i, k: (i, 0)),   # E_out
                pl.BlockSpec((tm, d_pad), lambda i, k: (i, 0)),   # acc_out
            ],
            scratch_shapes=[pltpu.VMEM((tm, d_pad), jnp.float32)],
        ),
        compiler_params=pltpu.CompilerParams(
            dimension_semantics=("parallel", "arbitrary"),
            vmem_limit_bytes=vmem_limit),
        # In-place running sum (safe: acc block i is read before acc_out block
        # i is written; skipped on layer 0 where x and acc may share a buffer).
        input_output_aliases=({2: 1} if alias_acc else {}),
    )(a_c, x, acc)


# ---------------------------------------------------------------------------
# Top-level forward.
# ---------------------------------------------------------------------------
@functools.partial(jax.jit,
                   static_argnames=("layers", "compute_dtype", "force_tiled"))
def hyperconv_forward(adjacency, embedding, *, layers,
                      compute_dtype=jnp.float32, force_tiled=False):
    """Pallas implementation of HyperConv.forward."""
    n, d = embedding.shape
    if layers == 0:
        return embedding.astype(jnp.float32)

    n_pad = _round_up(n, 128)
    d_pad = _round_up(d, 128)
    inv_scale = 1.0 / float(layers + 1)

    # Padded, cast-once operands (cast hoisted out of the layer loop).
    a_c = jnp.pad(adjacency.astype(jnp.float32),
                  ((0, n_pad - n), (0, n_pad - n))).astype(compute_dtype)
    x0 = jnp.pad(embedding.astype(jnp.float32),
                 ((0, n_pad - n), (0, d_pad - d)))

    a_esize = jnp.dtype(compute_dtype).itemsize
    a_bytes = n_pad * n_pad * a_esize
    x_bytes = n_pad * d_pad * 4

    # VMEM footprint estimate for the fused path (double-buffered inputs,
    # output, plus live e/acc values) — be conservative.
    fused_need = 3 * a_bytes + 8 * x_bytes
    use_fused = (not force_tiled) and fused_need <= (40 << 20)

    if use_fused:
        vmem_limit = int(min(48 << 20, max(fused_need + (8 << 20), 32 << 20)))
        out = _hyperconv_fused(a_c, x0, layers=layers, inv_scale=inv_scale,
                               compute_dtype=compute_dtype,
                               vmem_limit=vmem_limit)
    else:
        # Large-N fallback: per-layer tiled matmul + running sum.
        tm = _pick_tile(n_pad, 256)   # keeps >=2 row blocks for megacore on v7x
        tk = _pick_tile(n_pad, 512)
        tile_need = (2 * tm * tk * a_esize             # A tiles (dbl-buffered)
                     + 2 * tk * d_pad * a_esize        # E tiles
                     + 2 * tm * d_pad * 4              # acc_in tiles
                     + 2 * tm * d_pad * (a_esize + 4)  # both outputs
                     + tm * d_pad * 4)                 # f32 scratch
        vmem_limit = int(min(48 << 20, max(2 * tile_need, 32 << 20)))

        x_cur = x0.astype(compute_dtype)
        acc = x0
        for li in range(layers):
            scale = inv_scale if li == layers - 1 else 1.0
            x_cur, acc = _hyperconv_layer(
                a_c, x_cur, acc, scale=scale, alias_acc=(li > 0),
                tm=tm, tk=tk, vmem_limit=vmem_limit)
        out = acc

    return out[:n, :d]


def hyperconv_forward_ref(adjacency, embedding, *, layers):
    """Pure-JAX reference mirroring the PyTorch module."""
    a = adjacency.astype(jnp.float32)
    x = embedding.astype(jnp.float32)
    final = [x]
    for _ in range(layers):
        x = a @ x
        final.append(x)
    return sum(final) / float(layers + 1)


if __name__ == "__main__":
    key = jax.random.PRNGKey(0)
    k_adj, k_emb = jax.random.split(key)

    layers = 3        # HyperConv(layers=3, ...)
    n_items = 283     # deliberately NOT a multiple of 128 (exercises padding)
    emb_size = 100    # the module's real emb_size

    # Deterministic synthetic "normalized adjacency": random non-negative,
    # row-normalized (dense stand-in for the sparse matrix the module uses).
    raw = jax.random.uniform(k_adj, (n_items, n_items), dtype=jnp.float32)
    adjacency = raw / jnp.sum(raw, axis=1, keepdims=True)
    embedding = jax.random.normal(k_emb, (n_items, emb_size), dtype=jnp.float32)

    with jax.default_matmul_precision("highest"):
        ref = hyperconv_forward_ref(adjacency, embedding, layers=layers)

    # 1) Fused single-kernel path (auto-selected at this size), f32.
    out = jax.block_until_ready(
        hyperconv_forward(adjacency, embedding, layers=layers))
    assert out.shape == (n_items, emb_size)
    assert jnp.allclose(out, ref, rtol=1e-4, atol=1e-5), "fused f32 mismatch"

    # 2) Tiled per-layer path (large-N fallback), f32.
    out_t = jax.block_until_ready(
        hyperconv_forward(adjacency, embedding, layers=layers,
                          force_tiled=True))
    assert jnp.allclose(out_t, ref, rtol=1e-4, atol=1e-5), "tiled f32 mismatch"

    # 3) bf16 MXU inputs (halves the dominant HBM stream); relaxed tolerance.
    out_bf = jax.block_until_ready(
        hyperconv_forward(adjacency, embedding, layers=layers,
                          compute_dtype=jnp.bfloat16))
    assert jnp.allclose(out_bf, ref, rtol=3e-2, atol=3e-2), "bf16 mismatch"

    print("KERNEL_OK")
</pallas_src>

<mosaic_0001>
module attributes {stable_mosaic.version = 11 : i64} {
  func.func @_fused_kernel(%arg0: i32, %arg1: memref<384x384xf32, #tpu.memory_space<vmem>>, %arg2: memref<384x128xf32, #tpu.memory_space<vmem>>, %arg3: memref<384x128xf32, #tpu.memory_space<vmem>>) attributes {dimension_semantics = [#tpu.dimension_semantics<arbitrary>], iteration_bounds = array<i64: 1>, scalar_prefetch = 0 : i64, scratch_operands = 0 : i64, tpu.core_type = #tpu.core_type<tc>, window_params = [{pipeline_mode = #tpu.pipeline_mode<synchronous>, transform_indices = @transform_0, window_bounds = array<i64: 384, 384>}, {pipeline_mode = #tpu.pipeline_mode<synchronous>, transform_indices = @transform_1, window_bounds = array<i64: 384, 128>}, {pipeline_mode = #tpu.pipeline_mode<synchronous>, transform_indices = @transform_2, window_bounds = array<i64: 384, 128>}]} {
    %c0 = arith.constant 0 : index
    %c0_0 = arith.constant 0 : index
    %0 = vector.load %arg2[%c0, %c0_0] : memref<384x128xf32, #tpu.memory_space<vmem>>, vector<384x128xf32>
    %c0_1 = arith.constant 0 : index
    %c0_2 = arith.constant 0 : index
    %1 = vector.load %arg1[%c0_1, %c0_2] : memref<384x384xf32, #tpu.memory_space<vmem>>, vector<384x384xf32>
    %cst = arith.constant dense<0.000000e+00> : vector<384x128xf32>
    %2 = tpu.matmul %1, %0, %cst {dimension_numbers = #tpu.dot_dimension_numbers<[1], [0], [0], [1], [0, 0, 1, 1], [], []>} : vector<384x384xf32>, vector<384x128xf32>, vector<384x128xf32> -> vector<384x128xf32>
    %3 = arith.addf %0, %2 : vector<384x128xf32>
    %c0_3 = arith.constant 0 : index
    %c0_4 = arith.constant 0 : index
    %4 = vector.load %arg1[%c0_3, %c0_4] : memref<384x384xf32, #tpu.memory_space<vmem>>, vector<384x384xf32>
    %cst_5 = arith.constant dense<0.000000e+00> : vector<384x128xf32>
    %5 = tpu.matmul %4, %2, %cst_5 {dimension_numbers = #tpu.dot_dimension_numbers<[1], [0], [0], [1], [0, 0, 1, 1], [], []>} : vector<384x384xf32>, vector<384x128xf32>, vector<384x128xf32> -> vector<384x128xf32>
    %6 = arith.addf %3, %5 : vector<384x128xf32>
    %c0_6 = arith.constant 0 : index
    %c0_7 = arith.constant 0 : index
    %7 = vector.load %arg1[%c0_6, %c0_7] : memref<384x384xf32, #tpu.memory_space<vmem>>, vector<384x384xf32>
    %cst_8 = arith.constant dense<0.000000e+00> : vector<384x128xf32>
    %8 = tpu.matmul %7, %5, %cst_8 {dimension_numbers = #tpu.dot_dimension_numbers<[1], [0], [0], [1], [0, 0, 1, 1], [], []>} : vector<384x384xf32>, vector<384x128xf32>, vector<384x128xf32> -> vector<384x128xf32>
    %9 = arith.addf %6, %8 : vector<384x128xf32>
    %cst_9 = arith.constant 2.500000e-01 : f32
    %10 = vector.broadcast %cst_9 : f32 to vector<384x128xf32>
    %11 = arith.mulf %9, %10 : vector<384x128xf32>
    %c0_10 = arith.constant 0 : index
    %c0_11 = arith.constant 0 : index
    %12 = vector.load %arg3[%c0_10, %c0_11] : memref<384x128xf32, #tpu.memory_space<vmem>>, vector<384x128xf32>
    tpu.vector_store %arg3[%c0_10, %c0_11], %11 {strides = array<i32>} : memref<384x128xf32, #tpu.memory_space<vmem>>, vector<384x128xf32>,
    return
  }
  func.func @transform_0(%arg0: i32) -> (i32, i32) {
    %c0_i32 = arith.constant 0 : i32
    %c0_i32_0 = arith.constant 0 : i32
    %c0_i32_1 = arith.constant 0 : i32
    return %c0_i32, %c0_i32_0 : i32, i32
  }
  func.func @transform_1(%arg0: i32) -> (i32, i32) {
    %c0_i32 = arith.constant 0 : i32
    %c0_i32_0 = arith.constant 0 : i32
    %c0_i32_1 = arith.constant 0 : i32
    return %c0_i32, %c0_i32_0 : i32, i32
  }
  func.func @transform_2(%arg0: i32) -> (i32, i32) {
    %c0_i32 = arith.constant 0 : i32
    %c0_i32_0 = arith.constant 0 : i32
    %c0_i32_1 = arith.constant 0 : i32
    return %c0_i32, %c0_i32_0 : i32, i32
  }
}

</mosaic_0001>

<bundles_post_ra>
// kernel: hyperconv_forward.1
= control target key start
LH: loop header
LB: loop body
LE: loop exit
PB: predicated region body
PF: predicated region fallthrough
CT: control target
= control target key end

     0   :  { %s4887_s1 = inlined_call_operand.vmem [shape: f32[384,128], index: 1, kind: input, shape index: {}]   ;;  %s4888_s0 = inlined_call_operand.vmem [shape: f32[384,384], index: 0, kind: input, shape index: {}]   ;;  %s4889_s2 = inlined_call_operand.vmem [shape: f32[384,128], index: 2, kind: output, shape index: {}]  }
   0x1   :  { %v26_v0 = vld [vmem:[%s4887_s1 + $0x78] sm:$0xff]  ;;  %v25_v1 = vld [vmem:[%s4887_s1 + $0x70] sm:$0xff]  ;;  %v24_v2 = vld [vmem:[%s4887_s1 + $0x68] sm:$0xff] }
   0x2   :  { %1896 = vmatpush.msra.mxu1 %v26_v0  ;;  %1897 = vmatpush.msra.mxu2 %v26_v0  ;;  %v23_v3 = vld [vmem:[%s4887_s1 + $0x60] sm:$0xff]  ;;  %v22_v4 = vld [vmem:[%s4887_s1 + $0x58] sm:$0xff]  ;;  %v21_v5 = vld [vmem:[%s4887_s1 + $0x50] sm:$0xff] }
   0x3   :  { %203 = vmatpush.msra.mxu0 %v26_v0  ;;  %1898 = vmatpush.msra.mxu3 %v26_v0  ;;  %v20_v6 = vld [vmem:[%s4887_s1 + $0x48] sm:$0xff]  ;;  %v19_v7 = vld [vmem:[%s4887_s1 + $0x40] sm:$0xff]  ;;  %v18_v8 = vld [vmem:[%s4887_s1 + $0x38] sm:$0xff] }
   0x4   :  { %1899 = vmatpush.msra.mxu1 %v25_v1  ;;  %1900 = vmatpush.msra.mxu2 %v25_v1  ;;  %v17_v9 = vld [vmem:[%s4887_s1 + $0x30] sm:$0xff]  ;;  %v16_v10 = vld [vmem:[%s4887_s1 + $0x28] sm:$0xff]  ;;  %v15_v11 = vld [vmem:[%s4887_s1 + $0x20] sm:$0xff] }
   0x5   :  { %204 = vmatpush.msra.mxu0 %v25_v1  ;;  %1901 = vmatpush.msra.mxu3 %v25_v1  ;;  %v14_v12 = vld [vmem:[%s4887_s1 + $0x18] sm:$0xff]  ;;  %v13_v13 = vld [vmem:[%s4887_s1 + $0x10] sm:$0xff]  ;;  %v12_v14 = vld [vmem:[%s4887_s1 + $0x8] sm:$0xff] }
   0x6   :  { %1902 = vmatpush.msra.mxu1 %v24_v2  ;;  %1903 = vmatpush.msra.mxu2 %v24_v2  ;;  %v11_v15 = vld [vmem:[%s4887_s1] sm:$0xff]  ;;  %v98_v18 = vld [vmem:[%s4888_s0 + $0x138] sm:$0xff]  ;;  %v101_v20 = vld [vmem:[%s4888_s0 + $0x150] sm:$0xff] }
   0x7   :  { %205 = vmatpush.msra.mxu0 %v24_v2  ;;  %1904 = vmatpush.msra.mxu3 %v24_v2  ;;  %v95_v16 = vld [vmem:[%s4888_s0 + $0x120] sm:$0xff]  ;;  %v134_v19 = vld [vmem:[%s4888_s0 + $0x258] sm:$0xff]  ;;  %v137_v21 = vld [vmem:[%s4888_s0 + $0x270] sm:$0xff] }
   0x8   :  { %1905 = vmatpush.msra.mxu1 %v23_v3  ;;  %1906 = vmatpush.msra.mxu2 %v23_v3  ;;  %v131_v17 = vld [vmem:[%s4888_s0 + $0x240] sm:$0xff]  ;;  %v104_v22 = vld [vmem:[%s4888_s0 + $0x168] sm:$0xff]  ;;  %v42_v26 = vld [vmem:[%s4887_s1 + $0xf8] sm:$0xff] }
   0x9   :  { %206 = vmatpush.msra.mxu0 %v23_v3  ;;  %1907 = vmatpush.msra.mxu3 %v23_v3  ;;  %v140_v23 = vld [vmem:[%s4888_s0 + $0x288] sm:$0xff]  ;;  %v107_v24 = vld [vmem:[%s4888_s0 + $0x180] sm:$0xff]  ;;  %v58_v27 = vld [vmem:[%s4887_s1 + $0x178] sm:$0xff] }
   0xa   :  { %1908 = vmatpush.msra.mxu1 %v22_v4  ;;  %1909 = vmatpush.msra.mxu2 %v22_v4  ;;  %v143_v25 = vld [vmem:[%s4888_s0 + $0x2a0] sm:$0xff]  ;;  %v41_v28 = vld [vmem:[%s4887_s1 + $0xf0] sm:$0xff]  ;;  %v40_v30 = vld [vmem:[%s4887_s1 + $0xe8] sm:$0xff] }
   0xb   :  { %207 = vmatpush.msra.mxu0 %v22_v4  ;;  %1910 = vmatpush.msra.mxu3 %v22_v4  ;;  %v57_v29 = vld [vmem:[%s4887_s1 + $0x170] sm:$0xff]  ;;  %v56_v31 = vld [vmem:[%s4887_s1 + $0x168] sm:$0xff]  ;;  %v39_v32 = vld [vmem:[%s4887_s1 + $0xe0] sm:$0xff] }
   0xc   :  { %1911 = vmatpush.msra.mxu1 %v21_v5  ;;  %1912 = vmatpush.msra.mxu2 %v21_v5  ;;  %v55_v33 = vld [vmem:[%s4887_s1 + $0x160] sm:$0xff]  ;;  %v110_v34 = vld [vmem:[%s4888_s0 + $0x198] sm:$0xff]  ;;  %v37_v38 = vld [vmem:[%s4887_s1 + $0xd0] sm:$0xff] }
   0xd   :  { %208 = vmatpush.msra.mxu0 %v21_v5  ;;  %1913 = vmatpush.msra.mxu3 %v21_v5  ;;  %v146_v35 = vld [vmem:[%s4888_s0 + $0x2b8] sm:$0xff]  ;;  %v53_v39 = vld [vmem:[%s4887_s1 + $0x150] sm:$0xff]  ;;  %v36_v40 = vld [vmem:[%s4887_s1 + $0xc8] sm:$0xff] }
   0xe   :  { %1914 = vmatpush.msra.mxu1 %v20_v6  ;;  %1915 = vmatpush.msra.mxu2 %v20_v6  ;;  %v38_v36 = vld [vmem:[%s4887_s1 + $0xd8] sm:$0xff]  ;;  %v52_v41 = vld [vmem:[%s4887_s1 + $0x148] sm:$0xff]  ;;  %v35_v42 = vld [vmem:[%s4887_s1 + $0xc0] sm:$0xff] }
   0xf   :  { %209 = vmatpush.msra.mxu0 %v20_v6  ;;  %1916 = vmatpush.msra.mxu3 %v20_v6  ;;  %v54_v37 = vld [vmem:[%s4887_s1 + $0x158] sm:$0xff]  ;;  %v51_v43 = vld [vmem:[%s4887_s1 + $0x140] sm:$0xff]  ;;  %v113_v44 = vld [vmem:[%s4888_s0 + $0x1b0] sm:$0xff] }
  0x10   :  { %1917 = vmatpush.msra.mxu1 %v19_v7  ;;  %1918 = vmatpush.msra.mxu2 %v19_v7  ;;  %v149_v45 = vld [vmem:[%s4888_s0 + $0x2d0] sm:$0xff]  ;;  %v34_v46 = vld [vmem:[%s4887_s1 + $0xb8] sm:$0xff]  ;;  %v32_v50 = vld [vmem:[%s4887_s1 + $0xa8] sm:$0xff] }
  0x11   :  { %210 = vmatpush.msra.mxu0 %v19_v7  ;;  %1919 = vmatpush.msra.mxu3 %v19_v7  ;;  %v50_v47 = vld [vmem:[%s4887_s1 + $0x138] sm:$0xff]  ;;  %v33_v48 = vld [vmem:[%s4887_s1 + $0xb0] sm:$0xff]  ;;  %v48_v51 = vld [vmem:[%s4887_s1 + $0x128] sm:$0xff] }
  0x12   :  { %1920 = vmatpush.msra.mxu1 %v18_v8  ;;  %1921 = vmatpush.msra.mxu2 %v18_v8  ;;  %v49_v49 = vld [vmem:[%s4887_s1 + $0x130] sm:$0xff]  ;;  %v31_v52 = vld [vmem:[%s4887_s1 + $0xa0] sm:$0xff]  ;;  %v116_v54 = vld [vmem:[%s4888_s0 + $0x1c8] sm:$0xff] }
  0x13   :  { %211 = vmatpush.msra.mxu0 %v18_v8  ;;  %1922 = vmatpush.msra.mxu3 %v18_v8  ;;  %v47_v53 = vld [vmem:[%s4887_s1 + $0x120] sm:$0xff]  ;;  %v152_v55 = vld [vmem:[%s4888_s0 + $0x2e8] sm:$0xff]  ;;  %v30_v56 = vld [vmem:[%s4887_s1 + $0x98] sm:$0xff] }
  0x14   :  { %1923 = vmatpush.msra.mxu1 %v17_v9  ;;  %1924 = vmatpush.msra.mxu2 %v17_v9  ;;  %v46_v57 = vld [vmem:[%s4887_s1 + $0x118] sm:$0xff]  ;;  %v29_v58 = vld [vmem:[%s4887_s1 + $0x90] sm:$0xff]  ;;  %v28_v60 = vld [vmem:[%s4887_s1 + $0x88] sm:$0xff] }
  0x15   :  { %212 = vmatpush.msra.mxu0 %v17_v9  ;;  %1925 = vmatpush.msra.mxu3 %v17_v9  ;;  %v45_v59 = vld [vmem:[%s4887_s1 + $0x110] sm:$0xff]  ;;  %v44_v61 = vld [vmem:[%s4887_s1 + $0x108] sm:$0xff]  ;;  %v27_v62 = vld [vmem:[%s4887_s1 + $0x80] sm:$0xff] }
  0x16   :  { %1926 = vmatpush.msra.mxu1 %v16_v10  ;;  %1927 = vmatpush.msra.mxu2 %v16_v10  ;;  %v43_v63 = vld [vmem:[%s4887_s1 + $0x100] sm:$0xff]  ;;  %v122_v3 = vld [vmem:[%s4888_s0 + $0x1f8] sm:$0xff]  ;;  %v125_v6 = vld [vmem:[%s4888_s0 + $0x210] sm:$0xff] }
  0x17   :  { %213 = vmatpush.msra.mxu0 %v16_v10  ;;  %1928 = vmatpush.msra.mxu3 %v16_v10  ;;  %v119_v0 = vld [vmem:[%s4888_s0 + $0x1e0] sm:$0xff]  ;;  %v158_v4 = vld [vmem:[%s4888_s0 + $0x318] sm:$0xff]  ;;  %v161_v7 = vld [vmem:[%s4888_s0 + $0x330] sm:$0xff] }
  0x18   :  { %1929 = vmatpush.msra.mxu1 %v15_v11  ;;  %1930 = vmatpush.msra.mxu2 %v15_v11  ;;  %v155_v1 = vld [vmem:[%s4888_s0 + $0x300] sm:$0xff]  ;;  %v2373_v5 = vld [vmem:[%s4888_s0 + $0x18] sm:$0xff]  ;;  %v2385_v8 = vld [vmem:[%s4888_s0 + $0x30] sm:$0xff] }
  0x19   :  { %214 = vmatpush.msra.mxu0 %v15_v11  ;;  %1931 = vmatpush.msra.mxu3 %v15_v11  ;;  %v2361_v2 = vld [vmem:[%s4888_s0] sm:$0xff]  ;;  %v128_v9 = vld [vmem:[%s4888_s0 + $0x228] sm:$0xff] }
  0x1a   :  { %1932 = vmatpush.msra.mxu1 %v14_v12  ;;  %1933 = vmatpush.msra.mxu2 %v14_v12  ;;  %v164_v10 = vld [vmem:[%s4888_s0 + $0x348] sm:$0xff] }
  0x1b   :  { %215 = vmatpush.msra.mxu0 %v14_v12  ;;  %1934 = vmatpush.msra.mxu3 %v14_v12  ;;  %v2397_v11 = vld [vmem:[%s4888_s0 + $0x48] sm:$0xff] }
  0x1c   :  { %1935 = vmatpush.msra.mxu1 %v13_v13  ;;  %1936 = vmatpush.msra.mxu2 %v13_v13  ;;  %v2403_v12 = vld [vmem:[%s4888_s0 + $0x8] sm:$0xff] }
  0x1d   :  { %216 = vmatpush.msra.mxu0 %v13_v13  ;;  %1937 = vmatpush.msra.mxu3 %v13_v13  ;;  %5049 = vst [vmem:[#allocation2_spill] sm:$0xff] %v2403_v12  ;;  %v61_v13 = vld [vmem:[%s4888_s0 + $0x10] sm:$0xff] }
  0x1e   :  { %1938 = vmatpush.msra.mxu1 %v12_v14  ;;  %1939 = vmatpush.msra.mxu2 %v12_v14 }
  0x1f   :  { %217 = vmatpush.msra.mxu0 %v12_v14  ;;  %1940 = vmatpush.msra.mxu3 %v12_v14  ;;  %v2412_v14 = vld [vmem:[%s4888_s0 + $0x60] sm:$0xff] }
  0x20   :  { %1941 = vmatpush.msra.mxu1 %v11_v15  ;;  %1942 = vmatpush.msra.mxu2 %v11_v15 }
  0x21   :  { %255 = vmatmul.f32.vlgmr.msra.gmra.mxu1 %v95_v16  ;;  %291 = vmatmul.f32.vlgmr.msra.gmra.mxu2 %v131_v17  ;;  %v64_v16 = vld [vmem:[%s4888_s0 + $0x28] sm:$0xff]  ;;  %v2427_v17 = vld [vmem:[%s4888_s0 + $0x78] sm:$0xff] }
  0x22   :  { %218 = vmatpush.msra.mxu0 %v11_v15  ;;  %1943 = vmatpush.msra.mxu3 %v11_v15  ;;  %v2418_v15 = vld [vmem:[%s4888_s0 + $0x20] sm:$0xff]  ;;  %5051 = vst [vmem:[#allocation4_spill] sm:$0xff] %v2427_v17 }
  0x23   :  { %364 = vmatpush.msrb.mxu1 %v42_v26  ;;  %525 = vmatpush.msrb.mxu2 %v58_v27  ;;  %5050 = vst [vmem:[#allocation3_spill] sm:$0xff] %v2418_v15  ;;  %v73_v26 = vld [vmem:[%s4888_s0 + $0x70] sm:$0xff] }
  0x24   :  { %219 = vmatmul.f32.vlgmr.msra.gmra.mxu0 %v2361_v2 }
  0x25   :  { %365 = vmatpush.msrb.mxu1 %v41_v28  ;;  %526 = vmatpush.msrb.mxu2 %v57_v29  ;;  %v2476_v28 = vld [vmem:[%s4888_s0 + $0xc0] sm:$0xff] }
  0x26   :  { %5058 = vst [vmem:[#allocation11_spill] sm:$0xff] %v2476_v28 }
  0x27   :  { %366 = vmatpush.msrb.mxu1 %v40_v30  ;;  %527 = vmatpush.msrb.mxu2 %v56_v31  ;;  %v2484_v30 = vld [vmem:[%s4888_s0 + $0x80] sm:$0xff]  ;;  %v76_v31 = vld [vmem:[%s4888_s0 + $0x88] sm:$0xff] }
  0x28   :  { %5059 = vst [vmem:[#allocation12_spill] sm:$0xff] %v2484_v30 }
  0x29   :  { %258 = vmatmul.f32.gmra.mxu1 %v98_v18  ;;  %294 = vmatmul.f32.gmra.mxu2 %v134_v19  ;;  %v2433_v18 = vld [vmem:[%s4888_s0 + $0x38] sm:$0xff]  ;;  %v67_v19 = vld [vmem:[%s4888_s0 + $0x40] sm:$0xff] }
  0x2a   :  { %367 = vmatpush.msrb.mxu1 %v39_v32  ;;  %528 = vmatpush.msrb.mxu2 %v55_v33  ;;  %5052 = vst [vmem:[#allocation5_spill] sm:$0xff] %v2433_v18  ;;  %v2495_v33 = vld [vmem:[%s4888_s0 + $0xd8] sm:$0xff] }
  0x2b   :  { %5061 = vst [vmem:[#allocation14_spill] sm:$0xff] %v2495_v33 }
  0x2c   :  { %368 = vmatpush.msrb.mxu1 %v38_v36  ;;  %529 = vmatpush.msrb.mxu2 %v54_v37  ;;  %v79_v36 = vld [vmem:[%s4888_s0 + $0xa0] sm:$0xff] }
  0x2d   :  { %222 = vmatmul.f32.gmra.mxu0 %v2373_v5 }
  0x2e   :  { %369 = vmatpush.msrb.mxu1 %v37_v38  ;;  %530 = vmatpush.msrb.mxu2 %v53_v39  ;;  %v2514_v38 = vld [vmem:[%s4888_s0 + $0xf0] sm:$0xff] }
  0x2f   :  { %5063 = vst [vmem:[#allocation16_spill] sm:$0xff] %v2514_v38 }
  0x30   :  { %370 = vmatpush.msrb.mxu1 %v36_v40  ;;  %531 = vmatpush.msrb.mxu2 %v52_v41  ;;  %v2522_v40 = vld [vmem:[%s4888_s0 + $0xb0] sm:$0xff]  ;;  %v82_v41 = vld [vmem:[%s4888_s0 + $0xb8] sm:$0xff] }
  0x31   :  { %261 = vmatmul.f32.gmra.mxu1 %v101_v20  ;;  %297 = vmatmul.f32.gmra.mxu2 %v137_v21  ;;  %v2442_v20 = vld [vmem:[%s4888_s0 + $0x90] sm:$0xff]  ;;  %5064 = vst [vmem:[#allocation17_spill] sm:$0xff] %v2522_v40 }
  0x32   :  { %371 = vmatpush.msrb.mxu1 %v35_v42  ;;  %532 = vmatpush.msrb.mxu2 %v51_v43  ;;  %5053 = vst [vmem:[#allocation6_spill] sm:$0xff] %v2442_v20  ;;  %v2448_v21 = vld [vmem:[%s4888_s0 + $0x50] sm:$0xff]  ;;  %v2533_v43 = vld [vmem:[%s4888_s0 + $0x108] sm:$0xff] }
  0x33   :  { %5054 = vst [vmem:[#allocation7_spill] sm:$0xff] %v2448_v21 }
  0x34   :  { %372 = vmatpush.msrb.mxu1 %v34_v46  ;;  %533 = vmatpush.msrb.mxu2 %v50_v47  ;;  %5065 = vst [vmem:[#allocation18_spill] sm:$0xff] %v2533_v43  ;;  %v85_v46 = vld [vmem:[%s4888_s0 + $0xd0] sm:$0xff] }
  0x35   :  { %225 = vmatmul.f32.gmra.mxu0 %v2385_v8 }
  0x36   :  { %373 = vmatpush.msrb.mxu1 %v33_v48  ;;  %534 = vmatpush.msrb.mxu2 %v49_v49  ;;  %v2554_v49 = vld [vmem:[%s4888_s0 + $0xe0] sm:$0xff] }
  0x37   :  { %5069 = vst [vmem:[#allocation22_spill] sm:$0xff] %v2554_v49 }
  0x38   :  { %374 = vmatpush.msrb.mxu1 %v32_v50  ;;  %535 = vmatpush.msrb.mxu2 %v48_v51  ;;  %v88_v50 = vld [vmem:[%s4888_s0 + $0xe8] sm:$0xff] }
  0x39   :  { %264 = vmatmul.f32.gmra.mxu1 %v104_v22  ;;  %300 = vmatmul.f32.gmra.mxu2 %v140_v23  ;;  %v70_v22 = vld [vmem:[%s4888_s0 + $0x58] sm:$0xff]  ;;  %v2457_v23 = vld [vmem:[%s4888_s0 + $0xa8] sm:$0xff] }
  0x3a   :  { %375 = vmatpush.msrb.mxu1 %v31_v52  ;;  %536 = vmatpush.msrb.mxu2 %v47_v53  ;;  %5055 = vst [vmem:[#allocation8_spill] sm:$0xff] %v2457_v23  ;;  %v2567_v53 = vld [vmem:[%s4888_s0 + $0xf8] sm:$0xff] }
  0x3b   :  { %5071 = vst [vmem:[#allocation24_spill] sm:$0xff] %v2567_v53 }
  0x3c   :  { %376 = vmatpush.msrb.mxu1 %v30_v56  ;;  %537 = vmatpush.msrb.mxu2 %v46_v57  ;;  %v2583_v57 = vld [vmem:[%s4888_s0 + $0x110] sm:$0xff] }
  0x3d   :  { %228 = vmatmul.f32.gmra.mxu0 %v2397_v11  ;;  %5074 = vst [vmem:[#allocation27_spill] sm:$0xff] %v2583_v57 }
  0x3e   :  { %377 = vmatpush.msrb.mxu1 %v29_v58  ;;  %538 = vmatpush.msrb.mxu2 %v45_v59  ;;  %v2588_v58 = vld [vmem:[%s4888_s0 + $0x118] sm:$0xff] }
  0x3f   :  { %5075 = vst [vmem:[#allocation28_spill] sm:$0xff] %v2588_v58 }
  0x40   :  { %378 = vmatpush.msrb.mxu1 %v28_v60  ;;  %539 = vmatpush.msrb.mxu2 %v44_v61  ;;  %v2599_v61 = vld [vmem:[%s4888_s0 + $0x128] sm:$0xff] }
  0x41   :  { %267 = vmatmul.f32.gmra.mxu1 %v107_v24  ;;  %303 = vmatmul.f32.gmra.mxu2 %v143_v25  ;;  %v2465_v25 = vld [vmem:[%s4888_s0 + $0x68] sm:$0xff]  ;;  %5077 = vst [vmem:[#allocation30_spill] sm:$0xff] %v2599_v61 }
  0x42   :  { %379 = vmatpush.msrb.mxu1 %v27_v62  ;;  %540 = vmatpush.msrb.mxu2 %v43_v63  ;;  %5056 = vst [vmem:[#allocation9_spill] sm:$0xff] %v2465_v25  ;;  %v2604_v62 = vld [vmem:[%s4888_s0 + $0x130] sm:$0xff] }
  0x43   :  { %5078 = vst [vmem:[#allocation31_spill] sm:$0xff] %v2604_v62 }
  0x45   :  { %231 = vmatmul.f32.gmra.mxu0 %v2412_v14 }
  0x49   :  { %270 = vmatmul.f32.gmra.mxu1 %v110_v34  ;;  %306 = vmatmul.f32.gmra.mxu2 %v146_v35  ;;  %v2503_v35 = vld [vmem:[%s4888_s0 + $0x98] sm:$0xff] }
  0x4a   :  { %5062 = vst [vmem:[#allocation15_spill] sm:$0xff] %v2503_v35 }
  0x4d   :  { %234 = vmatmul.f32.gmra.mxu0 %v2427_v17 }
  0x51   :  { %273 = vmatmul.f32.gmra.mxu1 %v113_v44  ;;  %309 = vmatmul.f32.gmra.mxu2 %v149_v45  ;;  %v2541_v45 = vld [vmem:[%s4888_s0 + $0xc8] sm:$0xff] }
  0x52   :  { %5067 = vst [vmem:[#allocation20_spill] sm:$0xff] %v2541_v45 }
  0x55   :  { %237 = vmatmul.f32.gmra.mxu0 %v2442_v20 }
  0x59   :  { %276 = vmatmul.f32.gmra.mxu1 %v116_v54  ;;  %312 = vmatmul.f32.gmra.mxu2 %v152_v55  ;;  %v2572_v54 = vld [vmem:[%s4888_s0 + $0x100] sm:$0xff] }
  0x5a   :  { %5072 = vst [vmem:[#allocation25_spill] sm:$0xff] %v2572_v54 }
  0x5d   :  { %240 = vmatmul.f32.gmra.mxu0 %v2457_v23 }
  0x61   :  { %279 = vmatmul.f32.gmra.mxu1 %v119_v0  ;;  %315 = vmatmul.f32.gmra.mxu2 %v155_v1  ;;  %v2615_v1 = vld [vmem:[%s4888_s0 + $0x140] sm:$0xff] }
  0x62   :  { %5081 = vst [vmem:[#allocation34_spill] sm:$0xff] %v2615_v1 }
  0x65   :  { %243 = vmatmul.f32.gmra.mxu0 %v2476_v28 }
  0x69   :  { %282 = vmatmul.f32.gmra.mxu1 %v122_v3  ;;  %318 = vmatmul.f32.gmra.mxu2 %v158_v4  ;;  %v2620_v3 = vld [vmem:[%s4888_s0 + $0x148] sm:$0xff] }
  0x6a   :  { %5082 = vst [vmem:[#allocation35_spill] sm:$0xff] %v2620_v3 }
  0x6d   :  { %246 = vmatmul.f32.gmra.mxu0 %v2495_v33  ;;  %v2821_v33 = vld [vmem:[%s4888_s0 + $0x260] sm:$0xff] }
  0x6e   :  { %5111 = vst [vmem:[#allocation64_spill] sm:$0xff] %v2821_v33 }
  0x71   :  { %285 = vmatmul.f32.gmra.mxu1 %v125_v6  ;;  %321 = vmatmul.f32.gmra.mxu2 %v161_v7  ;;  %v2631_v7 = vld [vmem:[%s4888_s0 + $0x158] sm:$0xff] }
  0x72   :  { %5085 = vst [vmem:[#allocation38_spill] sm:$0xff] %v2631_v7 }
  0x75   :  { %249 = vmatmul.f32.gmra.mxu0 %v2514_v38 }
  0x79   :  { %288 = vmatmul.f32.gmra.mxu1 %v128_v9  ;;  %324 = vmatmul.f32.gmra.mxu2 %v164_v10  ;;  %v2636_v9 = vld [vmem:[%s4888_s0 + $0x160] sm:$0xff] }
  0x7a   :  { %5086 = vst [vmem:[#allocation39_spill] sm:$0xff] %v2636_v9 }
  0x7d   :  { %252 = vmatmul.f32.gmra.mxu0 %v2533_v43  ;;  %v2810_v43 = vld [vmem:[%s4888_s0 + $0x250] sm:$0xff] }
  0x7e   :  { %5109 = vst [vmem:[#allocation62_spill] sm:$0xff] %v2810_v43 }
  0x81   :  { %380 = vmatmul.f32.vlgmr.msrb.gmra.mxu1 %v2403_v12  ;;  %541 = vmatmul.f32.vlgmr.msrb.gmra.mxu2 %v61_v13  ;;  %v145_v12 = vld [vmem:[%s4888_s0 + $0x2b0] sm:$0xff] }
  0x89   :  { %383 = vmatmul.f32.gmra.mxu1 %v2418_v15  ;;  %544 = vmatmul.f32.gmra.mxu2 %v64_v16  ;;  %v2826_v15 = vld [vmem:[%s4888_s0 + $0x268] sm:$0xff] }
  0x8a   :  { %5112 = vst [vmem:[#allocation65_spill] sm:$0xff] %v2826_v15 }
  0x91   :  { %386 = vmatmul.f32.gmra.mxu1 %v2433_v18  ;;  %547 = vmatmul.f32.gmra.mxu2 %v67_v19  ;;  %v2649_v19 = vld [vmem:[%s4888_s0 + $0x170] sm:$0xff] }
  0x92   :  { %5089 = vst [vmem:[#allocation42_spill] sm:$0xff] %v2649_v19 }
  0x99   :  { %389 = vmatmul.f32.gmra.mxu1 %v2448_v21  ;;  %550 = vmatmul.f32.gmra.mxu2 %v70_v22  ;;  %v2654_v22 = vld [vmem:[%s4888_s0 + $0x178] sm:$0xff] }
  0x9a   :  { %5090 = vst [vmem:[#allocation43_spill] sm:$0xff] %v2654_v22 }
  0x9e   :  { %v2460_v24 = vpop.f32.mrf.mxu1 }
  0xa1   :  { %392 = vmatmul.f32.gmra.mxu1 %v2465_v25  ;;  %553 = vmatmul.f32.gmra.mxu2 %v73_v26  ;;  %v2638_v10 = vpop.f32.mrf.mxu0  ;;  %v2805_v25 = vld [vmem:[%s4888_s0 + $0x248] sm:$0xff] }
  0xa2   :  { %5108 = vst [vmem:[#allocation61_spill] sm:$0xff] %v2805_v25 }
  0xa4   :  { %v2471_v27 = vpop.f32.mrf.mxu2 }
  0xa5   :  { %5057 = vst [vmem:[#allocation10_spill] sm:$0xff] %v2471_v27  ;;  %v2901_v27 = vld [vmem:[%s4888_s0 + $0x308] sm:$0xff] }
  0xa6   :  { %v2479_v29 = vpop.f32.mrf.mxu1 }
  0xa9   :  { %395 = vmatmul.f32.gmra.mxu1 %v2484_v30  ;;  %556 = vmatmul.f32.gmra.mxu2 %v76_v31  ;;  %v2796_v30 = vld [vmem:[%s4888_s0 + $0x238] sm:$0xff] }
  0xaa   :  { %v2656_v26 = vpop.f32.mrf.mxu0  ;;  %5107 = vst [vmem:[#allocation60_spill] sm:$0xff] %v2796_v30 }
  0xac   :  { %v2490_v32 = vpop.f32.mrf.mxu2 }
  0xad   :  { %5060 = vst [vmem:[#allocation13_spill] sm:$0xff] %v2490_v32  ;;  %v157_v32 = vld [vmem:[%s4888_s0 + $0x310] sm:$0xff] }
  0xae   :  { %v2498_v34 = vpop.f32.mrf.mxu1 }
  0xb1   :  { %398 = vmatmul.f32.gmra.mxu1 %v2503_v35  ;;  %559 = vmatmul.f32.gmra.mxu2 %v79_v36  ;;  %v2791_v35 = vld [vmem:[%s4888_s0 + $0x230] sm:$0xff] }
  0xb2   :  { %5106 = vst [vmem:[#allocation59_spill] sm:$0xff] %v2791_v35 }
  0xb4   :  { %v2509_v37 = vpop.f32.mrf.mxu2 }
  0xb6   :  { %v2517_v39 = vpop.f32.mrf.mxu1 }
  0xb9   :  { %401 = vmatmul.f32.gmra.mxu1 %v2522_v40  ;;  %562 = vmatmul.f32.gmra.mxu2 %v82_v41  ;;  %v2667_v41 = vld [vmem:[%s4888_s0 + $0x188] sm:$0xff] }
  0xba   :  { %5092 = vst [vmem:[#allocation45_spill] sm:$0xff] %v2667_v41 }
  0xbc   :  { %v2528_v42 = vpop.f32.mrf.mxu2 }
  0xbe   :  { %v2536_v44 = vpop.f32.mrf.mxu1 }
  0xbf   :  { %5066 = vst [vmem:[#allocation19_spill] sm:$0xff] %v2536_v44 }
  0xc1   :  { %404 = vmatmul.f32.gmra.mxu1 %v2541_v45  ;;  %565 = vmatmul.f32.gmra.mxu2 %v85_v46  ;;  %v2672_v46 = vld [vmem:[%s4888_s0 + $0x190] sm:$0xff]  ;;  %v2778_v45 = vld [vmem:[%s4888_s0 + $0x220] sm:$0xff] }
  0xc2   :  { %5093 = vst [vmem:[#allocation46_spill] sm:$0xff] %v2672_v46 }
  0xc3   :  { %5105 = vst [vmem:[#allocation58_spill] sm:$0xff] %v2778_v45 }
  0xc4   :  { %v2547_v47 = vpop.f32.mrf.mxu2 }
  0xc6   :  { %v2549_v48 = vpop.f32.mrf.mxu1 }
  0xc7   :  { %5068 = vst [vmem:[#allocation21_spill] sm:$0xff] %v2549_v48 }
  0xc9   :  { %407 = vmatmul.f32.gmra.mxu1 %v2554_v49  ;;  %568 = vmatmul.f32.gmra.mxu2 %v88_v50  ;;  %v2676_v50 = vpop.f32.mrf.mxu0  ;;  %v2773_v49 = vld [vmem:[%s4888_s0 + $0x218] sm:$0xff] }
  0xca   :  { %5104 = vst [vmem:[#allocation57_spill] sm:$0xff] %v2773_v49 }
  0xcc   :  { %v2560_v51 = vpop.f32.mrf.mxu2 }
  0xce   :  { %v2562_v52 = vpop.f32.mrf.mxu1 }
  0xcf   :  { %5070 = vst [vmem:[#allocation23_spill] sm:$0xff] %v2562_v52 }
  0xd1   :  { %410 = vmatmul.f32.gmra.mxu1 %v2567_v53  ;;  %571 = vmatmul.f32.gmra.mxu2 %v2572_v54 }
  0xd4   :  { %v2576_v55 = vpop.f32.mrf.mxu2 }
  0xd6   :  { %v2578_v56 = vpop.f32.mrf.mxu1 }
  0xd7   :  { %5073 = vst [vmem:[#allocation26_spill] sm:$0xff] %v2578_v56 }
  0xd9   :  { %413 = vmatmul.f32.gmra.mxu1 %v2583_v57  ;;  %574 = vmatmul.f32.gmra.mxu2 %v2588_v58  ;;  %v2696_v58 = vpop.f32.mrf.mxu0  ;;  %v2760_v57 = vld [vmem:[%s4888_s0 + $0x208] sm:$0xff] }
  0xda   :  { %5103 = vst [vmem:[#allocation56_spill] sm:$0xff] %v2760_v57 }
  0xdc   :  { %v2592_v59 = vpop.f32.mrf.mxu2 }
  0xde   :  { %v2594_v60 = vpop.f32.mrf.mxu1 }
  0xdf   :  { %5076 = vst [vmem:[#allocation29_spill] sm:$0xff] %v2594_v60 }
  0xe1   :  { %416 = vmatmul.f32.gmra.mxu1 %v2599_v61  ;;  %577 = vmatmul.f32.gmra.mxu2 %v2604_v62  ;;  %v2690_v62 = vld [vmem:[%s4888_s0 + $0x1a8] sm:$0xff]  ;;  %v2755_v61 = vld [vmem:[%s4888_s0 + $0x200] sm:$0xff] }
  0xe2   :  { %5095 = vst [vmem:[#allocation48_spill] sm:$0xff] %v2690_v62 }
  0xe3   :  { %5102 = vst [vmem:[#allocation55_spill] sm:$0xff] %v2755_v61 }
  0xe4   :  { %v2608_v63 = vpop.f32.mrf.mxu2 }
  0xe5   :  { %5079 = vst [vmem:[#allocation32_spill] sm:$0xff] %v2608_v63  ;;  %v2708_v63 = vld [vmem:[%s4888_s0 + $0x1c0] sm:$0xff] }
  0xe6   :  { %v2610_v0 = vpop.f32.mrf.mxu1  ;;  %5097 = vst [vmem:[#allocation50_spill] sm:$0xff] %v2708_v63 }
  0xe7   :  { %5080 = vst [vmem:[#allocation33_spill] sm:$0xff] %v2610_v0 }
  0xe9   :  { %419 = vmatmul.f32.gmra.mxu1 %v2615_v1  ;;  %580 = vmatmul.f32.gmra.mxu2 %v2620_v3  ;;  %v2685_v3 = vld [vmem:[%s4888_s0 + $0x1a0] sm:$0xff] }
  0xea   :  { %5094 = vst [vmem:[#allocation47_spill] sm:$0xff] %v2685_v3 }
  0xec   :  { %v2624_v4 = vpop.f32.mrf.mxu2 }
  0xed   :  { %5083 = vst [vmem:[#allocation36_spill] sm:$0xff] %v2624_v4  ;;  %v2719_v4 = vld [vmem:[%s4888_s0 + $0x1d0] sm:$0xff] }
  0xee   :  { %v2626_v6 = vpop.f32.mrf.mxu1  ;;  %5098 = vst [vmem:[#allocation51_spill] sm:$0xff] %v2719_v4 }
  0xef   :  { %5084 = vst [vmem:[#allocation37_spill] sm:$0xff] %v2626_v6 }
  0xf1   :  { %422 = vmatmul.f32.gmra.mxu1 %v2631_v7  ;;  %583 = vmatmul.f32.gmra.mxu2 %v2636_v9  ;;  %v2742_v7 = vld [vmem:[%s4888_s0 + $0x1f0] sm:$0xff] }
  0xf2   :  { %5101 = vst [vmem:[#allocation54_spill] sm:$0xff] %v2742_v7 }
  0xf4   :  { %v2642_v13 = vpop.f32.mrf.mxu2 }
  0xf5   :  { %5087 = vst [vmem:[#allocation40_spill] sm:$0xff] %v2642_v13  ;;  %v2726_v13 = vpop.f32.mrf.mxu0 }
  0xf6   :  { %v2644_v16 = vpop.f32.mrf.mxu1 }
  0xf7   :  { %5088 = vst [vmem:[#allocation41_spill] sm:$0xff] %v2644_v16 }
  0xf9   :  { %425 = vmatmul.f32.gmra.mxu1 %v2649_v19  ;;  %586 = vmatmul.f32.gmra.mxu2 %v2654_v22  ;;  %v2724_v19 = vld [vmem:[%s4888_s0 + $0x1d8] sm:$0xff] }
  0xfa   :  { %5099 = vst [vmem:[#allocation52_spill] sm:$0xff] %v2724_v19 }
  0xfc   :  { %v2660_v31 = vpop.f32.mrf.mxu2 }
  0xfd   :  { %5091 = vst [vmem:[#allocation44_spill] sm:$0xff] %v2660_v31  ;;  %v2737_v31 = vld [vmem:[%s4888_s0 + $0x1e8] sm:$0xff]  ;;  %v2744_v1 = vpop.f32.mrf.mxu0 }
  0xfe   :  { %v2662_v36 = vpop.f32.mrf.mxu1  ;;  %5100 = vst [vmem:[#allocation53_spill] sm:$0xff] %v2737_v31 }
 0x101   :  { %428 = vmatmul.f32.gmra.mxu1 %v2667_v41  ;;  %589 = vmatmul.f32.gmra.mxu2 %v2672_v46  ;;  %v2703_v41 = vld [vmem:[%s4888_s0 + $0x1b8] sm:$0xff] }
 0x102   :  { %5096 = vst [vmem:[#allocation49_spill] sm:$0xff] %v2703_v41 }
 0x104   :  { %v2678_v22 = vpop.f32.mrf.mxu2 }
 0x106   :  { %v2680_v9 = vpop.f32.mrf.mxu1 }
 0x109   :  { %431 = vmatmul.f32.gmra.mxu1 %v2685_v3  ;;  %592 = vmatmul.f32.gmra.mxu2 %v2690_v62 }
 0x10c   :  { %v2694_v46 = vpop.f32.mrf.mxu2 }
 0x10e   :  { %v2698_v54 = vpop.f32.mrf.mxu1 }
 0x111   :  { %434 = vmatmul.f32.gmra.mxu1 %v2703_v41  ;;  %595 = vmatmul.f32.gmra.mxu2 %v2708_v63 }
 0x114   :  { %v2712_v62 = vpop.f32.mrf.mxu2 }
 0x116   :  { %v2714_v3 = vpop.f32.mrf.mxu1 }
 0x119   :  { %437 = vmatmul.f32.gmra.mxu1 %v2719_v4  ;;  %598 = vmatmul.f32.gmra.mxu2 %v2724_v19 }
 0x11c   :  { %v2730_v63 = vpop.f32.mrf.mxu2 }
 0x11e   :  { %v2732_v41 = vpop.f32.mrf.mxu1 }
 0x121   :  { %440 = vmatmul.f32.gmra.mxu1 %v2737_v31  ;;  %601 = vmatmul.f32.gmra.mxu2 %v2742_v7  ;;  %v2764_v31 = vpop.f32.mrf.mxu0 }
 0x124   :  { %v2748_v19 = vpop.f32.mrf.mxu2 }
 0x126   :  { %v2750_v4 = vpop.f32.mrf.mxu1 }
 0x129   :  { %443 = vmatmul.f32.gmra.mxu1 %v2755_v61  ;;  %604 = vmatmul.f32.gmra.mxu2 %v2760_v57  ;;  %v2784_v61 = vpop.f32.mrf.mxu0 }
 0x12c   :  { %v2766_v7 = vpop.f32.mrf.mxu2 }
 0x12e   :  { %v2768_v53 = vpop.f32.mrf.mxu1 }
 0x131   :  { %446 = vmatmul.f32.gmra.mxu1 %v2773_v49  ;;  %607 = vmatmul.f32.gmra.mxu2 %v2778_v45  ;;  %v244_v21 = vpop.f32.mrf.mxu0 }
 0x134   :  { %v2782_v57 = vpop.f32.mrf.mxu2 }
 0x136   :  { %v2786_v40 = vpop.f32.mrf.mxu1 }
 0x139   :  { %449 = vmatmul.f32.gmra.mxu1 %v2791_v35  ;;  %610 = vmatmul.f32.gmra.mxu2 %v2796_v30  ;;  %v247_v48 = vpop.f32.mrf.mxu0 }
 0x13c   :  { %v2800_v45 = vpop.f32.mrf.mxu2 }
 0x13e   :  { %v405_v49 = vpop.f32.mrf.mxu1 }
 0x13f   :  { %v406_v35 = vadd.f32 %v405_v49, %v244_v21  ;;  %v2840_v49 = vld [vmem:[%s4888_s0 + $0x280] sm:$0xff] }
 0x140   :  { %5114 = vst [vmem:[#allocation67_spill] sm:$0xff] %v2840_v49 }
 0x141   :  { %452 = vmatmul.f32.gmra.mxu1 %v2805_v25  ;;  %613 = vmatmul.f32.gmra.mxu2 %v2810_v43  ;;  %v2852_v25 = vld [vmem:[%s4888_s0 + $0x298] sm:$0xff]  ;;  %v250_v60 = vpop.f32.mrf.mxu0 }
 0x142   :  { %5116 = vst [vmem:[#allocation69_spill] sm:$0xff] %v2852_v25 }
 0x144   :  { %v566_v30 = vpop.f32.mrf.mxu2 }
 0x145   :  { %v2814_v38 = vadd.f32 %v566_v30, %v406_v35  ;;  %v2835_v35 = vld [vmem:[%s4888_s0 + $0x278] sm:$0xff] }
 0x146   :  { %v2816_v18 = vpop.f32.mrf.mxu1  ;;  %5113 = vst [vmem:[#allocation66_spill] sm:$0xff] %v2835_v35 }
 0x147   :  { %5110 = vst [vmem:[#allocation63_spill] sm:$0xff] %v2814_v38 }
 0x149   :  { %455 = vmatmul.f32.gmra.mxu1 %v2821_v33  ;;  %616 = vmatmul.f32.gmra.mxu2 %v2826_v15  ;;  %v2847_v15 = vld [vmem:[%s4888_s0 + $0x290] sm:$0xff] }
 0x14a   :  { %5115 = vst [vmem:[#allocation68_spill] sm:$0xff] %v2847_v15 }
 0x14c   :  { %v2830_v21 = vpop.f32.mrf.mxu2 }
 0x14e   :  { %v411_v30 = vpop.f32.mrf.mxu1 }
 0x151   :  { %458 = vmatmul.f32.gmra.mxu1 %v2835_v35  ;;  %619 = vmatmul.f32.gmra.mxu2 %v2840_v49  ;;  %v2859_v49 = vld [vmem:[%s4888_s0 + $0x2a8] sm:$0xff] }
 0x152   :  { %5117 = vst [vmem:[#allocation70_spill] sm:$0xff] %v2859_v49 }
 0x154   :  { %v572_v43 = vpop.f32.mrf.mxu2 }
 0x156   :  { %v414_v33 = vpop.f32.mrf.mxu1 }
 0x159   :  { %461 = vmatmul.f32.gmra.mxu1 %v2847_v15  ;;  %622 = vmatmul.f32.gmra.mxu2 %v2852_v25  ;;  %v2868_v25 = vld [vmem:[%s4888_s0 + $0x2c0] sm:$0xff]  ;;  %v148_v15 = vld [vmem:[%s4888_s0 + $0x2c8] sm:$0xff] }
 0x15a   :  { %5118 = vst [vmem:[#allocation71_spill] sm:$0xff] %v2868_v25 }
 0x15c   :  { %v575_v28 = vpop.f32.mrf.mxu2 }
 0x15e   :  { %v417_v35 = vpop.f32.mrf.mxu1 }
 0x161   :  { %464 = vmatmul.f32.gmra.mxu1 %v2859_v49  ;;  %625 = vmatmul.f32.gmra.mxu2 %v145_v12  ;;  %v2877_v12 = vld [vmem:[%s4888_s0 + $0x2d8] sm:$0xff]  ;;  %v151_v49 = vld [vmem:[%s4888_s0 + $0x2e0] sm:$0xff] }
 0x162   :  { %5119 = vst [vmem:[#allocation72_spill] sm:$0xff] %v2877_v12 }
 0x164   :  { %v578_v23 = vpop.f32.mrf.mxu2 }
 0x166   :  { %v420_v44 = vpop.f32.mrf.mxu1 }
 0x169   :  { %467 = vmatmul.f32.gmra.mxu1 %v2868_v25  ;;  %628 = vmatmul.f32.gmra.mxu2 %v148_v15  ;;  %v2886_v15 = vld [vmem:[%s4888_s0 + $0x2f0] sm:$0xff]  ;;  %v154_v25 = vld [vmem:[%s4888_s0 + $0x2f8] sm:$0xff] }
 0x16a   :  { %5120 = vst [vmem:[#allocation73_spill] sm:$0xff] %v2886_v15 }
 0x16c   :  { %v581_v52 = vpop.f32.mrf.mxu2 }
 0x16e   :  { %v423_v20 = vpop.f32.mrf.mxu1 }
 0x171   :  { %470 = vmatmul.f32.gmra.mxu1 %v2877_v12  ;;  %631 = vmatmul.f32.gmra.mxu2 %v151_v49  ;;  %v424_v49 = vadd.f32 %v423_v20, %v2498_v34  ;;  %v421_v20 = vadd.f32 %v420_v44, %v2479_v29  ;;  %v409_v44 = vadd.f32 %v2816_v18, %v247_v48  ;;  %v2946_v18 = vld [vmem:[%s4888_s0 + $0x378] sm:$0xff] }
 0x173   :  { %v2953_v48 = vadd.f32 %v2830_v21, %v409_v44  ;;  %v2972_v21 = vld [vmem:[%s4888_s0 + $0x338] sm:$0xff] }
 0x174   :  { %v584_v56 = vpop.f32.mrf.mxu2 }
 0x176   :  { %v426_v0 = vpop.f32.mrf.mxu1 }
 0x177   :  { %v427_v6 = vadd.f32 %v426_v0, %v2517_v39  ;;  %v418_v39 = vadd.f32 %v417_v35, %v2460_v24  ;;  %v2919_v0 = vadd.f32 %v581_v52, %v421_v20  ;;  %v2935_v24 = vld [vmem:[%s4888_s0 + $0x320] sm:$0xff]  ;;  %v3049_v35 = vld [vmem:[%s4888_s0 + $0x370] sm:$0xff]  ;;  %v3071_v20 = vld [vmem:[%s4888_s0 + $0x388] sm:$0xff] }
 0x178   :  { %5136 = vst [vmem:[#allocation89_spill] sm:$0xff] %v3049_v35 }
 0x179   :  { %473 = vmatmul.f32.gmra.mxu1 %v2886_v15  ;;  %634 = vmatmul.f32.gmra.mxu2 %v154_v25  ;;  %v253_v15 = vpop.f32.mrf.mxu0  ;;  %v2913_v25 = vadd.f32 %v584_v56, %v424_v49  ;;  %5123 = vst [vmem:[#allocation76_spill] sm:$0xff] %v2919_v0  ;;  %v2924_v29 = vadd.f32 %v578_v23, %v418_v39  ;;  %v3081_v39 = vld [vmem:[%s4888_s0 + $0x3d8] sm:$0xff] }
 0x17a   :  { %v415_v34 = vadd.f32 %v414_v33, %v253_v15  ;;  %v160_v33 = vld [vmem:[%s4888_s0 + $0x328] sm:$0xff]  ;;  %v3059_v15 = vld [vmem:[%s4888_s0 + $0x3c0] sm:$0xff]  ;;  %5138 = vst [vmem:[#allocation91_spill] sm:$0xff] %v3071_v20 }
 0x17b   :  { %5122 = vst [vmem:[#allocation75_spill] sm:$0xff] %v2913_v25 }
 0x17c   :  { %v587_v17 = vpop.f32.mrf.mxu2  ;;  %5124 = vst [vmem:[#allocation77_spill] sm:$0xff] %v2924_v29 }
 0x17d   :  { %v2893_v12 = vadd.f32 %v587_v17, %v427_v6  ;;  %v2910_v17 = vld [vmem:[%s4888_s0 + $0x360] sm:$0xff]  ;;  %v412_v6 = vadd.f32 %v411_v30, %v250_v60  ;;  %v397_v60 = vadd.f32 %v2750_v4, %v2744_v1  ;;  %v391_v4 = vadd.f32 %v2714_v3, %v2696_v58  ;;  %5137 = vst [vmem:[#allocation90_spill] sm:$0xff] %v3059_v15 }
 0x17e   :  { %v2896_v16 = vpop.f32.mrf.mxu1  ;;  %327 = vmatmul.f32.vlgmr.msra.gmra.mxu3 %v2910_v17  ;;  %v385_v58 = vadd.f32 %v2680_v9, %v2656_v26  ;;  %5139 = vst [vmem:[#allocation92_spill] sm:$0xff] %v3081_v39 }
 0x17f   :  { %5121 = vst [vmem:[#allocation74_spill] sm:$0xff] %v2893_v12  ;;  %734 = vmatpush.msrb.mxu3 %v2893_v12  ;;  %v2941_v23 = vadd.f32 %v572_v43, %v412_v6  ;;  %v400_v43 = vadd.f32 %v2768_v53, %v2764_v31  ;;  %v163_v53 = vld [vmem:[%s4888_s0 + $0x340] sm:$0xff]  ;;  %v394_v31 = vadd.f32 %v2732_v41, %v2726_v13 }
 0x180   :  { %v2993_v13 = vadd.f32 %v2766_v7, %v397_v60  ;;  %v3010_v7 = vadd.f32 %v2730_v63, %v391_v4  ;;  %v3029_v63 = vld [vmem:[%s4888_s0 + $0x3a8] sm:$0xff]  ;;  %v3034_v26 = vadd.f32 %v2694_v46, %v385_v58  ;;  %v3120_v4 = vld [vmem:[%s4888_s0 + $0x3b0] sm:$0xff] }
 0x181   :  { %476 = vmatmul.f32.gmra.mxu1 %v2901_v27  ;;  %637 = vmatmul.f32.gmra.mxu2 %v157_v32  ;;  %v2930_v32 = vadd.f32 %v575_v28, %v415_v34  ;;  %5126 = vst [vmem:[#allocation79_spill] sm:$0xff] %v2941_v23  ;;  %v403_v28 = vadd.f32 %v2786_v40, %v2784_v61  ;;  %v3054_v46 = vld [vmem:[%s4888_s0 + $0x368] sm:$0xff]  ;;  %v3076_v34 = vld [vmem:[%s4888_s0 + $0x380] sm:$0xff] }
 0x182   :  { %735 = vmatpush.msrb.mxu3 %v2913_v25  ;;  %v2981_v1 = vadd.f32 %v2782_v57, %v400_v43  ;;  %5129 = vst [vmem:[#allocation82_spill] sm:$0xff] %v2993_v13  ;;  %v388_v57 = vadd.f32 %v2698_v54, %v2676_v50  ;;  %v3002_v30 = vadd.f32 %v2748_v19, %v394_v31  ;;  %v3015_v54 = vld [vmem:[%s4888_s0 + $0x350] sm:$0xff]  ;;  %v166_v19 = vld [vmem:[%s4888_s0 + $0x358] sm:$0xff]  ;;  %v3220_v25 = vld [vmem:[%s4888_s0 + $0x428] sm:$0xff] }
 0x183   :  { %5125 = vst [vmem:[#allocation78_spill] sm:$0xff] %v2930_v32  ;;  %v2967_v61 = vadd.f32 %v2800_v45, %v403_v28  ;;  %v2986_v45 = vld [vmem:[%s4888_s0 + $0x390] sm:$0xff]  ;;  %v382_v50 = vadd.f32 %v2662_v36, %v2638_v10  ;;  %v3098_v28 = vld [vmem:[%s4888_s0 + $0x398] sm:$0xff] }
 0x184   :  { %736 = vmatpush.msrb.mxu3 %v2919_v0  ;;  %v2922_v12 = vpop.f32.mrf.mxu2  ;;  %5128 = vst [vmem:[#allocation81_spill] sm:$0xff] %v2981_v1  ;;  %v3024_v9 = vadd.f32 %v2712_v62, %v388_v57  ;;  %v3103_v43 = vld [vmem:[%s4888_s0 + $0x3f0] sm:$0xff]  ;;  %v3115_v31 = vld [vmem:[%s4888_s0 + $0x3b8] sm:$0xff]  ;;  %v3125_v57 = vld [vmem:[%s4888_s0 + $0x408] sm:$0xff] }
 0x185   :  { %5127 = vst [vmem:[#allocation80_spill] sm:$0xff] %v2967_v61  ;;  %v3041_v62 = vadd.f32 %v2678_v22, %v382_v50  ;;  %v3137_v50 = vld [vmem:[%s4888_s0 + $0x3d0] sm:$0xff] }
 0x186   :  { %737 = vmatpush.msrb.mxu3 %v2924_v29  ;;  %v2928_v56 = vpop.f32.mrf.mxu1  ;;  %5130 = vst [vmem:[#allocation83_spill] sm:$0xff] %v3002_v30  ;;  %v3259_v0 = vld [vmem:[%s4888_s0 + $0x470] sm:$0xff] }
 0x187   :  { %330 = vmatmul.f32.gmra.mxu3 %v2946_v18  ;;  %5131 = vst [vmem:[#allocation84_spill] sm:$0xff] %v3010_v7 }
 0x188   :  { %738 = vmatpush.msrb.mxu3 %v2930_v32  ;;  %5132 = vst [vmem:[#allocation85_spill] sm:$0xff] %v3024_v9 }
 0x189   :  { %479 = vmatmul.f32.gmra.mxu1 %v2935_v24  ;;  %640 = vmatmul.f32.gmra.mxu2 %v160_v33  ;;  %5133 = vst [vmem:[#allocation86_spill] sm:$0xff] %v3029_v63  ;;  %v3093_v33 = vld [vmem:[%s4888_s0 + $0x3a0] sm:$0xff] }
 0x18a   :  { %739 = vmatpush.msrb.mxu3 %v2941_v23  ;;  %5134 = vst [vmem:[#allocation87_spill] sm:$0xff] %v3034_v26 }
 0x18b   :  { %5135 = vst [vmem:[#allocation88_spill] sm:$0xff] %v3041_v62 }
 0x18c   :  { %740 = vmatpush.msrb.mxu3 %v2953_v48  ;;  %v2959_v52 = vpop.f32.mrf.mxu2  ;;  %5140 = vst [vmem:[#allocation93_spill] sm:$0xff] %v3093_v33 }
 0x18d   :  { %5141 = vst [vmem:[#allocation94_spill] sm:$0xff] %v3103_v43 }
 0x18e   :  { %741 = vmatpush.msrb.mxu3 %v2814_v38  ;;  %v2964_v40 = vpop.f32.mrf.mxu1  ;;  %5142 = vst [vmem:[#allocation95_spill] sm:$0xff] %v3115_v31  ;;  %v3142_v38 = vld [vmem:[%s4888_s0 + $0x3c8] sm:$0xff] }
 0x18f   :  { %333 = vmatmul.f32.gmra.mxu3 %v2986_v45  ;;  %5143 = vst [vmem:[#allocation96_spill] sm:$0xff] %v3120_v4 }
 0x190   :  { %742 = vmatpush.msrb.mxu3 %v2967_v61  ;;  %5144 = vst [vmem:[#allocation97_spill] sm:$0xff] %v3125_v57  ;;  %v3147_v61 = vld [vmem:[%s4888_s0 + $0x420] sm:$0xff] }
 0x191   :  { %482 = vmatmul.f32.gmra.mxu1 %v2972_v21  ;;  %643 = vmatmul.f32.gmra.mxu2 %v163_v53  ;;  %5145 = vst [vmem:[#allocation98_spill] sm:$0xff] %v3137_v50 }
 0x192   :  { %743 = vmatpush.msrb.mxu3 %v2981_v1  ;;  %5146 = vst [vmem:[#allocation99_spill] sm:$0xff] %v3142_v38 }
 0x193   :  { %5147 = vst [vmem:[#allocation100_spill] sm:$0xff] %v3147_v61 }
 0x194   :  { %744 = vmatpush.msrb.mxu3 %v2993_v13  ;;  %v2999_v41 = vpop.f32.mrf.mxu2  ;;  %5158 = vst [vmem:[#allocation111_spill] sm:$0xff] %v3220_v25 }
 0x195   :  { %5164 = vst [vmem:[#allocation117_spill] sm:$0xff] %v3259_v0 }
 0x196   :  { %745 = vmatpush.msrb.mxu3 %v3002_v30  ;;  %v3007_v3 = vpop.f32.mrf.mxu1  ;;  %v3159_v30 = vld [vmem:[%s4888_s0 + $0x3e8] sm:$0xff] }
 0x197   :  { %336 = vmatmul.f32.gmra.mxu3 %v3029_v63  ;;  %5148 = vst [vmem:[#allocation101_spill] sm:$0xff] %v3159_v30  ;;  %v5217_v63 = vld [vmem:[#allocation30_spill] sm:$0xff] }
 0x198   :  { %746 = vmatpush.msrb.mxu3 %v3010_v7  ;;  %v3164_v7 = vld [vmem:[%s4888_s0 + $0x3e0] sm:$0xff] }
 0x199   :  { %485 = vmatmul.f32.gmra.mxu1 %v3015_v54  ;;  %646 = vmatmul.f32.gmra.mxu2 %v166_v19  ;;  %5149 = vst [vmem:[#allocation102_spill] sm:$0xff] %v3164_v7 }
 0x19a   :  { %747 = vmatpush.msrb.mxu3 %v3024_v9  ;;  %v3169_v9 = vld [vmem:[%s4888_s0 + $0x438] sm:$0xff] }
 0x19b   :  { %5150 = vst [vmem:[#allocation103_spill] sm:$0xff] %v3169_v9 }
 0x19c   :  { %748 = vmatpush.msrb.mxu3 %v3034_v26  ;;  %v3038_v10 = vpop.f32.mrf.mxu2 }
 0x19e   :  { %749 = vmatpush.msrb.mxu3 %v3041_v62  ;;  %v3044_v36 = vpop.f32.mrf.mxu1 }
 0x19f   :  { %339 = vmatmul.f32.gmra.mxu3 %v3059_v15 }
 0x1a1   :  { %649 = vmatmul.f32.gmra.mxu2 %v3049_v35  ;;  %488 = vmatmul.f32.gmra.mxu1 %v3054_v46  ;;  %v3197_v35 = vld [vmem:[%s4888_s0 + $0x418] sm:$0xff] }
 0x1a2   :  { %5154 = vst [vmem:[#allocation107_spill] sm:$0xff] %v3197_v35 }
 0x1a4   :  { %v3064_v22 = vpop.f32.mrf.mxu2 }
 0x1a6   :  { %v3066_v49 = vpop.f32.mrf.mxu1 }
 0x1a7   :  { %342 = vmatmul.f32.gmra.mxu3 %v3081_v39 }
 0x1a9   :  { %652 = vmatmul.f32.gmra.mxu2 %v3071_v20  ;;  %491 = vmatmul.f32.gmra.mxu1 %v3076_v34 }
 0x1ac   :  { %v3086_v6 = vpop.f32.mrf.mxu2 }
 0x1ae   :  { %v3088_v44 = vpop.f32.mrf.mxu1 }
 0x1af   :  { %345 = vmatmul.f32.gmra.mxu3 %v3103_v43  ;;  %v3246_v43 = vld [vmem:[%s4888_s0 + $0x458] sm:$0xff] }
 0x1b0   :  { %5162 = vst [vmem:[#allocation115_spill] sm:$0xff] %v3246_v43 }
 0x1b1   :  { %655 = vmatmul.f32.gmra.mxu2 %v3093_v33  ;;  %494 = vmatmul.f32.gmra.mxu1 %v3098_v28 }
 0x1b4   :  { %v3108_v60 = vpop.f32.mrf.mxu2 }
 0x1b6   :  { %v3110_v53 = vpop.f32.mrf.mxu1 }
 0x1b7   :  { %348 = vmatmul.f32.gmra.mxu3 %v3125_v57  ;;  %v3215_v57 = vld [vmem:[%s4888_s0 + $0x430] sm:$0xff] }
 0x1b8   :  { %5157 = vst [vmem:[#allocation110_spill] sm:$0xff] %v3215_v57 }
 0x1b9   :  { %658 = vmatmul.f32.gmra.mxu2 %v3115_v31  ;;  %497 = vmatmul.f32.gmra.mxu1 %v3120_v4  ;;  %v3184_v31 = vld [vmem:[%s4888_s0 + $0x3f8] sm:$0xff] }
 0x1ba   :  { %5152 = vst [vmem:[#allocation105_spill] sm:$0xff] %v3184_v31 }
 0x1bc   :  { %v3130_v58 = vpop.f32.mrf.mxu2 }
 0x1be   :  { %v3132_v19 = vpop.f32.mrf.mxu1 }
 0x1bf   :  { %351 = vmatmul.f32.gmra.mxu3 %v3147_v61 }
 0x1c1   :  { %661 = vmatmul.f32.gmra.mxu2 %v3137_v50  ;;  %500 = vmatmul.f32.gmra.mxu1 %v3142_v38  ;;  %v3179_v50 = vld [vmem:[%s4888_s0 + $0x400] sm:$0xff] }
 0x1c2   :  { %5151 = vst [vmem:[#allocation104_spill] sm:$0xff] %v3179_v50 }
 0x1c4   :  { %v3152_v1 = vpop.f32.mrf.mxu2 }
 0x1c6   :  { %v3154_v13 = vpop.f32.mrf.mxu1 }
 0x1c7   :  { %354 = vmatmul.f32.gmra.mxu3 %v3169_v9  ;;  %v3202_v9 = vld [vmem:[%s4888_s0 + $0x410] sm:$0xff] }
 0x1c8   :  { %5155 = vst [vmem:[#allocation108_spill] sm:$0xff] %v3202_v9 }
 0x1c9   :  { %664 = vmatmul.f32.gmra.mxu2 %v3159_v30  ;;  %503 = vmatmul.f32.gmra.mxu1 %v3164_v7  ;;  %v3189_v30 = vld [vmem:[%s4888_s0 + $0x450] sm:$0xff] }
 0x1ca   :  { %5153 = vst [vmem:[#allocation106_spill] sm:$0xff] %v3189_v30 }
 0x1cc   :  { %v3174_v26 = vpop.f32.mrf.mxu2 }
 0x1ce   :  { %v459_v62 = vpop.f32.mrf.mxu1 }
 0x1cf   :  { %357 = vmatmul.f32.gmra.mxu3 %v3189_v30 }
 0x1d1   :  { %667 = vmatmul.f32.gmra.mxu2 %v3179_v50  ;;  %506 = vmatmul.f32.gmra.mxu1 %v3184_v31  ;;  %v3207_v50 = vld [vmem:[%s4888_s0 + $0x468] sm:$0xff]  ;;  %v3233_v31 = vld [vmem:[%s4888_s0 + $0x440] sm:$0xff] }
 0x1d2   :  { %5156 = vst [vmem:[#allocation109_spill] sm:$0xff] %v3207_v50 }
 0x1d3   :  { %5160 = vst [vmem:[#allocation113_spill] sm:$0xff] %v3233_v31 }
 0x1d4   :  { %v620_v33 = vpop.f32.mrf.mxu2 }
 0x1d6   :  { %v462_v20 = vpop.f32.mrf.mxu1 }
 0x1d7   :  { %360 = vmatmul.f32.gmra.mxu3 %v3207_v50 }
 0x1d9   :  { %670 = vmatmul.f32.gmra.mxu2 %v3197_v35  ;;  %509 = vmatmul.f32.gmra.mxu1 %v3202_v9  ;;  %v3228_v9 = vld [vmem:[%s4888_s0 + $0x448] sm:$0xff] }
 0x1da   :  { %5159 = vst [vmem:[#allocation112_spill] sm:$0xff] %v3228_v9 }
 0x1dc   :  { %v623_v30 = vpop.f32.mrf.mxu2 }
 0x1de   :  { %v465_v61 = vpop.f32.mrf.mxu1 }
 0x1df   :  { %750 = vmatmul.f32.vlgmr.msrb.gmra.mxu3 %v2361_v2 }
 0x1e1   :  { %673 = vmatmul.f32.gmra.mxu2 %v3215_v57  ;;  %512 = vmatmul.f32.gmra.mxu1 %v3220_v25  ;;  %v3241_v25 = vld [vmem:[%s4888_s0 + $0x460] sm:$0xff] }
 0x1e2   :  { %5161 = vst [vmem:[#allocation114_spill] sm:$0xff] %v3241_v25 }
 0x1e4   :  { %v626_v35 = vpop.f32.mrf.mxu2 }
 0x1e6   :  { %v468_v50 = vpop.f32.mrf.mxu1 }
 0x1e7   :  { %753 = vmatmul.f32.gmra.mxu3 %v2373_v5  ;;  %v469_v29 = vadd.f32 %v468_v50, %v2560_v51  ;;  %v460_v51 = vadd.f32 %v459_v62, %v2509_v37 }
 0x1e9   :  { %676 = vmatmul.f32.gmra.mxu2 %v3228_v9  ;;  %515 = vmatmul.f32.gmra.mxu1 %v3233_v31  ;;  %v3254_v31 = vld [vmem:[%s4888_s0 + $0x478] sm:$0xff] }
 0x1ea   :  { %5163 = vst [vmem:[#allocation116_spill] sm:$0xff] %v3254_v31 }
 0x1ec   :  { %v629_v57 = vpop.f32.mrf.mxu2 }
 0x1ee   :  { %v471_v2 = vpop.f32.mrf.mxu1 }
 0x1ef   :  { %756 = vmatmul.f32.gmra.mxu3 %v2385_v8 }
 0x1f1   :  { %679 = vmatmul.f32.gmra.mxu2 %v3241_v25  ;;  %518 = vmatmul.f32.gmra.mxu1 %v3246_v43  ;;  %v472_v43 = vadd.f32 %v471_v2, %v2576_v55  ;;  %v5181_v2 = vld [vmem:[#allocation29_spill] sm:$0xff] }
 0x1f4   :  { %v632_v9 = vpop.f32.mrf.mxu2 }
 0x1f5   :  { %v3272_v38 = vadd.f32 %v632_v9, %v472_v43 }
 0x1f6   :  { %v474_v5 = vpop.f32.mrf.mxu1 }
 0x1f7   :  { %v475_v25 = vadd.f32 %v474_v5, %v2592_v59  ;;  %759 = vmatmul.f32.gmra.mxu3 %v2397_v11  ;;  %5166 = vst [vmem:[#allocation119_spill] sm:$0xff] %v3272_v38  ;;  %v3276_v59 = vadd.f32 %v629_v57, %v469_v29  ;;  %v463_v11 = vadd.f32 %v462_v20, %v2528_v42  ;;  %v5170_v29 = vld [vmem:[#allocation13_spill] sm:$0xff] }
 0x1f8   :  { %v3294_v42 = vadd.f32 %v620_v33, %v460_v51  ;;  %v5176_v33 = vld [vmem:[#allocation4_spill] sm:$0xff]  ;;  %v442_v5 = vadd.f32 %v3044_v36, %v5181_v2  ;;  %v5186_v36 = vld [vmem:[#allocation23_spill] sm:$0xff] }
 0x1f9   :  { %682 = vmatmul.f32.gmra.mxu2 %v3254_v31  ;;  %521 = vmatmul.f32.gmra.mxu1 %v3259_v0  ;;  %v466_v31 = vadd.f32 %v465_v61, %v2547_v47  ;;  %5167 = vst [vmem:[#allocation120_spill] sm:$0xff] %v3276_v59  ;;  %v3287_v9 = vadd.f32 %v623_v30, %v463_v11  ;;  %v5174_v30 = vld [vmem:[#allocation41_spill] sm:$0xff] }
 0x1fa   :  { %v457_v61 = vadd.f32 %v3154_v13, %v5170_v29  ;;  %5171 = vst [vmem:[#allocation13_spill] sm:$0xff] %v3294_v42  ;;  %v451_v62 = vadd.f32 %v3110_v53, %v5174_v30  ;;  %v5179_v53 = vld [vmem:[#allocation33_spill] sm:$0xff]  ;;  %v436_v29 = vadd.f32 %v2964_v40, %v5186_v36 }
 0x1fb   :  { %v3280_v55 = vadd.f32 %v626_v35, %v466_v31  ;;  %5169 = vst [vmem:[#allocation122_spill] sm:$0xff] %v3287_v9  ;;  %v5177_v31 = vld [vmem:[#allocation37_spill] sm:$0xff]  ;;  %v445_v50 = vadd.f32 %v3066_v49, %v5179_v53  ;;  %v3339_v49 = vadd.f32 %v3064_v22, %v442_v5  ;;  %v5196_v53 = vld [vmem:[#allocation3_spill] sm:$0xff] }
 0x1fc   :  { %v635_v8 = vpop.f32.mrf.mxu2  ;;  %v3302_v37 = vadd.f32 %v3174_v26, %v457_v61  ;;  %v448_v57 = vadd.f32 %v3088_v44, %v5177_v31  ;;  %v3317_v26 = vadd.f32 %v3130_v58, %v451_v62  ;;  %v3356_v22 = vadd.f32 %v2999_v41, %v436_v29  ;;  %v5193_v62 = vld [vmem:[#allocation8_spill] sm:$0xff]  ;;  %v5195_v31 = vld [vmem:[#allocation11_spill] sm:$0xff] }
 0x1fd   :  { %v3266_v7 = vadd.f32 %v635_v8, %v475_v25  ;;  %5168 = vst [vmem:[#allocation121_spill] sm:$0xff] %v3280_v55  ;;  %v3331_v44 = vadd.f32 %v3086_v6, %v445_v50  ;;  %v5183_v8 = vld [vmem:[#allocation26_spill] sm:$0xff] }
 0x1fe   :  { %v3268_v39 = vpop.f32.mrf.mxu1  ;;  %5178 = vst [vmem:[#allocation4_spill] sm:$0xff] %v3317_v26  ;;  %v439_v11 = vadd.f32 %v3007_v3, %v5183_v8  ;;  %v5188_v3 = vld [vmem:[#allocation21_spill] sm:$0xff]  ;;  %v5197_v50 = vld [vmem:[#allocation14_spill] sm:$0xff] }
 0x1ff   :  { %5165 = vst [vmem:[#allocation118_spill] sm:$0xff] %v3266_v7  ;;  %895 = vmatpush.msrb.mxu0 %v3266_v7  ;;  %762 = vmatmul.f32.gmra.mxu3 %v2412_v14  ;;  %v5172_v14 = vld [vmem:[#allocation10_spill] sm:$0xff]  ;;  %v5198_v8 = vld [vmem:[#allocation5_spill] sm:$0xff] }
 0x200   :  { %v454_v20 = vadd.f32 %v3132_v19, %v5172_v14  ;;  %5173 = vst [vmem:[#allocation10_spill] sm:$0xff] %v3302_v37  ;;  %v3348_v6 = vadd.f32 %v3038_v10, %v439_v11  ;;  %v433_v14 = vadd.f32 %v2928_v56, %v5188_v3  ;;  %v5200_v3 = vld [vmem:[#allocation7_spill] sm:$0xff]  ;;  %v5212_v7 = vld [vmem:[#allocation22_spill] sm:$0xff] }
 0x201   :  { %896 = vmatpush.msrb.mxu0 %v3272_v38  ;;  %v3296_v35 = vpop.f32.mrf.mxu3  ;;  %5182 = vst [vmem:[#allocation33_spill] sm:$0xff] %v3331_v44 }
 0x202   :  { %v3308_v13 = vadd.f32 %v3152_v1, %v454_v20  ;;  %v3325_v1 = vadd.f32 %v3108_v60, %v448_v57  ;;  %5184 = vst [vmem:[#allocation29_spill] sm:$0xff] %v3339_v49  ;;  %v5185_v60 = vld [vmem:[#allocation6_spill] sm:$0xff]  ;;  %v5190_v20 = vld [vmem:[#allocation19_spill] sm:$0xff]  ;;  %v3362_v40 = vadd.f32 %v2959_v52, %v433_v14 }
 0x203   :  { %897 = vmatpush.msrb.mxu0 %v3276_v59  ;;  %5187 = vst [vmem:[#allocation26_spill] sm:$0xff] %v3348_v6  ;;  %v430_v30 = vadd.f32 %v2896_v16, %v5190_v20  ;;  %v5194_v16 = vld [vmem:[#allocation2_spill] sm:$0xff] }
 0x204   :  { %v3283_v25 = vpop.f32.mrf.mxu2  ;;  %5175 = vst [vmem:[#allocation41_spill] sm:$0xff] %v3308_v13  ;;  %v5201_v20 = vld [vmem:[#allocation18_spill] sm:$0xff] }
 0x205   :  { %898 = vmatpush.msrb.mxu0 %v3280_v55  ;;  %5180 = vst [vmem:[#allocation37_spill] sm:$0xff] %v3325_v1  ;;  %v3366_v10 = vadd.f32 %v2922_v12, %v430_v30  ;;  %v5214_v55 = vld [vmem:[#allocation24_spill] sm:$0xff] }
 0x206   :  { %v3289_v47 = vpop.f32.mrf.mxu1  ;;  %5189 = vst [vmem:[#allocation6_spill] sm:$0xff] %v3356_v22 }
 0x207   :  { %899 = vmatpush.msrb.mxu0 %v3287_v9  ;;  %765 = vmatmul.f32.gmra.mxu3 %v5176_v33  ;;  %5191 = vst [vmem:[#allocation23_spill] sm:$0xff] %v3362_v40 }
 0x208   :  { %5192 = vst [vmem:[#allocation21_spill] sm:$0xff] %v3366_v10 }
 0x209   :  { %900 = vmatpush.msrb.mxu0 %v3294_v42 }
 0x20a   :  { %v3333_v58 = vpop.f32.mrf.mxu3 }
 0x20b   :  { %901 = vmatpush.msrb.mxu0 %v3302_v37  ;;  %v5216_v37 = vld [vmem:[#allocation27_spill] sm:$0xff] }
 0x20c   :  { %v3311_v43 = vpop.f32.mrf.mxu2 }
 0x20d   :  { %902 = vmatpush.msrb.mxu0 %v3308_v13 }
 0x20e   :  { %v3319_v19 = vpop.f32.mrf.mxu1 }
 0x20f   :  { %903 = vmatpush.msrb.mxu0 %v3317_v26  ;;  %768 = vmatmul.f32.gmra.mxu3 %v5185_v60  ;;  %v5199_v60 = vld [vmem:[#allocation16_spill] sm:$0xff]  ;;  %v5206_v26 = vld [vmem:[#allocation15_spill] sm:$0xff] }
 0x211   :  { %904 = vmatpush.msrb.mxu0 %v3325_v1  ;;  %v3426_v1 = vld [vmem:[%s4888_s0 + $0x150] sm:$0xff] }
 0x212   :  { %v3371_v33 = vpop.f32.mrf.mxu3  ;;  %5207 = vst [vmem:[#allocation2_spill] sm:$0xff] %v3426_v1 }
 0x213   :  { %905 = vmatpush.msrb.mxu0 %v3331_v44 }
 0x214   :  { %v3342_v51 = vpop.f32.mrf.mxu2 }
 0x215   :  { %906 = vmatpush.msrb.mxu0 %v3339_v49  ;;  %v5208_v49 = vld [vmem:[#allocation17_spill] sm:$0xff] }
 0x216   :  { %v3350_v61 = vpop.f32.mrf.mxu1 }
 0x217   :  { %907 = vmatpush.msrb.mxu0 %v3348_v6  ;;  %771 = vmatmul.f32.gmra.mxu3 %v5193_v62 }
 0x219   :  { %908 = vmatpush.msrb.mxu0 %v3356_v22  ;;  %v3433_v22 = vld [vmem:[%s4888_s0 + $0x168] sm:$0xff] }
 0x21a   :  { %v3382_v12 = vpop.f32.mrf.mxu3  ;;  %5209 = vst [vmem:[#allocation11_spill] sm:$0xff] %v3433_v22 }
 0x21b   :  { %909 = vmatpush.msrb.mxu0 %v3362_v40 }
 0x21c   :  { %v3369_v56 = vpop.f32.mrf.mxu2 }
 0x21d   :  { %910 = vmatpush.msrb.mxu0 %v3366_v10  ;;  %v5210_v10 = vld [vmem:[#allocation20_spill] sm:$0xff] }
 0x21e   :  { %v3374_v41 = vpop.f32.mrf.mxu1  ;;  %911 = vmatmul.f32.vlgmr.msrb.gmra.mxu0 %v5194_v16  ;;  %v5202_v16 = vld [vmem:[#allocation9_spill] sm:$0xff] }
 0x21f   :  { %774 = vmatmul.f32.gmra.mxu3 %v5195_v31  ;;  %v3410_v31 = vld [vmem:[%s4888_s0 + $0x120] sm:$0xff] }
 0x220   :  { %5203 = vst [vmem:[#allocation19_spill] sm:$0xff] %v3410_v31 }
 0x222   :  { %v3391_v11 = vpop.f32.mrf.mxu3 }
 0x224   :  { %v3378_v52 = vpop.f32.mrf.mxu2 }
 0x226   :  { %v3380_v57 = vpop.f32.mrf.mxu1  ;;  %914 = vmatmul.f32.gmra.mxu0 %v5196_v53 }
 0x227   :  { %777 = vmatmul.f32.gmra.mxu3 %v5197_v50 }
 0x22a   :  { %v3399_v14 = vpop.f32.mrf.mxu3 }
 0x22c   :  { %v3386_v2 = vpop.f32.mrf.mxu2 }
 0x22e   :  { %v3388_v5 = vpop.f32.mrf.mxu1  ;;  %917 = vmatmul.f32.gmra.mxu0 %v5198_v8 }
 0x22f   :  { %780 = vmatmul.f32.gmra.mxu3 %v5199_v60  ;;  %v5204_v60 = vld [vmem:[#allocation12_spill] sm:$0xff] }
 0x232   :  { %v346_v50 = vpop.f32.mrf.mxu3 }
 0x234   :  { %v3394_v36 = vpop.f32.mrf.mxu2 }
 0x236   :  { %v3396_v29 = vpop.f32.mrf.mxu1  ;;  %920 = vmatmul.f32.gmra.mxu0 %v5200_v3  ;;  %v3419_v3 = vld [vmem:[%s4888_s0 + $0x138] sm:$0xff] }
 0x237   :  { %783 = vmatmul.f32.gmra.mxu3 %v5201_v20  ;;  %5205 = vst [vmem:[#allocation8_spill] sm:$0xff] %v3419_v3 }
 0x23a   :  { %v349_v13 = vpop.f32.mrf.mxu3 }
 0x23c   :  { %v3402_v30 = vpop.f32.mrf.mxu2 }
 0x23e   :  { %v3404_v62 = vpop.f32.mrf.mxu1  ;;  %923 = vmatmul.f32.gmra.mxu0 %v5202_v16 }
 0x23f   :  { %786 = vmatmul.f32.gmra.mxu3 %v3410_v31 }
 0x242   :  { %v352_v6 = vpop.f32.mrf.mxu3 }
 0x244   :  { %v3413_v53 = vpop.f32.mrf.mxu2 }
 0x246   :  { %v504_v8 = vpop.f32.mrf.mxu1  ;;  %926 = vmatmul.f32.gmra.mxu0 %v5204_v60 }
 0x247   :  { %789 = vmatmul.f32.gmra.mxu3 %v3419_v3 }
 0x24a   :  { %v355_v3 = vpop.f32.mrf.mxu3 }
 0x24c   :  { %v665_v20 = vpop.f32.mrf.mxu2 }
 0x24e   :  { %v507_v16 = vpop.f32.mrf.mxu1  ;;  %929 = vmatmul.f32.gmra.mxu0 %v5206_v26 }
 0x24f   :  { %792 = vmatmul.f32.gmra.mxu3 %v3426_v1  ;;  %v3440_v1 = vld [vmem:[%s4888_s0 + $0x180] sm:$0xff] }
 0x250   :  { %5211 = vst [vmem:[#allocation3_spill] sm:$0xff] %v3440_v1 }
 0x252   :  { %v358_v38 = vpop.f32.mrf.mxu3 }
 0x254   :  { %v668_v60 = vpop.f32.mrf.mxu2 }
 0x256   :  { %v510_v44 = vpop.f32.mrf.mxu1  ;;  %932 = vmatmul.f32.gmra.mxu0 %v5208_v49 }
 0x257   :  { %795 = vmatmul.f32.gmra.mxu3 %v3433_v22  ;;  %v3447_v22 = vld [vmem:[%s4888_s0 + $0x198] sm:$0xff] }
 0x258   :  { %5213 = vst [vmem:[#allocation14_spill] sm:$0xff] %v3447_v22 }
 0x25a   :  { %v361_v9 = vpop.f32.mrf.mxu3 }
 0x25c   :  { %v671_v26 = vpop.f32.mrf.mxu2 }
 0x25e   :  { %v513_v40 = vpop.f32.mrf.mxu1  ;;  %935 = vmatmul.f32.gmra.mxu0 %v5210_v10 }
 0x25f   :  { %798 = vmatmul.f32.gmra.mxu3 %v3440_v1  ;;  %v3454_v1 = vld [vmem:[%s4888_s0 + $0x1b0] sm:$0xff] }
 0x260   :  { %5215 = vst [vmem:[#allocation5_spill] sm:$0xff] %v3454_v1 }
 0x264   :  { %v674_v49 = vpop.f32.mrf.mxu2 }
 0x266   :  { %v516_v31 = vpop.f32.mrf.mxu1  ;;  %938 = vmatmul.f32.gmra.mxu0 %v5212_v7 }
 0x267   :  { %801 = vmatmul.f32.gmra.mxu3 %v3447_v22  ;;  %v3461_v22 = vld [vmem:[%s4888_s0 + $0x1c8] sm:$0xff]  ;;  %v517_v32 = vadd.f32 %v516_v31, %v355_v3  ;;  %v3585_v3 = vld [vmem:[%s4888_s0 + $0x40] sm:$0xff] }
 0x26c   :  { %v677_v10 = vpop.f32.mrf.mxu2 }
 0x26e   :  { %v519_v59 = vpop.f32.mrf.mxu1  ;;  %941 = vmatmul.f32.gmra.mxu0 %v5214_v55 }
 0x26f   :  { %804 = vmatmul.f32.gmra.mxu3 %v3454_v1  ;;  %v520_v15 = vadd.f32 %v519_v59, %v358_v38  ;;  %v514_v1 = vadd.f32 %v513_v40, %v352_v6  ;;  %v3470_v38 = vadd.f32 %v677_v10, %v517_v32  ;;  %v508_v59 = vadd.f32 %v507_v16, %v346_v50  ;;  %v5218_v32 = vld [vmem:[#allocation34_spill] sm:$0xff]  ;;  %v5231_v50 = vld [vmem:[#allocation32_spill] sm:$0xff]  ;;  %v3592_v16 = vld [vmem:[%s4888_s0 + $0x58] sm:$0xff] }
 0x270   :  { %v496_v6 = vadd.f32 %v3388_v5, %v3371_v33  ;;  %v5221_v33 = vld [vmem:[#allocation38_spill] sm:$0xff]  ;;  %v490_v5 = vadd.f32 %v3374_v41, %v3296_v35  ;;  %v3535_v35 = vld [vmem:[%s4888_s0 + $0x210] sm:$0xff]  ;;  %v3606_v10 = vld [vmem:[%s4888_s0 + $0x88] sm:$0xff] }
 0x271   :  { %v5226_v41 = vld [vmem:[#allocation40_spill] sm:$0xff]  ;;  %5239 = vst [vmem:[#allocation24_spill] sm:$0xff] %v3606_v10 }
 0x274   :  { %v680_v7 = vpop.f32.mrf.mxu2 }
 0x275   :  { %v3467_v23 = vadd.f32 %v680_v7, %v520_v15  ;;  %v5240_v7 = vld [vmem:[#allocation55_spill] sm:$0xff] }
 0x276   :  { %v522_v42 = vpop.f32.mrf.mxu1  ;;  %944 = vmatmul.f32.gmra.mxu0 %v5216_v37  ;;  %v502_v37 = vadd.f32 %v3404_v62, %v3391_v11  ;;  %v3506_v11 = vld [vmem:[%s4888_s0 + $0x1f8] sm:$0xff] }
 0x277   :  { %v523_v0 = vadd.f32 %v522_v42, %v361_v9  ;;  %807 = vmatmul.f32.gmra.mxu3 %v3461_v22  ;;  %v511_v9 = vadd.f32 %v510_v44, %v349_v13  ;;  %v3473_v42 = vadd.f32 %v674_v49, %v514_v1  ;;  %v3489_v13 = vadd.f32 %v668_v60, %v508_v59  ;;  %v5237_v60 = vld [vmem:[#allocation51_spill] sm:$0xff]  ;;  %v5238_v49 = vld [vmem:[#allocation53_spill] sm:$0xff] }
 0x278   :  { %v499_v1 = vadd.f32 %v3396_v29, %v3382_v12  ;;  %v3500_v40 = vadd.f32 %v3413_v53, %v502_v37  ;;  %v493_v12 = vadd.f32 %v3380_v57, %v3333_v58  ;;  %v5224_v58 = vld [vmem:[#allocation44_spill] sm:$0xff]  ;;  %v3620_v59 = vld [vmem:[%s4888_s0 + $0xb8] sm:$0xff]  ;;  %v3633_v37 = vld [vmem:[%s4888_s0 + $0xe8] sm:$0xff] }
 0x279   :  { %v3483_v15 = vadd.f32 %v671_v26, %v511_v9  ;;  %v487_v57 = vadd.f32 %v3350_v61, %v5224_v58  ;;  %v5228_v61 = vld [vmem:[#allocation42_spill] sm:$0xff]  ;;  %v3599_v26 = vld [vmem:[%s4888_s0 + $0x70] sm:$0xff]  ;;  %v5242_v9 = vld [vmem:[#allocation57_spill] sm:$0xff]  ;;  %5243 = vst [vmem:[#allocation30_spill] sm:$0xff] %v3620_v59 }
 0x27a   :  { %5219 = vst [vmem:[#allocation16_spill] sm:$0xff] %v3500_v40  ;;  %v3512_v29 = vadd.f32 %v3402_v30, %v499_v1  ;;  %v3523_v62 = vadd.f32 %v3386_v2, %v493_v12  ;;  %v3529_v30 = vadd.f32 %v3378_v52, %v490_v5  ;;  %v484_v2 = vadd.f32 %v3319_v19, %v5226_v41  ;;  %v5229_v52 = vld [vmem:[#allocation36_spill] sm:$0xff]  ;;  %v5247_v1 = vld [vmem:[#allocation25_spill] sm:$0xff]  ;;  %v751_v12 = vpop.f32.mrf.mxu3  ;;  %v3641_v5 = vld [vmem:[%s4888_s0 + $0x240] sm:$0xff] }
 0x27b   :  { %v481_v31 = vadd.f32 %v3289_v47, %v5229_v52  ;;  %v3564_v47 = vld [vmem:[%s4888_s0 + $0x228] sm:$0xff]  ;;  %5246 = vst [vmem:[#allocation38_spill] sm:$0xff] %v3633_v37  ;;  %v3651_v52 = vld [vmem:[%s4888_s0 + $0x258] sm:$0xff] }
 0x27c   :  { %v683_v55 = vpop.f32.mrf.mxu2  ;;  %5220 = vst [vmem:[#allocation7_spill] sm:$0xff] %v3512_v29  ;;  %v3548_v53 = vadd.f32 %v3342_v51, %v484_v2  ;;  %v5235_v51 = vld [vmem:[#allocation47_spill] sm:$0xff] }
 0x27d   :  { %v3464_v4 = vadd.f32 %v683_v55, %v523_v0  ;;  %v3479_v0 = vld [vmem:[%s4888_s0 + $0x1e0] sm:$0xff]  ;;  %5223 = vst [vmem:[#allocation9_spill] sm:$0xff] %v3523_v62  ;;  %v3554_v19 = vadd.f32 %v3311_v43, %v481_v31  ;;  %v3578_v43 = vld [vmem:[%s4888_s0 + $0x28] sm:$0xff] }
 0x27e   :  { %947 = vmatmul.f32.gmra.mxu0 %v5217_v63  ;;  %v505_v63 = vadd.f32 %v504_v8, %v3399_v14  ;;  %v3519_v14 = vadd.f32 %v3394_v36, %v496_v6  ;;  %5225 = vst [vmem:[#allocation12_spill] sm:$0xff] %v3529_v30  ;;  %v3541_v36 = vadd.f32 %v3369_v56, %v487_v57  ;;  %v3613_v55 = vld [vmem:[%s4888_s0 + $0xa0] sm:$0xff]  ;;  %v5248_v6 = vld [vmem:[#allocation28_spill] sm:$0xff]  ;;  %v5250_v57 = vld [vmem:[#allocation61_spill] sm:$0xff] }
 0x27f   :  { %1056 = vmatpush.msra.mxu1 %v3464_v4  ;;  %810 = vmatmul.f32.gmra.mxu3 %v3479_v0  ;;  %5230 = vst [vmem:[#allocation17_spill] sm:$0xff] %v3548_v53  ;;  %v478_v8 = vadd.f32 %v3268_v39, %v5231_v50  ;;  %v3571_v39 = vld [vmem:[%s4888_s0 + $0x10] sm:$0xff]  ;;  %v5251_v41 = vld [vmem:[#allocation31_spill] sm:$0xff] }
 0x280   :  { %v3494_v44 = vadd.f32 %v665_v20, %v505_v63  ;;  %5222 = vst [vmem:[#allocation18_spill] sm:$0xff] %v3519_v14  ;;  %v5236_v20 = vld [vmem:[#allocation49_spill] sm:$0xff]  ;;  %v5244_v63 = vld [vmem:[#allocation59_spill] sm:$0xff]  ;;  %v5253_v50 = vld [vmem:[#allocation64_spill] sm:$0xff] }
 0x281   :  { %1057 = vmatpush.msra.mxu1 %v3467_v23  ;;  %5227 = vst [vmem:[#allocation15_spill] sm:$0xff] %v3541_v36  ;;  %v3558_v56 = vadd.f32 %v3283_v25, %v478_v8  ;;  %v5234_v25 = vld [vmem:[#allocation45_spill] sm:$0xff]  ;;  %v5254_v8 = vld [vmem:[#allocation35_spill] sm:$0xff] }
 0x282   :  { %5232 = vst [vmem:[#allocation20_spill] sm:$0xff] %v3554_v19  ;;  %v754_v2 = vpop.f32.mrf.mxu3 }
 0x283   :  { %1058 = vmatpush.msra.mxu1 %v3470_v38  ;;  %5233 = vst [vmem:[#allocation22_spill] sm:$0xff] %v3558_v56 }
 0x284   :  { %5241 = vst [vmem:[#allocation27_spill] sm:$0xff] %v3613_v55 }
 0x285   :  { %1059 = vmatpush.msra.mxu1 %v3473_v42  ;;  %5249 = vst [vmem:[#allocation44_spill] sm:$0xff] %v3641_v5 }
 0x286   :  { %950 = vmatmul.f32.gmra.mxu0 %v5218_v32  ;;  %v3627_v32 = vld [vmem:[%s4888_s0 + $0xd0] sm:$0xff]  ;;  %5252 = vst [vmem:[#allocation40_spill] sm:$0xff] %v3651_v52 }
 0x287   :  { %1060 = vmatpush.msra.mxu1 %v3483_v15  ;;  %813 = vmatmul.f32.gmra.mxu3 %v3506_v11  ;;  %5245 = vst [vmem:[#allocation34_spill] sm:$0xff] %v3627_v32 }
 0x289   :  { %1061 = vmatpush.msra.mxu1 %v3489_v13 }
 0x28b   :  { %1062 = vmatpush.msra.mxu1 %v3494_v44 }
 0x28d   :  { %1063 = vmatpush.msra.mxu1 %v3500_v40  ;;  %v5268_v40 = vld [vmem:[#allocation72_spill] sm:$0xff] }
 0x28e   :  { %953 = vmatmul.f32.gmra.mxu0 %v5221_v33 }
 0x28f   :  { %1064 = vmatpush.msra.mxu1 %v3512_v29  ;;  %816 = vmatmul.f32.gmra.mxu3 %v3535_v35 }
 0x291   :  { %1065 = vmatpush.msra.mxu1 %v3519_v14 }
 0x293   :  { %1066 = vmatpush.msra.mxu1 %v3523_v62  ;;  %v5271_v62 = vld [vmem:[#allocation73_spill] sm:$0xff] }
 0x295   :  { %1067 = vmatpush.msra.mxu1 %v3529_v30 }
 0x296   :  { %956 = vmatmul.f32.gmra.mxu0 %v5228_v61 }
 0x297   :  { %1068 = vmatpush.msra.mxu1 %v3541_v36  ;;  %819 = vmatmul.f32.gmra.mxu3 %v3564_v47 }
 0x299   :  { %1069 = vmatpush.msra.mxu1 %v3548_v53 }
 0x29b   :  { %1070 = vmatpush.msra.mxu1 %v3554_v19  ;;  %v912_v33 = vpop.f32.mrf.mxu0 }
 0x29c   :  { %v3644_v58 = vadd.f32 %v912_v33, %v751_v12  ;;  %v5259_v12 = vld [vmem:[#allocation68_spill] sm:$0xff]  ;;  %v5260_v33 = vld [vmem:[#allocation43_spill] sm:$0xff] }
 0x29d   :  { %1071 = vmatpush.msra.mxu1 %v3558_v56 }
 0x29e   :  { %1072 = vmatmul.f32.vlgmr.msra.gmra.mxu1 %v3571_v39  ;;  %959 = vmatmul.f32.gmra.mxu0 %v5234_v25  ;;  %v757_v25 = vpop.f32.mrf.mxu3 }
 0x29f   :  { %822 = vmatmul.f32.gmra.mxu3 %v3641_v5 }
 0x2a3   :  { %v915_v61 = vpop.f32.mrf.mxu0 }
 0x2a4   :  { %v3654_v31 = vadd.f32 %v915_v61, %v754_v2  ;;  %v3681_v2 = vld [vmem:[%s4888_s0 + $0x2a0] sm:$0xff] }
 0x2a5   :  { %5261 = vst [vmem:[#allocation32_spill] sm:$0xff] %v3681_v2 }
 0x2a6   :  { %1075 = vmatmul.f32.gmra.mxu1 %v3578_v43  ;;  %962 = vmatmul.f32.gmra.mxu0 %v5235_v51 }
 0x2a7   :  { %825 = vmatmul.f32.gmra.mxu3 %v3651_v52 }
 0x2ab   :  { %v918_v51 = vpop.f32.mrf.mxu0 }
 0x2ae   :  { %1078 = vmatmul.f32.gmra.mxu1 %v3585_v3  ;;  %965 = vmatmul.f32.gmra.mxu0 %v5236_v20  ;;  %v3661_v20 = vld [vmem:[%s4888_s0 + $0x270] sm:$0xff] }
 0x2af   :  { %5255 = vst [vmem:[#allocation42_spill] sm:$0xff] %v3661_v20  ;;  %828 = vmatmul.f32.gmra.mxu3 %v3661_v20 }
 0x2b6   :  { %1081 = vmatmul.f32.gmra.mxu1 %v3592_v16  ;;  %968 = vmatmul.f32.gmra.mxu0 %v5237_v60  ;;  %v3664_v60 = vadd.f32 %v918_v51, %v757_v25  ;;  %v5263_v25 = vld [vmem:[#allocation46_spill] sm:$0xff] }
 0x2be   :  { %1084 = vmatmul.f32.gmra.mxu1 %v3599_v26  ;;  %971 = vmatmul.f32.gmra.mxu0 %v5238_v49  ;;  %v5256_v49 = vld [vmem:[#allocation66_spill] sm:$0xff] }
 0x2c6   :  { %1087 = vmatmul.f32.gmra.mxu1 %v3606_v10  ;;  %974 = vmatmul.f32.gmra.mxu0 %v5240_v7  ;;  %v5257_v7 = vld [vmem:[#allocation39_spill] sm:$0xff] }
 0x2ce   :  { %1090 = vmatmul.f32.gmra.mxu1 %v3613_v55  ;;  %977 = vmatmul.f32.gmra.mxu0 %v5242_v9  ;;  %v760_v9 = vpop.f32.mrf.mxu3 }
 0x2d6   :  { %1093 = vmatmul.f32.gmra.mxu1 %v3620_v59  ;;  %980 = vmatmul.f32.gmra.mxu0 %v5244_v63  ;;  %v921_v63 = vpop.f32.mrf.mxu0  ;;  %v5347_v59 = vld [vmem:[#allocation118_spill] sm:$0xff] }
 0x2de   :  { %1096 = vmatmul.f32.gmra.mxu1 %v3627_v32  ;;  %983 = vmatmul.f32.gmra.mxu0 %v5250_v57  ;;  %v763_v57 = vpop.f32.mrf.mxu3 }
 0x2e6   :  { %1099 = vmatmul.f32.gmra.mxu1 %v3633_v37  ;;  %986 = vmatmul.f32.gmra.mxu0 %v5253_v50  ;;  %v5262_v50 = vld [vmem:[#allocation70_spill] sm:$0xff]  ;;  %v766_v51 = vpop.f32.mrf.mxu3 }
 0x2ee   :  { %1102 = vmatmul.f32.gmra.mxu1 %v5247_v1  ;;  %989 = vmatmul.f32.gmra.mxu0 %v5256_v49  ;;  %v3671_v1 = vld [vmem:[%s4888_s0 + $0x288] sm:$0xff] }
 0x2ef   :  { %5258 = vst [vmem:[#allocation36_spill] sm:$0xff] %v3671_v1  ;;  %831 = vmatmul.f32.gmra.mxu3 %v3671_v1  ;;  %v5289_v1 = vld [vmem:[#allocation78_spill] sm:$0xff] }
 0x2f6   :  { %1105 = vmatmul.f32.gmra.mxu1 %v5248_v6  ;;  %v3674_v6 = vadd.f32 %v921_v63, %v760_v9  ;;  %992 = vmatmul.f32.gmra.mxu0 %v5259_v12  ;;  %v5265_v63 = vld [vmem:[#allocation71_spill] sm:$0xff] }
 0x2f7   :  { %834 = vmatmul.f32.gmra.mxu3 %v3681_v2  ;;  %v5281_v2 = vld [vmem:[#allocation62_spill] sm:$0xff] }
 0x2fe   :  { %1108 = vmatmul.f32.gmra.mxu1 %v5251_v41  ;;  %v924_v41 = vpop.f32.mrf.mxu0  ;;  %995 = vmatmul.f32.gmra.mxu0 %v5262_v50  ;;  %v3705_v50 = vld [vmem:[%s4888_s0 + $0x2d0] sm:$0xff] }
 0x2ff   :  { %v3684_v61 = vadd.f32 %v924_v41, %v763_v57  ;;  %v769_v57 = vpop.f32.mrf.mxu3  ;;  %5267 = vst [vmem:[#allocation47_spill] sm:$0xff] %v3705_v50 }
 0x306   :  { %1111 = vmatmul.f32.gmra.mxu1 %v5254_v8  ;;  %v927_v49 = vpop.f32.mrf.mxu0  ;;  %998 = vmatmul.f32.gmra.mxu0 %v5265_v63 }
 0x307   :  { %v3696_v9 = vadd.f32 %v927_v49, %v766_v51  ;;  %v5269_v49 = vld [vmem:[#allocation50_spill] sm:$0xff]  ;;  %v772_v63 = vpop.f32.mrf.mxu3 }
 0x30e   :  { %1114 = vmatmul.f32.gmra.mxu1 %v5257_v7  ;;  %v3693_v7 = vld [vmem:[%s4888_s0 + $0x2b8] sm:$0xff]  ;;  %v930_v41 = vpop.f32.mrf.mxu0  ;;  %1001 = vmatmul.f32.gmra.mxu0 %v5268_v40  ;;  %v5272_v40 = vld [vmem:[#allocation52_spill] sm:$0xff] }
 0x30f   :  { %5264 = vst [vmem:[#allocation45_spill] sm:$0xff] %v3693_v7  ;;  %837 = vmatmul.f32.gmra.mxu3 %v3693_v7 }
 0x316   :  { %1117 = vmatmul.f32.gmra.mxu1 %v5260_v33  ;;  %v5266_v33 = vld [vmem:[#allocation48_spill] sm:$0xff]  ;;  %v933_v29 = vpop.f32.mrf.mxu0  ;;  %1004 = vmatmul.f32.gmra.mxu0 %v5271_v62 }
 0x317   :  { %840 = vmatmul.f32.gmra.mxu3 %v3705_v50  ;;  %v3720_v14 = vadd.f32 %v933_v29, %v772_v63  ;;  %v5274_v63 = vld [vmem:[#allocation54_spill] sm:$0xff] }
 0x31b   :  { %v3687_v8 = vpop.f32.mrf.mxu1 }
 0x31e   :  { %1120 = vmatmul.f32.gmra.mxu1 %v5263_v25  ;;  %v3708_v25 = vadd.f32 %v930_v41, %v769_v57  ;;  %v775_v41 = vpop.f32.mrf.mxu3  ;;  %v936_v30 = vpop.f32.mrf.mxu0  ;;  %1007 = vmatmul.f32.gmra.mxu0 %v2901_v27 }
 0x31f   :  { %v937_v36 = vadd.f32 %v936_v30, %v775_v41  ;;  %v5276_v30 = vld [vmem:[#allocation56_spill] sm:$0xff] }
 0x323   :  { %v3699_v12 = vpop.f32.mrf.mxu1 }
 0x326   :  { %1123 = vmatmul.f32.gmra.mxu1 %v5266_v33  ;;  %v3717_v33 = vld [vmem:[%s4888_s0 + $0x2e8] sm:$0xff]  ;;  %v778_v62 = vpop.f32.mrf.mxu3  ;;  %v939_v53 = vpop.f32.mrf.mxu0  ;;  %1010 = vmatmul.f32.gmra.mxu0 %v2935_v24 }
 0x327   :  { %5270 = vst [vmem:[#allocation49_spill] sm:$0xff] %v3717_v33  ;;  %843 = vmatmul.f32.gmra.mxu3 %v3717_v33  ;;  %v940_v19 = vadd.f32 %v939_v53, %v778_v62  ;;  %v5278_v53 = vld [vmem:[#allocation58_spill] sm:$0xff] }
 0x32b   :  { %v3711_v51 = vpop.f32.mrf.mxu1 }
 0x32e   :  { %1126 = vmatmul.f32.gmra.mxu1 %v5269_v49  ;;  %v3729_v49 = vld [vmem:[%s4888_s0 + $0x300] sm:$0xff]  ;;  %v781_v27 = vpop.f32.mrf.mxu3  ;;  %v942_v41 = vpop.f32.mrf.mxu0  ;;  %1013 = vmatmul.f32.gmra.mxu0 %v2972_v21 }
 0x32f   :  { %5273 = vst [vmem:[#allocation51_spill] sm:$0xff] %v3729_v49  ;;  %846 = vmatmul.f32.gmra.mxu3 %v3729_v49  ;;  %v943_v49 = vadd.f32 %v942_v41, %v781_v27 }
 0x333   :  { %v3723_v57 = vpop.f32.mrf.mxu1 }
 0x336   :  { %1129 = vmatmul.f32.gmra.mxu1 %v5272_v40  ;;  %v3739_v40 = vld [vmem:[%s4888_s0 + $0x318] sm:$0xff]  ;;  %v784_v24 = vpop.f32.mrf.mxu3  ;;  %v945_v62 = vpop.f32.mrf.mxu0  ;;  %1016 = vmatmul.f32.gmra.mxu0 %v3015_v54 }
 0x337   :  { %5275 = vst [vmem:[#allocation53_spill] sm:$0xff] %v3739_v40  ;;  %849 = vmatmul.f32.gmra.mxu3 %v3739_v40  ;;  %v946_v33 = vadd.f32 %v945_v62, %v784_v24 }
 0x33b   :  { %v3733_v29 = vpop.f32.mrf.mxu1 }
 0x33e   :  { %1132 = vmatmul.f32.gmra.mxu1 %v5274_v63  ;;  %v3749_v63 = vld [vmem:[%s4888_s0 + $0x330] sm:$0xff]  ;;  %v787_v27 = vpop.f32.mrf.mxu3  ;;  %v948_v21 = vpop.f32.mrf.mxu0  ;;  %1019 = vmatmul.f32.gmra.mxu0 %v3054_v46 }
 0x33f   :  { %5277 = vst [vmem:[#allocation55_spill] sm:$0xff] %v3749_v63  ;;  %852 = vmatmul.f32.gmra.mxu3 %v3749_v63  ;;  %v5279_v63 = vld [vmem:[#allocation60_spill] sm:$0xff]  ;;  %v949_v41 = vadd.f32 %v948_v21, %v787_v27  ;;  %v5284_v21 = vld [vmem:[#allocation79_spill] sm:$0xff] }
 0x343   :  { %v3743_v56 = vpop.f32.mrf.mxu1 }
 0x346   :  { %1135 = vmatmul.f32.gmra.mxu1 %v5276_v30  ;;  %v1977_v30 = vld [vmem:[%s4888_s0 + $0x348] sm:$0xff]  ;;  %v951_v24 = vpop.f32.mrf.mxu0  ;;  %1022 = vmatmul.f32.gmra.mxu0 %v3076_v34  ;;  %v1979_v34 = vld [vmem:[%s4887_s1 + $0x50] sm:$0xff] }
 0x347   :  { %855 = vmatmul.f32.gmra.mxu3 %v1977_v30  ;;  %v790_v30 = vpop.f32.mrf.mxu3 }
 0x34b   :  { %v3753_v40 = vpop.f32.mrf.mxu1 }
 0x34e   :  { %1138 = vmatmul.f32.gmra.mxu1 %v5278_v53  ;;  %v954_v27 = vpop.f32.mrf.mxu0  ;;  %1025 = vmatmul.f32.gmra.mxu0 %v3098_v28 }
 0x34f   :  { %858 = vmatmul.f32.gmra.mxu3 %v2910_v17 }
 0x353   :  { %v3760_v50 = vpop.f32.mrf.mxu1 }
 0x356   :  { %1141 = vmatmul.f32.gmra.mxu1 %v5279_v63  ;;  %v1978_v63 = vld [vmem:[%s4887_s1 + $0x48] sm:$0xff] }
 0x357   :  { %861 = vmatmul.f32.gmra.mxu3 %v2946_v18  ;;  %v695_v17 = vadd.f32 %v1978_v63, %v2953_v48  ;;  %v696_v48 = vadd.f32 %v1979_v34, %v5284_v21  ;;  %v5291_v21 = vld [vmem:[#allocation69_spill] sm:$0xff] }
 0x35b   :  { %v1097_v53 = vpop.f32.mrf.mxu1 }
 0x35c   :  { %v3765_v7 = vadd.f32 %v1097_v53, %v937_v36  ;;  %v5283_v36 = vld [vmem:[#allocation65_spill] sm:$0xff] }
 0x35e   :  { %5280 = vst [vmem:[#allocation57_spill] sm:$0xff] %v3765_v7  ;;  %1144 = vmatmul.f32.gmra.mxu1 %v5281_v2  ;;  %v793_v2 = vpop.f32.mrf.mxu3 }
 0x35f   :  { %864 = vmatmul.f32.gmra.mxu3 %v2986_v45  ;;  %v5288_v45 = vld [vmem:[#allocation96_spill] sm:$0xff] }
 0x363   :  { %v1100_v54 = vpop.f32.mrf.mxu1 }
 0x364   :  { %v3774_v62 = vadd.f32 %v1100_v54, %v940_v19  ;;  %v5286_v54 = vld [vmem:[#allocation67_spill] sm:$0xff] }
 0x366   :  { %v3777_v46 = vadd.f32 %v3774_v62, %v695_v17  ;;  %1147 = vmatmul.f32.gmra.mxu1 %v5283_v36  ;;  %v796_v63 = vpop.f32.mrf.mxu3  ;;  %v957_v17 = vpop.f32.mrf.mxu0  ;;  %v5287_v36 = vld [vmem:[#allocation86_spill] sm:$0xff]  ;;  %1028 = vmatmul.f32.gmra.mxu0 %v5288_v45 }
 0x367   :  { %867 = vmatmul.f32.gmra.mxu3 %v5287_v36  ;;  %v5293_v36 = vld [vmem:[#allocation99_spill] sm:$0xff] }
 0x368   :  { %5282 = vst [vmem:[#allocation59_spill] sm:$0xff] %v3777_v46  ;;  %v1980_v46 = vld [vmem:[%s4887_s1 + $0x58] sm:$0xff] }
 0x369   :  { %v697_v34 = vadd.f32 %v1980_v46, %v5289_v1  ;;  %v1981_v1 = vld [vmem:[%s4887_s1 + $0x60] sm:$0xff] }
 0x36b   :  { %v1103_v18 = vpop.f32.mrf.mxu1 }
 0x36c   :  { %v3786_v19 = vadd.f32 %v1103_v18, %v943_v49 }
 0x36e   :  { %v3789_v53 = vadd.f32 %v3786_v19, %v696_v48  ;;  %1150 = vmatmul.f32.gmra.mxu1 %v5286_v54  ;;  %v799_v48 = vpop.f32.mrf.mxu3  ;;  %v960_v54 = vpop.f32.mrf.mxu0  ;;  %1031 = vmatmul.f32.gmra.mxu0 %v5293_v36 }
 0x36f   :  { %v3806_v45 = vadd.f32 %v960_v54, %v799_v48  ;;  %v5296_v48 = vld [vmem:[#allocation92_spill] sm:$0xff]  ;;  %v5297_v54 = vld [vmem:[#allocation102_spill] sm:$0xff] }
 0x370   :  { %5285 = vst [vmem:[#allocation25_spill] sm:$0xff] %v3789_v53  ;;  %v5292_v53 = vld [vmem:[#allocation90_spill] sm:$0xff] }
 0x371   :  { %870 = vmatmul.f32.gmra.mxu3 %v5292_v53  ;;  %v952_v53 = vadd.f32 %v951_v24, %v790_v30  ;;  %v1984_v30 = vld [vmem:[%s4888_s0 + $0x2c8] sm:$0xff]  ;;  %v955_v24 = vadd.f32 %v954_v27, %v793_v2  ;;  %v1986_v2 = vld [vmem:[%s4888_s0 + $0x2e0] sm:$0xff]  ;;  %v958_v27 = vadd.f32 %v957_v17, %v796_v63  ;;  %v1988_v63 = vld [vmem:[%s4888_s0 + $0x2f8] sm:$0xff] }
 0x373   :  { %v1106_v28 = vpop.f32.mrf.mxu1 }
 0x374   :  { %v3798_v49 = vadd.f32 %v1106_v28, %v946_v33  ;;  %v5294_v33 = vld [vmem:[#allocation77_spill] sm:$0xff] }
 0x375   :  { %v698_v46 = vadd.f32 %v1981_v1, %v5294_v33 }
 0x376   :  { %v3801_v18 = vadd.f32 %v3798_v49, %v697_v34  ;;  %1153 = vmatmul.f32.gmra.mxu1 %v5291_v21  ;;  %v1982_v21 = vld [vmem:[%s4888_s0 + $0x2b0] sm:$0xff]  ;;  %v963_v36 = vpop.f32.mrf.mxu0  ;;  %1034 = vmatmul.f32.gmra.mxu0 %v5297_v54 }
 0x378   :  { %5290 = vst [vmem:[#allocation28_spill] sm:$0xff] %v3801_v18  ;;  %v802_v18 = vpop.f32.mrf.mxu3 }
 0x379   :  { %873 = vmatmul.f32.gmra.mxu3 %v5296_v48  ;;  %v3819_v52 = vadd.f32 %v963_v36, %v802_v18  ;;  %v5300_v18 = vld [vmem:[#allocation94_spill] sm:$0xff]  ;;  %v5301_v36 = vld [vmem:[#allocation105_spill] sm:$0xff] }
 0x37b   :  { %v1109_v20 = vpop.f32.mrf.mxu1 }
 0x37c   :  { %v1110_v28 = vadd.f32 %v1109_v20, %v949_v41  ;;  %v1983_v20 = vld [vmem:[%s4887_s1 + $0x68] sm:$0xff]  ;;  %v5298_v41 = vld [vmem:[#allocation76_spill] sm:$0xff] }
 0x37d   :  { %v699_v1 = vadd.f32 %v1983_v20, %v5298_v41 }
 0x37e   :  { %v3812_v34 = vadd.f32 %v1110_v28, %v698_v46  ;;  %1156 = vmatmul.f32.gmra.mxu1 %v1982_v21  ;;  %v966_v48 = vpop.f32.mrf.mxu0  ;;  %1037 = vmatmul.f32.gmra.mxu0 %v5301_v36 }
 0x380   :  { %5295 = vst [vmem:[#allocation61_spill] sm:$0xff] %v3812_v34  ;;  %v805_v21 = vpop.f32.mrf.mxu3 }
 0x381   :  { %876 = vmatmul.f32.gmra.mxu3 %v5300_v18  ;;  %v3832_v54 = vadd.f32 %v966_v48, %v805_v21  ;;  %v5304_v21 = vld [vmem:[#allocation97_spill] sm:$0xff]  ;;  %v5305_v48 = vld [vmem:[#allocation108_spill] sm:$0xff] }
 0x383   :  { %v1112_v5 = vpop.f32.mrf.mxu1 }
 0x384   :  { %v1113_v33 = vadd.f32 %v1112_v5, %v952_v53  ;;  %v1985_v5 = vld [vmem:[%s4887_s1 + $0x70] sm:$0xff]  ;;  %v5302_v53 = vld [vmem:[#allocation75_spill] sm:$0xff] }
 0x385   :  { %v700_v20 = vadd.f32 %v1985_v5, %v5302_v53 }
 0x386   :  { %v3825_v46 = vadd.f32 %v1113_v33, %v699_v1  ;;  %1159 = vmatmul.f32.gmra.mxu1 %v1984_v30  ;;  %v969_v18 = vpop.f32.mrf.mxu0  ;;  %1040 = vmatmul.f32.gmra.mxu0 %v5305_v48 }
 0x388   :  { %5299 = vst [vmem:[#allocation31_spill] sm:$0xff] %v3825_v46  ;;  %v808_v30 = vpop.f32.mrf.mxu3 }
 0x389   :  { %879 = vmatmul.f32.gmra.mxu3 %v5304_v21  ;;  %v3845_v36 = vadd.f32 %v969_v18, %v808_v30  ;;  %v5308_v30 = vld [vmem:[#allocation100_spill] sm:$0xff]  ;;  %v5309_v21 = vld [vmem:[#allocation111_spill] sm:$0xff] }
 0x38b   :  { %v1115_v34 = vpop.f32.mrf.mxu1 }
 0x38c   :  { %v1116_v41 = vadd.f32 %v1115_v34, %v955_v24  ;;  %v1987_v34 = vld [vmem:[%s4887_s1 + $0x78] sm:$0xff]  ;;  %v5306_v24 = vld [vmem:[#allocation74_spill] sm:$0xff] }
 0x38d   :  { %v701_v5 = vadd.f32 %v1987_v34, %v5306_v24  ;;  %v5310_v34 = vld [vmem:[#allocation103_spill] sm:$0xff] }
 0x38e   :  { %v3838_v1 = vadd.f32 %v1116_v41, %v700_v20  ;;  %1162 = vmatmul.f32.gmra.mxu1 %v1986_v2  ;;  %v972_v2 = vpop.f32.mrf.mxu0  ;;  %1043 = vmatmul.f32.gmra.mxu0 %v5309_v21 }
 0x390   :  { %5303 = vst [vmem:[#allocation64_spill] sm:$0xff] %v3838_v1  ;;  %v811_v17 = vpop.f32.mrf.mxu3 }
 0x391   :  { %882 = vmatmul.f32.gmra.mxu3 %v5308_v30  ;;  %v3857_v18 = vadd.f32 %v972_v2, %v811_v17  ;;  %v1991_v2 = vld [vmem:[%s4888_s0 + $0x340] sm:$0xff] }
 0x393   :  { %v1118_v46 = vpop.f32.mrf.mxu1 }
 0x394   :  { %v1119_v53 = vadd.f32 %v1118_v46, %v958_v27  ;;  %v1989_v46 = vld [vmem:[%s4888_s0 + $0x310] sm:$0xff] }
 0x396   :  { %v3851_v20 = vadd.f32 %v1119_v53, %v701_v5  ;;  %1165 = vmatmul.f32.gmra.mxu1 %v1988_v63  ;;  %1265 = vmatpush.msra.mxu2 %v1119_v53  ;;  %v975_v27 = vpop.f32.mrf.mxu0  ;;  %v5311_v5 = vld [vmem:[#allocation113_spill] sm:$0xff]  ;;  %v5315_v53 = vld [vmem:[#allocation106_spill] sm:$0xff] }
 0x397   :  { %1046 = vmatmul.f32.gmra.mxu0 %v5311_v5 }
 0x398   :  { %5307 = vst [vmem:[#allocation35_spill] sm:$0xff] %v3851_v20  ;;  %1266 = vmatpush.msra.mxu2 %v1116_v41  ;;  %v814_v41 = vpop.f32.mrf.mxu3 }
 0x399   :  { %885 = vmatmul.f32.gmra.mxu3 %v5310_v34  ;;  %v3868_v24 = vadd.f32 %v975_v27, %v814_v41  ;;  %v1994_v41 = vld [vmem:[%s4888_s0 + $0x18] sm:$0xff] }
 0x39a   :  { %1267 = vmatpush.msra.mxu2 %v1113_v33  ;;  %v3876_v33 = vadd.f32 %v3760_v50, %v3720_v14  ;;  %v5324_v27 = vld [vmem:[#allocation89_spill] sm:$0xff] }
 0x39b   :  { %v3860_v48 = vpop.f32.mrf.mxu1 }
 0x39c   :  { %1268 = vmatpush.msra.mxu2 %v1110_v28  ;;  %5312 = vst [vmem:[#allocation66_spill] sm:$0xff] %v3876_v33 }
 0x39e   :  { %1168 = vmatmul.f32.gmra.mxu1 %v1989_v46  ;;  %1269 = vmatpush.msra.mxu2 %v3798_v49  ;;  %v1990_v49 = vld [vmem:[%s4888_s0 + $0x328] sm:$0xff]  ;;  %v978_v50 = vpop.f32.mrf.mxu0 }
 0x3a0   :  { %1270 = vmatpush.msra.mxu2 %v3786_v19  ;;  %v3881_v19 = vadd.f32 %v3753_v40, %v3708_v25  ;;  %v817_v14 = vpop.f32.mrf.mxu3  ;;  %v5316_v25 = vld [vmem:[#allocation115_spill] sm:$0xff]  ;;  %v3898_v40 = vadd.f32 %v3733_v29, %v3684_v61  ;;  %v3918_v61 = vadd.f32 %v3699_v12, %v3654_v31  ;;  %v5321_v29 = vld [vmem:[#allocation109_spill] sm:$0xff]  ;;  %v1992_v31 = vld [vmem:[%s4888_s0] sm:$0xff] }
 0x3a1   :  { %888 = vmatmul.f32.gmra.mxu3 %v5315_v53  ;;  %v3893_v63 = vadd.f32 %v978_v50, %v817_v14  ;;  %1049 = vmatmul.f32.gmra.mxu0 %v5316_v25  ;;  %v1993_v12 = vld [vmem:[%s4888_s0 + $0x358] sm:$0xff]  ;;  %v1995_v14 = vld [vmem:[%s4888_s0 + $0x30] sm:$0xff]  ;;  %v5325_v50 = vld [vmem:[#allocation91_spill] sm:$0xff] }
 0x3a2   :  { %1271 = vmatpush.msra.mxu2 %v3774_v62  ;;  %5313 = vst [vmem:[#allocation39_spill] sm:$0xff] %v3881_v19  ;;  %v3889_v62 = vadd.f32 %v3743_v56, %v3696_v9  ;;  %v3905_v56 = vadd.f32 %v3723_v57, %v3674_v6  ;;  %v3910_v9 = vadd.f32 %v3711_v51, %v3664_v60  ;;  %v5322_v60 = vld [vmem:[#allocation117_spill] sm:$0xff] }
 0x3a3   :  { %v3872_v28 = vpop.f32.mrf.mxu1  ;;  %5317 = vst [vmem:[#allocation43_spill] sm:$0xff] %v3898_v40  ;;  %v3927_v51 = vadd.f32 %v3687_v8, %v3644_v58 }
 0x3a4   :  { %1272 = vmatpush.msra.mxu2 %v3765_v7  ;;  %5314 = vst [vmem:[#allocation68_spill] sm:$0xff] %v3889_v62 }
 0x3a5   :  { %5318 = vst [vmem:[#allocation70_spill] sm:$0xff] %v3905_v56 }
 0x3a6   :  { %1171 = vmatmul.f32.gmra.mxu1 %v1990_v49  ;;  %1273 = vmatpush.msra.mxu2 %v3876_v33  ;;  %5319 = vst [vmem:[#allocation46_spill] sm:$0xff] %v3910_v9  ;;  %v981_v57 = vpop.f32.mrf.mxu0 }
 0x3a7   :  { %5320 = vst [vmem:[#allocation71_spill] sm:$0xff] %v3918_v61 }
 0x3a8   :  { %1274 = vmatpush.msra.mxu2 %v3881_v19  ;;  %v820_v6 = vpop.f32.mrf.mxu3  ;;  %5323 = vst [vmem:[#allocation48_spill] sm:$0xff] %v3927_v51 }
 0x3a9   :  { %891 = vmatmul.f32.gmra.mxu3 %v5321_v29  ;;  %v3922_v30 = vadd.f32 %v981_v57, %v820_v6  ;;  %1052 = vmatmul.f32.gmra.mxu0 %v5322_v60  ;;  %v1996_v6 = vld [vmem:[%s4888_s0 + $0x48] sm:$0xff]  ;;  %v5326_v57 = vld [vmem:[#allocation93_spill] sm:$0xff] }
 0x3aa   :  { %1275 = vmatpush.msra.mxu2 %v3889_v62 }
 0x3ab   :  { %v3901_v17 = vpop.f32.mrf.mxu1 }
 0x3ac   :  { %1276 = vmatpush.msra.mxu2 %v3898_v40  ;;  %v2000_v40 = vld [vmem:[%s4888_s0 + $0x90] sm:$0xff] }
 0x3ae   :  { %1174 = vmatmul.f32.gmra.mxu1 %v1991_v2  ;;  %1277 = vmatpush.msra.mxu2 %v3905_v56  ;;  %v3941_v58 = vpop.f32.mrf.mxu0 }
 0x3b0   :  { %1278 = vmatpush.msra.mxu2 %v3910_v9  ;;  %v3939_v46 = vpop.f32.mrf.mxu3 }
 0x3b2   :  { %1279 = vmatpush.msra.mxu2 %v3918_v61 }
 0x3b3   :  { %v3930_v21 = vpop.f32.mrf.mxu1 }
 0x3b4   :  { %1280 = vmatpush.msra.mxu2 %v3927_v51 }
 0x3b5   :  { %1281 = vmatmul.f32.vlgmr.msra.gmra.mxu2 %v1992_v31 }
 0x3b6   :  { %1177 = vmatmul.f32.gmra.mxu1 %v1993_v12  ;;  %v987_v5 = vpop.f32.mrf.mxu0  ;;  %v1997_v12 = vld [vmem:[%s4888_s0 + $0x60] sm:$0xff] }
 0x3b8   :  { %v826_v34 = vpop.f32.mrf.mxu3 }
 0x3b9   :  { %v988_v20 = vadd.f32 %v987_v5, %v826_v34  ;;  %v5331_v34 = vld [vmem:[#allocation101_spill] sm:$0xff] }
 0x3bb   :  { %v3943_v8 = vpop.f32.mrf.mxu1 }
 0x3bd   :  { %1284 = vmatmul.f32.gmra.mxu2 %v1994_v41  ;;  %v5327_v41 = vld [vmem:[#allocation95_spill] sm:$0xff] }
 0x3be   :  { %1180 = vmatmul.f32.gmra.mxu1 %v5324_v27  ;;  %v990_v25 = vpop.f32.mrf.mxu0 }
 0x3c0   :  { %v829_v53 = vpop.f32.mrf.mxu3 }
 0x3c1   :  { %v991_v5 = vadd.f32 %v990_v25, %v829_v53  ;;  %v5334_v53 = vld [vmem:[#allocation104_spill] sm:$0xff] }
 0x3c3   :  { %v3949_v49 = vpop.f32.mrf.mxu1 }
 0x3c5   :  { %1287 = vmatmul.f32.gmra.mxu2 %v1995_v14 }
 0x3c6   :  { %1183 = vmatmul.f32.gmra.mxu1 %v5325_v50  ;;  %v993_v60 = vpop.f32.mrf.mxu0 }
 0x3c8   :  { %v832_v29 = vpop.f32.mrf.mxu3 }
 0x3c9   :  { %v994_v25 = vadd.f32 %v993_v60, %v832_v29 }
 0x3cb   :  { %v3955_v2 = vpop.f32.mrf.mxu1 }
 0x3cd   :  { %1290 = vmatmul.f32.gmra.mxu2 %v1996_v6  ;;  %v1998_v6 = vld [vmem:[%s4888_s0 + $0x78] sm:$0xff] }
 0x3ce   :  { %1186 = vmatmul.f32.gmra.mxu1 %v5326_v57  ;;  %v996_v14 = vpop.f32.mrf.mxu0  ;;  %v5328_v57 = vld [vmem:[#allocation98_spill] sm:$0xff] }
 0x3d0   :  { %v835_v27 = vpop.f32.mrf.mxu3 }
 0x3d1   :  { %v997_v29 = vadd.f32 %v996_v14, %v835_v27  ;;  %v5340_v27 = vld [vmem:[#allocation110_spill] sm:$0xff] }
 0x3d3   :  { %v3961_v31 = vpop.f32.mrf.mxu1 }
 0x3d5   :  { %1293 = vmatmul.f32.gmra.mxu2 %v1997_v12  ;;  %v1999_v12 = vld [vmem:[%s4887_s1 + $0xc8] sm:$0xff] }
 0x3d6   :  { %1189 = vmatmul.f32.gmra.mxu1 %v5327_v41  ;;  %v999_v7 = vpop.f32.mrf.mxu0  ;;  %v5329_v41 = vld [vmem:[#allocation10_spill] sm:$0xff] }
 0x3d7   :  { %v711_v19 = vadd.f32 %v1999_v12, %v5329_v41  ;;  %v2001_v12 = vld [vmem:[%s4887_s1 + $0xd0] sm:$0xff] }
 0x3d8   :  { %v838_v1 = vpop.f32.mrf.mxu3 }
 0x3d9   :  { %v1000_v14 = vadd.f32 %v999_v7, %v838_v1  ;;  %v5343_v7 = vld [vmem:[#allocation112_spill] sm:$0xff] }
 0x3db   :  { %v3967_v50 = vpop.f32.mrf.mxu1 }
 0x3dd   :  { %1296 = vmatmul.f32.gmra.mxu2 %v1998_v6 }
 0x3de   :  { %1192 = vmatmul.f32.gmra.mxu1 %v5328_v57  ;;  %v1002_v56 = vpop.f32.mrf.mxu0 }
 0x3e0   :  { %v841_v57 = vpop.f32.mrf.mxu3 }
 0x3e1   :  { %v1003_v1 = vadd.f32 %v1002_v56, %v841_v57  ;;  %v5346_v56 = vld [vmem:[#allocation114_spill] sm:$0xff] }
 0x3e3   :  { %v1148_v33 = vpop.f32.mrf.mxu1 }
 0x3e4   :  { %v3977_v62 = vadd.f32 %v1148_v33, %v988_v20  ;;  %v5332_v20 = vld [vmem:[#allocation13_spill] sm:$0xff] }
 0x3e5   :  { %1299 = vmatmul.f32.gmra.mxu2 %v2000_v40  ;;  %v712_v33 = vadd.f32 %v2001_v12, %v5332_v20  ;;  %v2002_v40 = vld [vmem:[%s4888_s0 + $0xa8] sm:$0xff]  ;;  %v2003_v12 = vld [vmem:[%s4887_s1 + $0xd8] sm:$0xff] }
 0x3e6   :  { %v3983_v6 = vadd.f32 %v3977_v62, %v711_v19  ;;  %1195 = vmatmul.f32.gmra.mxu1 %v5331_v34 }
 0x3e8   :  { %5330 = vst [vmem:[#allocation72_spill] sm:$0xff] %v3983_v6  ;;  %v844_v34 = vpop.f32.mrf.mxu3  ;;  %v1005_v6 = vpop.f32.mrf.mxu0 }
 0x3e9   :  { %v1006_v57 = vadd.f32 %v1005_v6, %v844_v34  ;;  %v5351_v34 = vld [vmem:[#allocation8_spill] sm:$0xff] }
 0x3eb   :  { %v1151_v9 = vpop.f32.mrf.mxu1 }
 0x3ec   :  { %v3990_v41 = vadd.f32 %v1151_v9, %v991_v5  ;;  %v5335_v9 = vld [vmem:[#allocation122_spill] sm:$0xff] }
 0x3ed   :  { %1302 = vmatmul.f32.gmra.mxu2 %v2002_v40  ;;  %v713_v5 = vadd.f32 %v2003_v12, %v5335_v9  ;;  %v2004_v40 = vld [vmem:[%s4888_s0 + $0xc0] sm:$0xff] }
 0x3ee   :  { %v3996_v19 = vadd.f32 %v3990_v41, %v712_v33  ;;  %1198 = vmatmul.f32.gmra.mxu1 %v5334_v53  ;;  %v2005_v12 = vld [vmem:[%s4887_s1 + $0xe0] sm:$0xff] }
 0x3f0   :  { %5333 = vst [vmem:[#allocation50_spill] sm:$0xff] %v3996_v19  ;;  %v5337_v19 = vld [vmem:[#allocation107_spill] sm:$0xff]  ;;  %v4009_v60 = vpop.f32.mrf.mxu3  ;;  %v4011_v53 = vpop.f32.mrf.mxu0 }
 0x3f3   :  { %v1154_v61 = vpop.f32.mrf.mxu1 }
 0x3f4   :  { %v1155_v20 = vadd.f32 %v1154_v61, %v994_v25  ;;  %v5338_v61 = vld [vmem:[#allocation121_spill] sm:$0xff] }
 0x3f5   :  { %1305 = vmatmul.f32.gmra.mxu2 %v2004_v40  ;;  %v714_v25 = vadd.f32 %v2005_v12, %v5338_v61  ;;  %v2007_v12 = vld [vmem:[%s4887_s1 + $0xe8] sm:$0xff] }
 0x3f6   :  { %v4006_v33 = vadd.f32 %v1155_v20, %v713_v5  ;;  %1201 = vmatmul.f32.gmra.mxu1 %v5337_v19  ;;  %v2006_v5 = vld [vmem:[%s4888_s0 + $0xd8] sm:$0xff] }
 0x3f8   :  { %5336 = vst [vmem:[#allocation73_spill] sm:$0xff] %v4006_v33  ;;  %v4023_v19 = vpop.f32.mrf.mxu3  ;;  %v4025_v33 = vpop.f32.mrf.mxu0 }
 0x3fb   :  { %v1157_v51 = vpop.f32.mrf.mxu1 }
 0x3fc   :  { %v1158_v9 = vadd.f32 %v1157_v51, %v997_v29  ;;  %v5341_v51 = vld [vmem:[#allocation120_spill] sm:$0xff] }
 0x3fd   :  { %1308 = vmatmul.f32.gmra.mxu2 %v2006_v5  ;;  %v715_v29 = vadd.f32 %v2007_v12, %v5341_v51  ;;  %v2009_v12 = vld [vmem:[%s4887_s1 + $0xf0] sm:$0xff] }
 0x3fe   :  { %v4020_v40 = vadd.f32 %v1158_v9, %v714_v25  ;;  %1204 = vmatmul.f32.gmra.mxu1 %v5340_v27  ;;  %v2008_v25 = vld [vmem:[%s4888_s0 + $0xf0] sm:$0xff] }
 0x400   :  { %5339 = vst [vmem:[#allocation52_spill] sm:$0xff] %v4020_v40  ;;  %v4037_v27 = vpop.f32.mrf.mxu3  ;;  %v4039_v32 = vpop.f32.mrf.mxu0 }
 0x403   :  { %v1160_v37 = vpop.f32.mrf.mxu1 }
 0x404   :  { %v1161_v61 = vadd.f32 %v1160_v37, %v1000_v14  ;;  %v5344_v37 = vld [vmem:[#allocation119_spill] sm:$0xff] }
 0x405   :  { %1311 = vmatmul.f32.gmra.mxu2 %v2008_v25  ;;  %v716_v14 = vadd.f32 %v2009_v12, %v5344_v37 }
 0x406   :  { %v4034_v5 = vadd.f32 %v1161_v61, %v715_v29  ;;  %1207 = vmatmul.f32.gmra.mxu1 %v5343_v7  ;;  %v2010_v29 = vld [vmem:[%s4888_s0 + $0x108] sm:$0xff] }
 0x408   :  { %5342 = vst [vmem:[#allocation54_spill] sm:$0xff] %v4034_v5  ;;  %v2011_v5 = vld [vmem:[%s4887_s1 + $0xf8] sm:$0xff]  ;;  %v4055_v12 = vpop.f32.mrf.mxu3 }
 0x409   :  { %v717_v55 = vadd.f32 %v2011_v5, %v5347_v59  ;;  %v985_v59 = vadd.f32 %v3941_v58, %v3939_v46  ;;  %v5352_v46 = vld [vmem:[#allocation2_spill] sm:$0xff]  ;;  %v4087_v58 = vadd.f32 %v3955_v2, %v3893_v63  ;;  %v4108_v2 = vadd.f32 %v3930_v21, %v3845_v36 }
 0x40a   :  { %v4124_v36 = vadd.f32 %v3860_v48, %v3806_v45 }
 0x40b   :  { %v1163_v40 = vpop.f32.mrf.mxu1 }
 0x40c   :  { %v1164_v51 = vadd.f32 %v1163_v40, %v1003_v1  ;;  %v4057_v40 = vpop.f32.mrf.mxu0  ;;  %v5348_v1 = vld [vmem:[#allocation19_spill] sm:$0xff] }
 0x40d   :  { %1314 = vmatmul.f32.gmra.mxu2 %v2010_v29 }
 0x40e   :  { %v4048_v25 = vadd.f32 %v1164_v51, %v716_v14  ;;  %1210 = vmatmul.f32.gmra.mxu1 %v5346_v56  ;;  %v5350_v14 = vld [vmem:[#allocation116_spill] sm:$0xff]  ;;  %v5356_v56 = vld [vmem:[#allocation5_spill] sm:$0xff] }
 0x410   :  { %5345 = vst [vmem:[#allocation56_spill] sm:$0xff] %v4048_v25  ;;  %v4068_v5 = vpop.f32.mrf.mxu3  ;;  %v2019_v25 = vld [vmem:[%s4888_s0 + $0x98] sm:$0xff] }
 0x413   :  { %v1166_v7 = vpop.f32.mrf.mxu1 }
 0x414   :  { %v1167_v10 = vadd.f32 %v1166_v7, %v1006_v57  ;;  %v4070_v29 = vpop.f32.mrf.mxu0 }
 0x415   :  { %1317 = vmatmul.f32.gmra.mxu2 %v5348_v1 }
 0x416   :  { %v4060_v37 = vadd.f32 %v1167_v10, %v717_v55  ;;  %1213 = vmatmul.f32.gmra.mxu1 %v5350_v14  ;;  %1426 = vmatpush.msra.mxu3 %v1167_v10  ;;  %v4074_v55 = vadd.f32 %v3967_v50, %v985_v59  ;;  %v4092_v50 = vadd.f32 %v3949_v49, %v3868_v24  ;;  %v5353_v24 = vld [vmem:[#allocation11_spill] sm:$0xff]  ;;  %v2015_v14 = vld [vmem:[%s4888_s0 + $0x50] sm:$0xff] }
 0x417   :  { %v4114_v49 = vadd.f32 %v3901_v17, %v3832_v54 }
 0x418   :  { %5349 = vst [vmem:[#allocation58_spill] sm:$0xff] %v4060_v37  ;;  %1427 = vmatpush.msra.mxu3 %v1164_v51  ;;  %v2014_v51 = vld [vmem:[%s4888_s0 + $0x38] sm:$0xff] }
 0x41a   :  { %1428 = vmatpush.msra.mxu3 %v1161_v61 }
 0x41b   :  { %v4063_v6 = vpop.f32.mrf.mxu1 }
 0x41c   :  { %1429 = vmatpush.msra.mxu3 %v1158_v9  ;;  %v4081_v9 = vadd.f32 %v3961_v31, %v3922_v30  ;;  %v4097_v30 = vpop.f32.mrf.mxu0  ;;  %v4101_v31 = vadd.f32 %v3943_v8, %v3857_v18  ;;  %v4119_v18 = vadd.f32 %v3872_v28, %v3819_v52  ;;  %v2012_v52 = vld [vmem:[%s4888_s0 + $0x8] sm:$0xff] }
 0x41d   :  { %1320 = vmatmul.f32.gmra.mxu2 %v5351_v34  ;;  %v5354_v28 = vld [vmem:[#allocation3_spill] sm:$0xff] }
 0x41e   :  { %1430 = vmatpush.msra.mxu3 %v1155_v20  ;;  %v5355_v20 = vld [vmem:[#allocation14_spill] sm:$0xff] }
 0x420   :  { %1431 = vmatpush.msra.mxu3 %v3990_v41  ;;  %v2013_v41 = vld [vmem:[%s4888_s0 + $0x20] sm:$0xff] }
 0x422   :  { %1432 = vmatpush.msra.mxu3 %v3977_v62  ;;  %v4095_v62 = vpop.f32.mrf.mxu3 }
 0x423   :  { %v4077_v10 = vpop.f32.mrf.mxu1 }
 0x424   :  { %1433 = vmatpush.msra.mxu3 %v4074_v55  ;;  %v4131_v54 = vpop.f32.mrf.mxu0 }
 0x425   :  { %1323 = vmatmul.f32.gmra.mxu2 %v5352_v46 }
 0x426   :  { %1434 = vmatpush.msra.mxu3 %v4081_v9 }
 0x428   :  { %1435 = vmatpush.msra.mxu3 %v4087_v58 }
 0x42a   :  { %1436 = vmatpush.msra.mxu3 %v4092_v50  ;;  %v4127_v21 = vpop.f32.mrf.mxu3 }
 0x42b   :  { %v4104_v63 = vpop.f32.mrf.mxu1 }
 0x42c   :  { %1437 = vmatpush.msra.mxu3 %v4101_v31  ;;  %v4142_v48 = vpop.f32.mrf.mxu0 }
 0x42d   :  { %1326 = vmatmul.f32.gmra.mxu2 %v5353_v24  ;;  %v2016_v24 = vld [vmem:[%s4888_s0 + $0x68] sm:$0xff] }
 0x42e   :  { %1438 = vmatpush.msra.mxu3 %v4108_v2 }
 0x430   :  { %1439 = vmatpush.msra.mxu3 %v4114_v49 }
 0x432   :  { %1440 = vmatpush.msra.mxu3 %v4119_v18  ;;  %v4140_v45 = vpop.f32.mrf.mxu3 }
 0x433   :  { %v4129_v8 = vpop.f32.mrf.mxu1 }
 0x434   :  { %1441 = vmatpush.msra.mxu3 %v4124_v36  ;;  %v4156_v7 = vpop.f32.mrf.mxu0 }
 0x435   :  { %1442 = vmatmul.f32.vlgmr.msra.gmra.mxu3 %v2012_v52  ;;  %1329 = vmatmul.f32.gmra.mxu2 %v5354_v28 }
 0x43a   :  { %v4154_v57 = vpop.f32.mrf.mxu3 }
 0x43b   :  { %v4138_v17 = vpop.f32.mrf.mxu1 }
 0x43c   :  { %v1035_v59 = vpop.f32.mrf.mxu0 }
 0x43d   :  { %1445 = vmatmul.f32.gmra.mxu3 %v2013_v41  ;;  %1332 = vmatmul.f32.gmra.mxu2 %v5355_v20  ;;  %v2017_v20 = vld [vmem:[%s4888_s0 + $0x80] sm:$0xff] }
 0x442   :  { %v874_v34 = vpop.f32.mrf.mxu3 }
 0x443   :  { %v4148_v61 = vpop.f32.mrf.mxu1 }
 0x444   :  { %v1038_v41 = vpop.f32.mrf.mxu0 }
 0x445   :  { %1448 = vmatmul.f32.gmra.mxu3 %v2014_v51  ;;  %1335 = vmatmul.f32.gmra.mxu2 %v5356_v56  ;;  %v2018_v56 = vld [vmem:[%s4887_s1 + $0x148] sm:$0xff] }
 0x44a   :  { %v877_v52 = vpop.f32.mrf.mxu3 }
 0x44b   :  { %v4158_v1 = vpop.f32.mrf.mxu1 }
 0x44c   :  { %v1041_v37 = vpop.f32.mrf.mxu0 }
 0x44d   :  { %1451 = vmatmul.f32.gmra.mxu3 %v2015_v14  ;;  %1338 = vmatmul.f32.gmra.mxu2 %v3461_v22  ;;  %v1036_v22 = vadd.f32 %v1035_v59, %v874_v34  ;;  %v727_v14 = vadd.f32 %v2018_v56, %v3494_v44  ;;  %v1039_v34 = vadd.f32 %v1038_v41, %v877_v52  ;;  %v2020_v44 = vld [vmem:[%s4887_s1 + $0x150] sm:$0xff] }
 0x453   :  { %v4164_v46 = vpop.f32.mrf.mxu1 }
 0x454   :  { %v1044_v56 = vpop.f32.mrf.mxu0 }
 0x455   :  { %1454 = vmatmul.f32.gmra.mxu3 %v2016_v24  ;;  %1341 = vmatmul.f32.gmra.mxu2 %v3479_v0  ;;  %v880_v24 = vpop.f32.mrf.mxu3 }
 0x456   :  { %v1042_v52 = vadd.f32 %v1041_v37, %v880_v24  ;;  %v2024_v37 = vld [vmem:[%s4887_s1 + $0x160] sm:$0xff] }
 0x457   :  { %v730_v24 = vadd.f32 %v2024_v37, %v3473_v42  ;;  %v2027_v42 = vld [vmem:[%s4888_s0 + $0xf8] sm:$0xff] }
 0x45b   :  { %v4170_v28 = vpop.f32.mrf.mxu1 }
 0x45d   :  { %1457 = vmatmul.f32.gmra.mxu3 %v2017_v20  ;;  %1344 = vmatmul.f32.gmra.mxu2 %v3506_v11  ;;  %v728_v20 = vadd.f32 %v2020_v44, %v3489_v13 }
 0x463   :  { %v1196_v51 = vpop.f32.mrf.mxu1 }
 0x464   :  { %v4180_v0 = vadd.f32 %v1196_v51, %v1036_v22  ;;  %v2021_v51 = vld [vmem:[%s4888_s0 + $0xb0] sm:$0xff] }
 0x465   :  { %1460 = vmatmul.f32.gmra.mxu3 %v2019_v25  ;;  %1347 = vmatmul.f32.gmra.mxu2 %v3535_v35  ;;  %v883_v25 = vpop.f32.mrf.mxu3 }
 0x466   :  { %v4187_v11 = vadd.f32 %v4180_v0, %v727_v14  ;;  %v2022_v14 = vld [vmem:[%s4887_s1 + $0x158] sm:$0xff] }
 0x467   :  { %v729_v13 = vadd.f32 %v2022_v14, %v3483_v15  ;;  %v2025_v15 = vld [vmem:[%s4888_s0 + $0xe0] sm:$0xff] }
 0x468   :  { %5357 = vst [vmem:[#allocation60_spill] sm:$0xff] %v4187_v11 }
 0x46b   :  { %v1199_v59 = vpop.f32.mrf.mxu1 }
 0x46c   :  { %v1200_v22 = vadd.f32 %v1199_v59, %v1039_v34  ;;  %v2023_v59 = vld [vmem:[%s4888_s0 + $0xc8] sm:$0xff] }
 0x46d   :  { %1463 = vmatmul.f32.gmra.mxu3 %v2021_v51  ;;  %1350 = vmatmul.f32.gmra.mxu2 %v3564_v47  ;;  %v1045_v47 = vadd.f32 %v1044_v56, %v883_v25  ;;  %v1047_v51 = vpop.f32.mrf.mxu0 }
 0x46e   :  { %v4197_v35 = vadd.f32 %v1200_v22, %v728_v20  ;;  %v886_v20 = vpop.f32.mrf.mxu3 }
 0x470   :  { %5358 = vst [vmem:[#allocation62_spill] sm:$0xff] %v4197_v35 }
 0x473   :  { %v1202_v41 = vpop.f32.mrf.mxu1 }
 0x474   :  { %v1203_v34 = vadd.f32 %v1202_v41, %v1042_v52  ;;  %v1048_v41 = vadd.f32 %v1047_v51, %v886_v20  ;;  %v2028_v20 = vld [vmem:[%s4887_s1 + $0x170] sm:$0xff] }
 0x475   :  { %1466 = vmatmul.f32.gmra.mxu3 %v2023_v59  ;;  %v1050_v56 = vpop.f32.mrf.mxu0  ;;  %v732_v51 = vadd.f32 %v2028_v20, %v3467_v23  ;;  %v2031_v23 = vld [vmem:[%s4888_s0 + $0x128] sm:$0xff] }
 0x476   :  { %v4206_v44 = vadd.f32 %v1203_v34, %v729_v13  ;;  %v889_v14 = vpop.f32.mrf.mxu3  ;;  %v2026_v13 = vld [vmem:[%s4887_s1 + $0x168] sm:$0xff] }
 0x477   :  { %v731_v59 = vadd.f32 %v2026_v13, %v3470_v38  ;;  %v2029_v38 = vld [vmem:[%s4888_s0 + $0x110] sm:$0xff] }
 0x478   :  { %5359 = vst [vmem:[#allocation65_spill] sm:$0xff] %v4206_v44 }
 0x47b   :  { %v1205_v35 = vpop.f32.mrf.mxu1 }
 0x47c   :  { %v1206_v11 = vadd.f32 %v1205_v35, %v1045_v47  ;;  %v1051_v47 = vadd.f32 %v1050_v56, %v889_v14  ;;  %v2030_v14 = vld [vmem:[%s4887_s1 + $0x178] sm:$0xff] }
 0x47d   :  { %1469 = vmatmul.f32.gmra.mxu3 %v2025_v15  ;;  %v733_v56 = vadd.f32 %v2030_v14, %v3464_v4  ;;  %v1033_v4 = vadd.f32 %v4156_v7, %v4154_v57  ;;  %v2044_v7 = vld [vmem:[%s4888_s0 + $0x118] sm:$0xff]  ;;  %v5368_v14 = vld [vmem:[#allocation42_spill] sm:$0xff] }
 0x47e   :  { %v4215_v52 = vadd.f32 %v1206_v11, %v730_v24  ;;  %v892_v15 = vpop.f32.mrf.mxu3 }
 0x47f   :  { %v4254_v20 = vadd.f32 %v4170_v28, %v1033_v4  ;;  %v5369_v4 = vld [vmem:[#allocation36_spill] sm:$0xff] }
 0x480   :  { %5360 = vst [vmem:[#allocation79_spill] sm:$0xff] %v4215_v52  ;;  %v1053_v52 = vpop.f32.mrf.mxu0 }
 0x483   :  { %v1208_v25 = vpop.f32.mrf.mxu1 }
 0x484   :  { %v1209_v44 = vadd.f32 %v1208_v25, %v1048_v41  ;;  %v1054_v25 = vadd.f32 %v1053_v52, %v892_v15  ;;  %v2032_v52 = vld [vmem:[%s4888_s0 + $0x140] sm:$0xff] }
 0x485   :  { %1472 = vmatmul.f32.gmra.mxu3 %v2027_v42  ;;  %v2047_v15 = vld [vmem:[%s4888_s0 + $0x260] sm:$0xff] }
 0x486   :  { %v4224_v35 = vadd.f32 %v1209_v44, %v731_v59 }
 0x48b   :  { %v1211_v37 = vpop.f32.mrf.mxu1 }
 0x48c   :  { %v1212_v24 = vadd.f32 %v1211_v37, %v1051_v47  ;;  %v1030_v47 = vadd.f32 %v4142_v48, %v4140_v45  ;;  %v1027_v37 = vadd.f32 %v4131_v54, %v4127_v21  ;;  %v2033_v45 = vld [vmem:[%s4888_s0 + $0x158] sm:$0xff]  ;;  %v1021_v21 = vadd.f32 %v4070_v29, %v4068_v5 }
 0x48d   :  { %1475 = vmatmul.f32.gmra.mxu3 %v2029_v38  ;;  %v1015_v48 = vadd.f32 %v4039_v32, %v4037_v27  ;;  %v1012_v5 = vadd.f32 %v4025_v33, %v4023_v19  ;;  %v1009_v32 = vadd.f32 %v4011_v53, %v4009_v60  ;;  %v2035_v60 = vld [vmem:[%s4888_s0 + $0x188] sm:$0xff]  ;;  %v2036_v53 = vld [vmem:[%s4888_s0 + $0x1a0] sm:$0xff] }
 0x48e   :  { %v4233_v41 = vadd.f32 %v1212_v24, %v732_v51  ;;  %v4269_v54 = vadd.f32 %v4158_v1, %v1027_v37  ;;  %v4281_v57 = vadd.f32 %v4138_v17, %v1021_v21  ;;  %v5365_v17 = vld [vmem:[#allocation38_spill] sm:$0xff]  ;;  %v1282_v1 = vpop.f32.mrf.mxu2  ;;  %v2048_v38 = vld [vmem:[%s4888_s0 + $0x148] sm:$0xff]  ;;  %v2052_v37 = vld [vmem:[%s4888_s0 + $0x178] sm:$0xff] }
 0x48f   :  { %v4296_v27 = vadd.f32 %v4104_v63, %v1015_v48  ;;  %v4300_v33 = vadd.f32 %v4077_v10, %v1012_v5  ;;  %v4304_v19 = vadd.f32 %v4063_v6, %v1009_v32  ;;  %v2040_v6 = vld [vmem:[%s4888_s0 + $0x200] sm:$0xff]  ;;  %v2041_v10 = vld [vmem:[%s4888_s0 + $0x218] sm:$0xff]  ;;  %v2042_v63 = vld [vmem:[%s4888_s0 + $0x230] sm:$0xff] }
 0x490   :  { %v5370_v21 = vld [vmem:[#allocation88_spill] sm:$0xff]  ;;  %v2054_v32 = vld [vmem:[%s4888_s0 + $0x2a8] sm:$0xff] }
 0x493   :  { %v1214_v13 = vpop.f32.mrf.mxu1 }
 0x494   :  { %v1215_v59 = vadd.f32 %v1214_v13, %v1054_v25 }
 0x495   :  { %1478 = vmatmul.f32.gmra.mxu3 %v2031_v23 }
 0x496   :  { %v4242_v42 = vadd.f32 %v1215_v59, %v733_v56  ;;  %1587 = vmatpush.msra.mxu0 %v1215_v59  ;;  %v2049_v56 = vld [vmem:[%s4888_s0 + $0x278] sm:$0xff]  ;;  %v2050_v59 = vld [vmem:[%s4888_s0 + $0x160] sm:$0xff] }
 0x498   :  { %1588 = vmatpush.msra.mxu0 %v1212_v24  ;;  %v5367_v24 = vld [vmem:[#allocation40_spill] sm:$0xff] }
 0x49a   :  { %1589 = vmatpush.msra.mxu0 %v1209_v44  ;;  %v4260_v44 = vadd.f32 %v4164_v46, %v1030_v47  ;;  %v5366_v46 = vld [vmem:[#allocation44_spill] sm:$0xff] }
 0x49b   :  { %1353 = vmatmul.f32.gmra.mxu2 %v5366_v46  ;;  %v2051_v47 = vld [vmem:[%s4888_s0 + $0x290] sm:$0xff]  ;;  %v5375_v46 = vld [vmem:[#allocation71_spill] sm:$0xff] }
 0x49c   :  { %1590 = vmatpush.msra.mxu0 %v1206_v11  ;;  %v1024_v11 = vadd.f32 %v4097_v30, %v4095_v62  ;;  %v1018_v62 = vadd.f32 %v4057_v40, %v4055_v12  ;;  %v2034_v12 = vld [vmem:[%s4888_s0 + $0x170] sm:$0xff]  ;;  %v2037_v40 = vld [vmem:[%s4888_s0 + $0x1b8] sm:$0xff] }
 0x49d   :  { %1481 = vmatmul.f32.gmra.mxu3 %v2032_v52 }
 0x49e   :  { %1591 = vmatpush.msra.mxu0 %v1203_v34  ;;  %v4275_v30 = vadd.f32 %v4148_v61, %v1024_v11  ;;  %v4287_v29 = vadd.f32 %v4129_v8, %v1018_v62  ;;  %v5364_v8 = vld [vmem:[#allocation34_spill] sm:$0xff]  ;;  %v1285_v34 = vpop.f32.mrf.mxu2 }
 0x49f   :  { %v2043_v61 = vld [vmem:[%s4888_s0 + $0x100] sm:$0xff] }
 0x4a0   :  { %1592 = vmatpush.msra.mxu0 %v1200_v22  ;;  %v2046_v22 = vld [vmem:[%s4888_s0 + $0x130] sm:$0xff] }
 0x4a2   :  { %1593 = vmatpush.msra.mxu0 %v4180_v0  ;;  %v2045_v0 = vld [vmem:[%s4888_s0 + $0x248] sm:$0xff] }
 0x4a3   :  { %1356 = vmatmul.f32.gmra.mxu2 %v5367_v24 }
 0x4a4   :  { %1594 = vmatpush.msra.mxu0 %v4254_v20 }
 0x4a5   :  { %1484 = vmatmul.f32.gmra.mxu3 %v2033_v45  ;;  %v2053_v45 = vld [vmem:[%s4887_s1] sm:$0xff] }
 0x4a6   :  { %1595 = vmatpush.msra.mxu0 %v4260_v44  ;;  %v1288_v25 = vpop.f32.mrf.mxu2  ;;  %v686_v62 = vadd.f32 %v2053_v45, %v5370_v21  ;;  %v2061_v21 = vld [vmem:[%s4888_s0 + $0x1c0] sm:$0xff] }
 0x4a8   :  { %1596 = vmatpush.msra.mxu0 %v4269_v54 }
 0x4aa   :  { %1597 = vmatpush.msra.mxu0 %v4275_v30 }
 0x4ab   :  { %1359 = vmatmul.f32.gmra.mxu2 %v5368_v14 }
 0x4ac   :  { %1598 = vmatpush.msra.mxu0 %v4281_v57 }
 0x4ad   :  { %1487 = vmatmul.f32.gmra.mxu3 %v2034_v12  ;;  %v5371_v12 = vld [vmem:[#allocation32_spill] sm:$0xff] }
 0x4ae   :  { %1599 = vmatpush.msra.mxu0 %v4287_v29  ;;  %v1291_v23 = vpop.f32.mrf.mxu2 }
 0x4b0   :  { %1600 = vmatpush.msra.mxu0 %v4296_v27 }
 0x4b2   :  { %1601 = vmatpush.msra.mxu0 %v4300_v33 }
 0x4b3   :  { %1362 = vmatmul.f32.gmra.mxu2 %v5369_v4  ;;  %v5377_v4 = vld [vmem:[#allocation47_spill] sm:$0xff] }
 0x4b4   :  { %1602 = vmatpush.msra.mxu0 %v4304_v19 }
 0x4b5   :  { %1603 = vmatmul.f32.vlgmr.msra.gmra.mxu0 %v3571_v39  ;;  %1490 = vmatmul.f32.gmra.mxu3 %v2035_v60  ;;  %v2038_v39 = vld [vmem:[%s4888_s0 + $0x1d0] sm:$0xff] }
 0x4b6   :  { %v1294_v48 = vpop.f32.mrf.mxu2 }
 0x4b8   :  { %v1443_v28 = vpop.f32.mrf.mxu3 }
 0x4b9   :  { %v1444_v11 = vadd.f32 %v1443_v28, %v1282_v1 }
 0x4bb   :  { %1365 = vmatmul.f32.gmra.mxu2 %v5371_v12 }
 0x4bd   :  { %1606 = vmatmul.f32.gmra.mxu0 %v3578_v43  ;;  %1493 = vmatmul.f32.gmra.mxu3 %v2036_v53  ;;  %v2039_v43 = vld [vmem:[%s4888_s0 + $0x1e8] sm:$0xff]  ;;  %v5372_v53 = vld [vmem:[#allocation48_spill] sm:$0xff] }
 0x4c0   :  { %v1446_v51 = vpop.f32.mrf.mxu3 }
 0x4c5   :  { %1609 = vmatmul.f32.gmra.mxu0 %v3585_v3  ;;  %1496 = vmatmul.f32.gmra.mxu3 %v2037_v40  ;;  %v5361_v3 = vld [vmem:[#allocation24_spill] sm:$0xff]  ;;  %v1217_v40 = vadd.f32 %v5372_v53, %v686_v62 }
 0x4c8   :  { %v1449_v13 = vpop.f32.mrf.mxu3 }
 0x4c9   :  { %v1450_v24 = vadd.f32 %v1449_v13, %v1288_v25  ;;  %v5378_v13 = vld [vmem:[#allocation46_spill] sm:$0xff] }
 0x4cd   :  { %1612 = vmatmul.f32.gmra.mxu0 %v3592_v16  ;;  %1499 = vmatmul.f32.gmra.mxu3 %v2038_v39  ;;  %v5362_v16 = vld [vmem:[#allocation27_spill] sm:$0xff] }
 0x4d0   :  { %v1452_v52 = vpop.f32.mrf.mxu3 }
 0x4d1   :  { %v1453_v12 = vadd.f32 %v1452_v52, %v1291_v23  ;;  %v5381_v52 = vld [vmem:[#allocation70_spill] sm:$0xff] }
 0x4d5   :  { %1615 = vmatmul.f32.gmra.mxu0 %v3599_v26  ;;  %1502 = vmatmul.f32.gmra.mxu3 %v2039_v43  ;;  %v5363_v26 = vld [vmem:[#allocation30_spill] sm:$0xff] }
 0x4d8   :  { %v1455_v5 = vpop.f32.mrf.mxu3 }
 0x4dd   :  { %1618 = vmatmul.f32.gmra.mxu0 %v5361_v3  ;;  %1505 = vmatmul.f32.gmra.mxu3 %v2040_v6  ;;  %v2055_v3 = vld [vmem:[%s4888_s0 + $0x190] sm:$0xff] }
 0x4e5   :  { %1621 = vmatmul.f32.gmra.mxu0 %v5362_v16  ;;  %1508 = vmatmul.f32.gmra.mxu3 %v2041_v10  ;;  %v1447_v16 = vadd.f32 %v1446_v51, %v1285_v34  ;;  %v2056_v10 = vld [vmem:[%s4887_s1 + $0x8] sm:$0xff] }
 0x4e6   :  { %v2058_v34 = vld [vmem:[%s4888_s0 + $0x1a8] sm:$0xff] }
 0x4ed   :  { %1624 = vmatmul.f32.gmra.mxu0 %v5363_v26  ;;  %1511 = vmatmul.f32.gmra.mxu3 %v2042_v63  ;;  %v5373_v26 = vld [vmem:[#allocation87_spill] sm:$0xff] }
 0x4ee   :  { %v687_v63 = vadd.f32 %v2056_v10, %v5373_v26  ;;  %v2064_v26 = vld [vmem:[%s4888_s0 + $0x1d8] sm:$0xff] }
 0x4f0   :  { %v1218_v28 = vadd.f32 %v5375_v46, %v687_v63 }
 0x4f5   :  { %1627 = vmatmul.f32.gmra.mxu0 %v5364_v8  ;;  %1514 = vmatmul.f32.gmra.mxu3 %v2045_v0  ;;  %v1297_v8 = vpop.f32.mrf.mxu2 }
 0x4fd   :  { %1630 = vmatmul.f32.gmra.mxu0 %v5365_v17  ;;  %1517 = vmatmul.f32.gmra.mxu3 %v2047_v15  ;;  %v1458_v17 = vpop.f32.mrf.mxu3  ;;  %v2059_v15 = vld [vmem:[%s4887_s1 + $0x10] sm:$0xff] }
 0x505   :  { %1633 = vmatmul.f32.gmra.mxu0 %v2043_v61  ;;  %1520 = vmatmul.f32.gmra.mxu3 %v2049_v56  ;;  %v5374_v61 = vld [vmem:[#allocation45_spill] sm:$0xff]  ;;  %v1300_v56 = vpop.f32.mrf.mxu2 }
 0x506   :  { %1368 = vmatmul.f32.gmra.mxu2 %v5374_v61  ;;  %v1456_v61 = vadd.f32 %v1455_v5, %v1294_v48  ;;  %v5384_v5 = vld [vmem:[#allocation43_spill] sm:$0xff] }
 0x50d   :  { %1636 = vmatmul.f32.gmra.mxu0 %v2044_v7  ;;  %1523 = vmatmul.f32.gmra.mxu3 %v2051_v47  ;;  %v2057_v7 = vld [vmem:[%s4888_s0 + $0x2c0] sm:$0xff]  ;;  %v2060_v47 = vld [vmem:[%s4888_s0 + $0x2d8] sm:$0xff] }
 0x50e   :  { %1371 = vmatmul.f32.gmra.mxu2 %v5377_v4  ;;  %v1459_v4 = vadd.f32 %v1458_v17, %v1297_v8  ;;  %v5387_v17 = vld [vmem:[#allocation68_spill] sm:$0xff] }
 0x515   :  { %1639 = vmatmul.f32.gmra.mxu0 %v2046_v22  ;;  %1526 = vmatmul.f32.gmra.mxu3 %v2054_v32  ;;  %v2062_v32 = vld [vmem:[%s4887_s1 + $0x18] sm:$0xff] }
 0x51d   :  { %1642 = vmatmul.f32.gmra.mxu0 %v2048_v38  ;;  %1529 = vmatmul.f32.gmra.mxu3 %v2057_v7  ;;  %v5376_v38 = vld [vmem:[#allocation85_spill] sm:$0xff]  ;;  %v2065_v7 = vld [vmem:[%s4887_s1 + $0x20] sm:$0xff] }
 0x51e   :  { %v688_v14 = vadd.f32 %v2059_v15, %v5376_v38  ;;  %v2067_v38 = vld [vmem:[%s4888_s0 + $0x1f0] sm:$0xff] }
 0x525   :  { %1645 = vmatmul.f32.gmra.mxu0 %v2050_v59  ;;  %v1461_v59 = vpop.f32.mrf.mxu3  ;;  %1532 = vmatmul.f32.gmra.mxu3 %v2060_v47  ;;  %v2068_v47 = vld [vmem:[%s4887_s1 + $0x28] sm:$0xff] }
 0x52d   :  { %1648 = vmatmul.f32.gmra.mxu0 %v2052_v37  ;;  %v1219_v37 = vadd.f32 %v5378_v13, %v688_v14 }
 0x532   :  { %v1604_v60 = vpop.f32.mrf.mxu0 }
 0x533   :  { %v1605_v39 = vadd.f32 %v1604_v60, %v1444_v11  ;;  %v5379_v60 = vld [vmem:[#allocation84_spill] sm:$0xff] }
 0x534   :  { %v689_v53 = vadd.f32 %v2062_v32, %v5379_v60  ;;  %v2070_v60 = vld [vmem:[%s4888_s0 + $0x208] sm:$0xff] }
 0x535   :  { %v1748_v43 = vadd.f32 %v1605_v39, %v1217_v40  ;;  %1651 = vmatmul.f32.gmra.mxu0 %v2055_v3  ;;  %v1303_v40 = vpop.f32.mrf.mxu2  ;;  %v1464_v39 = vpop.f32.mrf.mxu3  ;;  %v2063_v3 = vld [vmem:[%s4888_s0 + $0x2f0] sm:$0xff] }
 0x536   :  { %1535 = vmatmul.f32.gmra.mxu3 %v2063_v3  ;;  %v2071_v3 = vld [vmem:[%s4887_s1 + $0x30] sm:$0xff] }
 0x537   :  { %v1796_v6 = vmul.f32 0.25, %v1748_v43  ;;  %v5380_v43 = vld [vmem:[#allocation49_spill] sm:$0xff] }
 0x538   :  { %1374 = vmatmul.f32.gmra.mxu2 %v5380_v43  ;;  %v1462_v43 = vadd.f32 %v1461_v59, %v1300_v56  ;;  %v5390_v59 = vld [vmem:[#allocation39_spill] sm:$0xff] }
 0x539   :  { %1844 = vst [vmem:[%s4889_s2] sm:$0xff] %v1796_v6  ;;  %v1220_v6 = vadd.f32 %v5381_v52, %v689_v53 }
 0x53a   :  { %v1607_v1 = vpop.f32.mrf.mxu0 }
 0x53b   :  { %v1608_v0 = vadd.f32 %v1607_v1, %v1447_v16  ;;  %v5382_v1 = vld [vmem:[#allocation83_spill] sm:$0xff] }
 0x53c   :  { %v690_v46 = vadd.f32 %v2065_v7, %v5382_v1  ;;  %v2073_v1 = vld [vmem:[%s4888_s0 + $0x220] sm:$0xff] }
 0x53d   :  { %v1749_v22 = vadd.f32 %v1608_v0, %v1218_v28  ;;  %1654 = vmatmul.f32.gmra.mxu0 %v2058_v34  ;;  %v1306_v28 = vpop.f32.mrf.mxu2  ;;  %v1467_v0 = vpop.f32.mrf.mxu3  ;;  %v2066_v34 = vld [vmem:[%s4888_s0 + $0x308] sm:$0xff] }
 0x53e   :  { %1538 = vmatmul.f32.gmra.mxu3 %v2066_v34  ;;  %v2074_v34 = vld [vmem:[%s4887_s1 + $0x38] sm:$0xff] }
 0x53f   :  { %v1797_v51 = vmul.f32 0.25, %v1749_v22  ;;  %v5383_v22 = vld [vmem:[#allocation51_spill] sm:$0xff] }
 0x540   :  { %1377 = vmatmul.f32.gmra.mxu2 %v5383_v22  ;;  %v1465_v22 = vadd.f32 %v1464_v39, %v1303_v40  ;;  %v2076_v40 = vld [vmem:[%s4888_s0 + $0x350] sm:$0xff] }
 0x541   :  { %1845 = vst [vmem:[%s4889_s2 + $0x8] sm:$0xff] %v1797_v51  ;;  %v1221_v51 = vadd.f32 %v5384_v5, %v690_v46 }
 0x542   :  { %v1610_v25 = vpop.f32.mrf.mxu0 }
 0x543   :  { %v1611_v11 = vadd.f32 %v1610_v25, %v1450_v24  ;;  %v5385_v25 = vld [vmem:[#allocation82_spill] sm:$0xff] }
 0x544   :  { %v691_v13 = vadd.f32 %v2068_v47, %v5385_v25  ;;  %v2077_v25 = vld [vmem:[%s4888_s0 + $0x238] sm:$0xff] }
 0x545   :  { %v1750_v45 = vadd.f32 %v1611_v11, %v1219_v37  ;;  %1657 = vmatmul.f32.gmra.mxu0 %v2061_v21  ;;  %v1309_v37 = vpop.f32.mrf.mxu2  ;;  %v1470_v11 = vpop.f32.mrf.mxu3  ;;  %v2069_v21 = vld [vmem:[%s4888_s0 + $0x320] sm:$0xff] }
 0x546   :  { %1541 = vmatmul.f32.gmra.mxu3 %v2069_v21  ;;  %v2078_v21 = vld [vmem:[%s4887_s1 + $0x40] sm:$0xff] }
 0x547   :  { %v1798_v62 = vmul.f32 0.25, %v1750_v45  ;;  %v5386_v45 = vld [vmem:[#allocation53_spill] sm:$0xff] }
 0x548   :  { %1380 = vmatmul.f32.gmra.mxu2 %v5386_v45  ;;  %v1468_v45 = vadd.f32 %v1467_v0, %v1306_v28  ;;  %v2080_v28 = vld [vmem:[%s4888_s0 + $0x368] sm:$0xff] }
 0x549   :  { %1846 = vst [vmem:[%s4889_s2 + $0x10] sm:$0xff] %v1798_v62  ;;  %v1222_v62 = vadd.f32 %v5387_v17, %v691_v13 }
 0x54a   :  { %v1613_v23 = vpop.f32.mrf.mxu0 }
 0x54b   :  { %v1614_v16 = vadd.f32 %v1613_v23, %v1453_v12  ;;  %v5388_v23 = vld [vmem:[#allocation81_spill] sm:$0xff] }
 0x54c   :  { %v692_v52 = vadd.f32 %v2071_v3, %v5388_v23  ;;  %v2081_v23 = vld [vmem:[%s4888_s0 + $0x250] sm:$0xff] }
 0x54d   :  { %v1751_v10 = vadd.f32 %v1614_v16, %v1220_v6  ;;  %1660 = vmatmul.f32.gmra.mxu0 %v2064_v26  ;;  %v1312_v6 = vpop.f32.mrf.mxu2  ;;  %v1473_v16 = vpop.f32.mrf.mxu3  ;;  %v2072_v26 = vld [vmem:[%s4888_s0 + $0x338] sm:$0xff] }
 0x54e   :  { %1544 = vmatmul.f32.gmra.mxu3 %v2072_v26 }
 0x54f   :  { %v1799_v63 = vmul.f32 0.25, %v1751_v10  ;;  %v5389_v10 = vld [vmem:[#allocation55_spill] sm:$0xff] }
 0x550   :  { %1383 = vmatmul.f32.gmra.mxu2 %v5389_v10  ;;  %v1471_v10 = vadd.f32 %v1470_v11, %v1309_v37  ;;  %v2084_v11 = vld [vmem:[%s4888_s0 + $0x268] sm:$0xff] }
 0x551   :  { %1847 = vst [vmem:[%s4889_s2 + $0x18] sm:$0xff] %v1799_v63  ;;  %v1223_v63 = vadd.f32 %v5390_v59, %v692_v52  ;;  %v2082_v59 = vld [vmem:[%s4888_s0 + $0x378] sm:$0xff] }
 0x552   :  { %v1616_v48 = vpop.f32.mrf.mxu0 }
 0x553   :  { %v1617_v24 = vadd.f32 %v1616_v48, %v1456_v61  ;;  %v5391_v48 = vld [vmem:[#allocation80_spill] sm:$0xff] }
 0x554   :  { %v693_v5 = vadd.f32 %v2074_v34, %v5391_v48 }
 0x555   :  { %v1752_v15 = vadd.f32 %v1617_v24, %v1221_v51  ;;  %1663 = vmatmul.f32.gmra.mxu0 %v2067_v38  ;;  %v1315_v51 = vpop.f32.mrf.mxu2  ;;  %v1476_v24 = vpop.f32.mrf.mxu3  ;;  %v5392_v38 = vld [vmem:[#allocation66_spill] sm:$0xff] }
 0x556   :  { %1547 = vmatmul.f32.gmra.mxu3 %v2076_v40 }
 0x557   :  { %v1800_v14 = vmul.f32 0.25, %v1752_v15  ;;  %v2075_v15 = vld [vmem:[%s4888_s0 + $0x348] sm:$0xff] }
 0x558   :  { %1386 = vmatmul.f32.gmra.mxu2 %v2075_v15  ;;  %v2086_v15 = vld [vmem:[%s4888_s0 + $0x398] sm:$0xff] }
 0x559   :  { %1848 = vst [vmem:[%s4889_s2 + $0x20] sm:$0xff] %v1800_v14  ;;  %v1224_v14 = vadd.f32 %v5392_v38, %v693_v5  ;;  %v2085_v5 = vld [vmem:[%s4888_s0 + $0x390] sm:$0xff]  ;;  %v5396_v38 = vld [vmem:[#allocation25_spill] sm:$0xff] }
 0x55a   :  { %v1619_v8 = vpop.f32.mrf.mxu0 }
 0x55b   :  { %v1620_v12 = vadd.f32 %v1619_v8, %v1459_v4  ;;  %v5393_v8 = vld [vmem:[#allocation63_spill] sm:$0xff] }
 0x55c   :  { %v694_v17 = vadd.f32 %v2078_v21, %v5393_v8 }
 0x55d   :  { %v1753_v32 = vadd.f32 %v1620_v12, %v1222_v62  ;;  %1666 = vmatmul.f32.gmra.mxu0 %v2070_v60  ;;  %v1318_v62 = vpop.f32.mrf.mxu2  ;;  %v1479_v12 = vpop.f32.mrf.mxu3  ;;  %v5394_v60 = vld [vmem:[#allocation57_spill] sm:$0xff] }
 0x55e   :  { %1550 = vmatmul.f32.gmra.mxu3 %v2080_v28  ;;  %v1480_v28 = vadd.f32 %v1479_v12, %v1318_v62  ;;  %v2093_v12 = vld [vmem:[%s4888_s0 + $0x2b0] sm:$0xff] }
 0x55f   :  { %v1801_v53 = vmul.f32 0.25, %v1753_v32  ;;  %v2079_v32 = vld [vmem:[%s4888_s0 + $0x360] sm:$0xff] }
 0x560   :  { %1389 = vmatmul.f32.gmra.mxu2 %v2079_v32 }
 0x561   :  { %1849 = vst [vmem:[%s4889_s2 + $0x28] sm:$0xff] %v1801_v53  ;;  %v1225_v53 = vadd.f32 %v5394_v60, %v694_v17  ;;  %v5397_v17 = vld [vmem:[#allocation28_spill] sm:$0xff] }
 0x562   :  { %v1622_v56 = vpop.f32.mrf.mxu0 }
 0x563   :  { %v1623_v61 = vadd.f32 %v1622_v56, %v1462_v43 }
 0x565   :  { %v1754_v7 = vadd.f32 %v1623_v61, %v1223_v63  ;;  %1669 = vmatmul.f32.gmra.mxu0 %v2073_v1  ;;  %v1321_v26 = vpop.f32.mrf.mxu2  ;;  %v1482_v56 = vpop.f32.mrf.mxu3  ;;  %v2083_v63 = vld [vmem:[%s4888_s0 + $0x380] sm:$0xff]  ;;  %v5395_v1 = vld [vmem:[#allocation59_spill] sm:$0xff] }
 0x566   :  { %1553 = vmatmul.f32.gmra.mxu3 %v2083_v63 }
 0x567   :  { %v1802_v46 = vmul.f32 0.25, %v1754_v7 }
 0x568   :  { %1392 = vmatmul.f32.gmra.mxu2 %v2082_v59  ;;  %v1483_v59 = vadd.f32 %v1482_v56, %v1321_v26  ;;  %v2096_v56 = vld [vmem:[%s4888_s0 + $0x2c8] sm:$0xff] }
 0x569   :  { %1850 = vst [vmem:[%s4889_s2 + $0x30] sm:$0xff] %v1802_v46 }
 0x56a   :  { %v1625_v39 = vpop.f32.mrf.mxu0 }
 0x56b   :  { %v1626_v4 = vadd.f32 %v1625_v39, %v1465_v22  ;;  %v1474_v22 = vadd.f32 %v1473_v16, %v1312_v6  ;;  %v2087_v16 = vld [vmem:[%s4888_s0 + $0x280] sm:$0xff] }
 0x56d   :  { %v1755_v47 = vadd.f32 %v1626_v4, %v1224_v14  ;;  %1672 = vmatmul.f32.gmra.mxu0 %v2077_v25  ;;  %v1324_v34 = vpop.f32.mrf.mxu2  ;;  %v1485_v48 = vpop.f32.mrf.mxu3  ;;  %v1477_v4 = vadd.f32 %v1476_v24, %v1315_v51  ;;  %v2090_v24 = vld [vmem:[%s4888_s0 + $0x298] sm:$0xff] }
 0x56e   :  { %1556 = vmatmul.f32.gmra.mxu3 %v2086_v15 }
 0x56f   :  { %v1803_v13 = vmul.f32 0.25, %v1755_v47 }
 0x570   :  { %1395 = vmatmul.f32.gmra.mxu2 %v2085_v5  ;;  %v1486_v5 = vadd.f32 %v1485_v48, %v1324_v34  ;;  %v2099_v48 = vld [vmem:[%s4888_s0 + $0x2e0] sm:$0xff] }
 0x571   :  { %1851 = vst [vmem:[%s4889_s2 + $0x38] sm:$0xff] %v1803_v13  ;;  %v2088_v13 = vld [vmem:[%s4888_s0 + $0x3a8] sm:$0xff] }
 0x572   :  { %v1628_v0 = vpop.f32.mrf.mxu0 }
 0x573   :  { %v1629_v43 = vadd.f32 %v1628_v0, %v1468_v45  ;;  %v2089_v45 = vld [vmem:[%s4888_s0 + $0x3b0] sm:$0xff] }
 0x575   :  { %v1756_v3 = vadd.f32 %v1629_v43, %v1225_v53  ;;  %1675 = vmatmul.f32.gmra.mxu0 %v2081_v23  ;;  %v1327_v47 = vpop.f32.mrf.mxu2  ;;  %v1488_v25 = vpop.f32.mrf.mxu3  ;;  %v2091_v53 = vld [vmem:[%s4888_s0 + $0x3c0] sm:$0xff]  ;;  %v2092_v43 = vld [vmem:[%s4888_s0 + $0x3c8] sm:$0xff] }
 0x576   :  { %1559 = vmatmul.f32.gmra.mxu3 %v2089_v45 }
 0x577   :  { %v1804_v52 = vmul.f32 0.25, %v1756_v3 }
 0x578   :  { %1398 = vmatmul.f32.gmra.mxu2 %v2088_v13  ;;  %v1489_v13 = vadd.f32 %v1488_v25, %v1327_v47  ;;  %v5401_v47 = vld [vmem:[#allocation35_spill] sm:$0xff] }
 0x579   :  { %1852 = vst [vmem:[%s4889_s2 + $0x40] sm:$0xff] %v1804_v52  ;;  %v5398_v52 = vld [vmem:[#allocation61_spill] sm:$0xff] }
 0x57a   :  { %v1631_v61 = vpop.f32.mrf.mxu0 }
 0x57b   :  { %v1632_v7 = vadd.f32 %v1631_v61, %v1471_v10 }
 0x57d   :  { %v1757_v37 = vadd.f32 %v1632_v7, %v5395_v1  ;;  %1678 = vmatmul.f32.gmra.mxu0 %v2084_v11  ;;  %v1330_v0 = vpop.f32.mrf.mxu2  ;;  %v1491_v60 = vpop.f32.mrf.mxu3  ;;  %v2094_v7 = vld [vmem:[%s4888_s0 + $0x3d8] sm:$0xff]  ;;  %v2095_v1 = vld [vmem:[%s4888_s0 + $0x3e0] sm:$0xff] }
 0x57e   :  { %1562 = vmatmul.f32.gmra.mxu3 %v2092_v43  ;;  %v2103_v43 = vld [vmem:[%s4887_s1 + $0x80] sm:$0xff] }
 0x57f   :  { %v1805_v46 = vmul.f32 0.25, %v1757_v37 }
 0x580   :  { %1401 = vmatmul.f32.gmra.mxu2 %v2091_v53  ;;  %v1492_v53 = vadd.f32 %v1491_v60, %v1330_v0  ;;  %v2105_v0 = vld [vmem:[%s4888_s0 + $0x428] sm:$0xff] }
 0x581   :  { %1853 = vst [vmem:[%s4889_s2 + $0x48] sm:$0xff] %v1805_v46  ;;  %v5399_v46 = vld [vmem:[#allocation31_spill] sm:$0xff] }
 0x582   :  { %v1634_v40 = vpop.f32.mrf.mxu0 }
 0x583   :  { %v1635_v39 = vadd.f32 %v1634_v40, %v1474_v22 }
 0x585   :  { %v1758_v6 = vadd.f32 %v1635_v39, %v5396_v38  ;;  %1681 = vmatmul.f32.gmra.mxu0 %v2087_v16  ;;  %v1333_v63 = vpop.f32.mrf.mxu2  ;;  %v1494_v61 = vpop.f32.mrf.mxu3  ;;  %v2097_v39 = vld [vmem:[%s4888_s0 + $0x3f0] sm:$0xff]  ;;  %v2098_v38 = vld [vmem:[%s4888_s0 + $0x3f8] sm:$0xff] }
 0x586   :  { %1565 = vmatmul.f32.gmra.mxu3 %v2095_v1  ;;  %v2106_v1 = vld [vmem:[%s4888_s0 + $0x310] sm:$0xff] }
 0x587   :  { %v1806_v14 = vmul.f32 0.25, %v1758_v6 }
 0x588   :  { %1404 = vmatmul.f32.gmra.mxu2 %v2094_v7 }
 0x589   :  { %1854 = vst [vmem:[%s4889_s2 + $0x50] sm:$0xff] %v1806_v14  ;;  %v5400_v14 = vld [vmem:[#allocation64_spill] sm:$0xff] }
 0x58a   :  { %v1637_v21 = vpop.f32.mrf.mxu0 }
 0x58b   :  { %v1638_v8 = vadd.f32 %v1637_v21, %v1477_v4 }
 0x58d   :  { %v1759_v51 = vadd.f32 %v1638_v8, %v5397_v17  ;;  %1684 = vmatmul.f32.gmra.mxu0 %v2090_v24  ;;  %v1336_v15 = vpop.f32.mrf.mxu2  ;;  %v1497_v40 = vpop.f32.mrf.mxu3  ;;  %v2100_v8 = vld [vmem:[%s4888_s0 + $0x408] sm:$0xff]  ;;  %v2101_v17 = vld [vmem:[%s4888_s0 + $0x410] sm:$0xff] }
 0x58e   :  { %1568 = vmatmul.f32.gmra.mxu3 %v2098_v38 }
 0x58f   :  { %v1807_v32 = vmul.f32 0.25, %v1759_v51 }
 0x590   :  { %1407 = vmatmul.f32.gmra.mxu2 %v2097_v39 }
 0x591   :  { %1855 = vst [vmem:[%s4889_s2 + $0x58] sm:$0xff] %v1807_v32  ;;  %v2102_v32 = vld [vmem:[%s4888_s0 + $0x2f8] sm:$0xff] }
 0x592   :  { %v1640_v3 = vpop.f32.mrf.mxu0 }
 0x593   :  { %v1641_v23 = vadd.f32 %v1640_v3, %v1480_v28  ;;  %v5402_v3 = vld [vmem:[#allocation21_spill] sm:$0xff] }
 0x595   :  { %v1760_v62 = vadd.f32 %v1641_v23, %v5398_v52  ;;  %1687 = vmatmul.f32.gmra.mxu0 %v2093_v12  ;;  %v4593_v45 = vpop.f32.mrf.mxu2  ;;  %v1500_v21 = vpop.f32.mrf.mxu3  ;;  %v702_v23 = vadd.f32 %v2103_v43, %v5402_v3  ;;  %v2104_v12 = vld [vmem:[%s4888_s0 + $0x420] sm:$0xff] }
 0x596   :  { %1571 = vmatmul.f32.gmra.mxu3 %v2101_v17  ;;  %v2112_v17 = vld [vmem:[%s4888_s0 + $0x450] sm:$0xff]  ;;  %v5405_v43 = vld [vmem:[#allocation26_spill] sm:$0xff] }
 0x597   :  { %v1808_v10 = vmul.f32 0.25, %v1760_v62 }
 0x598   :  { %1410 = vmatmul.f32.gmra.mxu2 %v2100_v8 }
 0x599   :  { %1856 = vst [vmem:[%s4889_s2 + $0x60] sm:$0xff] %v1808_v10  ;;  %v1233_v10 = vadd.f32 %v4124_v36, %v702_v23 }
 0x59a   :  { %v1643_v37 = vpop.f32.mrf.mxu0 }
 0x59b   :  { %v1644_v11 = vadd.f32 %v1643_v37, %v1483_v59 }
 0x59d   :  { %v1761_v26 = vadd.f32 %v1644_v11, %v5399_v46  ;;  %1690 = vmatmul.f32.gmra.mxu0 %v2096_v56  ;;  %v4612_v52 = vpop.f32.mrf.mxu2  ;;  %v4614_v62 = vpop.f32.mrf.mxu3  ;;  %v1495_v11 = vadd.f32 %v1494_v61, %v1333_v63  ;;  %v2107_v46 = vld [vmem:[%s4887_s1 + $0x88] sm:$0xff]  ;;  %v2109_v63 = vld [vmem:[%s4888_s0 + $0x440] sm:$0xff] }
 0x59e   :  { %1574 = vmatmul.f32.gmra.mxu3 %v2105_v0 }
 0x59f   :  { %v1809_v22 = vmul.f32 0.25, %v1761_v26  ;;  %v5403_v26 = vld [vmem:[#allocation23_spill] sm:$0xff] }
 0x5a0   :  { %1413 = vmatmul.f32.gmra.mxu2 %v2104_v12  ;;  %v703_v56 = vadd.f32 %v2107_v46, %v5403_v26  ;;  %v2116_v12 = vld [vmem:[%s4888_s0 + $0x468] sm:$0xff] }
 0x5a1   :  { %1857 = vst [vmem:[%s4889_s2 + $0x68] sm:$0xff] %v1809_v22 }
 0x5a2   :  { %v1646_v6 = vpop.f32.mrf.mxu0  ;;  %v1234_v39 = vadd.f32 %v4119_v18, %v703_v56 }
 0x5a3   :  { %v1647_v16 = vadd.f32 %v1646_v6, %v1486_v5  ;;  %v2108_v5 = vld [vmem:[%s4888_s0 + $0x438] sm:$0xff] }
 0x5a5   :  { %v1762_v34 = vadd.f32 %v1647_v16, %v5400_v14  ;;  %1693 = vmatmul.f32.gmra.mxu0 %v2099_v48  ;;  %v1345_v36 = vpop.f32.mrf.mxu2  ;;  %v1506_v22 = vpop.f32.mrf.mxu3  ;;  %v2110_v16 = vld [vmem:[%s4888_s0 + $0x328] sm:$0xff]  ;;  %v2111_v48 = vld [vmem:[%s4887_s1 + $0x90] sm:$0xff] }
 0x5a6   :  { %1577 = vmatmul.f32.gmra.mxu3 %v2109_v63 }
 0x5a7   :  { %v1810_v4 = vmul.f32 0.25, %v1762_v34  ;;  %v1498_v34 = vadd.f32 %v1497_v40, %v1336_v15  ;;  %v2113_v15 = vld [vmem:[%s4888_s0 + $0x458] sm:$0xff] }
 0x5a8   :  { %1416 = vmatmul.f32.gmra.mxu2 %v2108_v5 }
 0x5a9   :  { %1858 = vst [vmem:[%s4889_s2 + $0x70] sm:$0xff] %v1810_v4  ;;  %v5404_v4 = vld [vmem:[#allocation6_spill] sm:$0xff] }
 0x5aa   :  { %v1649_v51 = vpop.f32.mrf.mxu0 }
 0x5ab   :  { %v1650_v24 = vadd.f32 %v1649_v51, %v1489_v13  ;;  %v704_v13 = vadd.f32 %v2111_v48, %v5404_v4 }
 0x5ad   :  { %v1763_v25 = vadd.f32 %v1650_v24, %v5401_v47  ;;  %1696 = vmatmul.f32.gmra.mxu0 %v2102_v32  ;;  %v1348_v18 = vpop.f32.mrf.mxu2  ;;  %v1509_v8 = vpop.f32.mrf.mxu3  ;;  %v1235_v51 = vadd.f32 %v4114_v49, %v704_v13 }
 0x5ae   :  { %1580 = vmatmul.f32.gmra.mxu3 %v2113_v15  ;;  %v2123_v15 = vld [vmem:[%s4887_s1 + $0xb0] sm:$0xff] }
 0x5af   :  { %v1811_v28 = vmul.f32 0.25, %v1763_v25  ;;  %v2114_v25 = vld [vmem:[%s4888_s0 + $0x340] sm:$0xff] }
 0x5b0   :  { %1419 = vmatmul.f32.gmra.mxu2 %v2112_v17  ;;  %v1510_v17 = vadd.f32 %v1509_v8, %v1348_v18  ;;  %v2124_v18 = vld [vmem:[%s4888_s0 + $0x3a0] sm:$0xff] }
 0x5b1   :  { %1859 = vst [vmem:[%s4889_s2 + $0x78] sm:$0xff] %v1811_v28  ;;  %v1501_v28 = vadd.f32 %v1500_v21, %v4593_v45  ;;  %v2117_v45 = vld [vmem:[%s4888_s0 + $0x470] sm:$0xff] }
 0x5b2   :  { %v1652_v60 = vpop.f32.mrf.mxu0 }
 0x5b3   :  { %v1653_v59 = vadd.f32 %v1652_v60, %v1492_v53  ;;  %v2115_v53 = vld [vmem:[%s4887_s1 + $0x98] sm:$0xff] }
 0x5b4   :  { %v705_v3 = vadd.f32 %v2115_v53, %v5405_v43  ;;  %v2125_v43 = vld [vmem:[%s4887_s1 + $0xb8] sm:$0xff] }
 0x5b5   :  { %v1764_v7 = vadd.f32 %v1653_v59, %v1233_v10  ;;  %1699 = vmatmul.f32.gmra.mxu0 %v2106_v1  ;;  %v1351_v49 = vpop.f32.mrf.mxu2  ;;  %v1512_v23 = vpop.f32.mrf.mxu3  ;;  %v2118_v59 = vld [vmem:[%s4888_s0 + $0x358] sm:$0xff]  ;;  %v1504_v1 = vadd.f32 %v4614_v62, %v4612_v52  ;;  %v2120_v52 = vld [vmem:[%s4888_s0 + $0x370] sm:$0xff] }
 0x5b6   :  { %1583 = vmatmul.f32.gmra.mxu3 %v2117_v45  ;;  %v1236_v0 = vadd.f32 %v4108_v2, %v705_v3  ;;  %v1513_v53 = vadd.f32 %v1512_v23, %v1351_v49  ;;  %v5409_v3 = vld [vmem:[#allocation4_spill] sm:$0xff]  ;;  %v2126_v49 = vld [vmem:[%s4888_s0 + $0x3b8] sm:$0xff] }
 0x5b7   :  { %v1812_v37 = vmul.f32 0.25, %v1764_v7 }
 0x5b8   :  { %1422 = vmatmul.f32.gmra.mxu2 %v2116_v12  ;;  %v709_v12 = vadd.f32 %v2125_v43, %v5409_v3 }
 0x5b9   :  { %1860 = vst [vmem:[%s4889_s2 + $0x80] sm:$0xff] %v1812_v37  ;;  %v2119_v37 = vld [vmem:[%s4887_s1 + $0xa0] sm:$0xff] }
 0x5ba   :  { %v1655_v61 = vpop.f32.mrf.mxu0 }
 0x5bb   :  { %v1656_v38 = vadd.f32 %v1655_v61, %v1495_v11  ;;  %v5406_v11 = vld [vmem:[#allocation29_spill] sm:$0xff] }
 0x5bc   :  { %v706_v46 = vadd.f32 %v2119_v37, %v5406_v11 }
 0x5bd   :  { %v1765_v6 = vadd.f32 %v1656_v38, %v1234_v39  ;;  %1702 = vmatmul.f32.gmra.mxu0 %v2110_v16  ;;  %v1354_v2 = vpop.f32.mrf.mxu2  ;;  %v1515_v26 = vpop.f32.mrf.mxu3  ;;  %v1507_v39 = vadd.f32 %v1506_v22, %v1345_v36  ;;  %v2121_v38 = vld [vmem:[%s4887_s1 + $0xa8] sm:$0xff] }
 0x5be   :  { %v1237_v5 = vadd.f32 %v4101_v31, %v706_v46  ;;  %v2122_v36 = vld [vmem:[%s4888_s0 + $0x388] sm:$0xff] }
 0x5bf   :  { %v1813_v14 = vmul.f32 0.25, %v1765_v6  ;;  %v5407_v6 = vld [vmem:[#allocation33_spill] sm:$0xff] }
 0x5c0   :  { %v707_v16 = vadd.f32 %v2121_v38, %v5407_v6  ;;  %v5411_v6 = vld [vmem:[#allocation72_spill] sm:$0xff] }
 0x5c1   :  { %1861 = vst [vmem:[%s4889_s2 + $0x88] sm:$0xff] %v1813_v14 }
 0x5c2   :  { %v1658_v40 = vpop.f32.mrf.mxu0  ;;  %v1238_v48 = vadd.f32 %v4092_v50, %v707_v16 }
 0x5c3   :  { %v1659_v24 = vadd.f32 %v1658_v40, %v1498_v34  ;;  %v5408_v40 = vld [vmem:[#allocation37_spill] sm:$0xff] }
 0x5c5   :  { %v1766_v47 = vadd.f32 %v1659_v24, %v1235_v51  ;;  %1705 = vmatmul.f32.gmra.mxu0 %v2114_v25  ;;  %v1357_v31 = vpop.f32.mrf.mxu2  ;;  %v1518_v14 = vpop.f32.mrf.mxu3  ;;  %v708_v51 = vadd.f32 %v2123_v15, %v5408_v40 }
 0x5c7   :  { %v1814_v32 = vmul.f32 0.25, %v1766_v47  ;;  %v1239_v25 = vadd.f32 %v4087_v58, %v708_v51 }
 0x5c9   :  { %1862 = vst [vmem:[%s4889_s2 + $0x90] sm:$0xff] %v1814_v32 }
 0x5ca   :  { %v1661_v21 = vpop.f32.mrf.mxu0 }
 0x5cb   :  { %v1662_v60 = vadd.f32 %v1661_v21, %v1501_v28 }
 0x5cd   :  { %v1767_v10 = vadd.f32 %v1662_v60, %v1236_v0  ;;  %1708 = vmatmul.f32.gmra.mxu0 %v2118_v59  ;;  %v1360_v50 = vpop.f32.mrf.mxu2  ;;  %v1521_v24 = vpop.f32.mrf.mxu3  ;;  %v1240_v0 = vadd.f32 %v4081_v9, %v709_v12  ;;  %v1516_v59 = vadd.f32 %v1515_v26, %v1354_v2  ;;  %v2128_v2 = vld [vmem:[%s4888_s0 + $0x3d0] sm:$0xff] }
 0x5cf   :  { %v1815_v7 = vmul.f32 0.25, %v1767_v10 }
 0x5d1   :  { %1863 = vst [vmem:[%s4889_s2 + $0x98] sm:$0xff] %v1815_v7  ;;  %v2127_v7 = vld [vmem:[%s4887_s1 + $0xc0] sm:$0xff] }
 0x5d2   :  { %v1664_v56 = vpop.f32.mrf.mxu0 }
 0x5d3   :  { %v1665_v63 = vadd.f32 %v1664_v56, %v1504_v1  ;;  %v5410_v1 = vld [vmem:[#allocation41_spill] sm:$0xff] }
 0x5d4   :  { %v710_v37 = vadd.f32 %v2127_v7, %v5410_v1  ;;  %v5415_v7 = vld [vmem:[#allocation54_spill] sm:$0xff] }
 0x5d5   :  { %v1768_v61 = vadd.f32 %v1665_v63, %v1237_v5  ;;  %1711 = vmatmul.f32.gmra.mxu0 %v2120_v52  ;;  %v1363_v58 = vpop.f32.mrf.mxu2  ;;  %v1524_v45 = vpop.f32.mrf.mxu3 }
 0x5d6   :  { %v1241_v56 = vadd.f32 %v4074_v55, %v710_v37  ;;  %v2129_v55 = vld [vmem:[%s4888_s0 + $0x3e8] sm:$0xff]  ;;  %v1525_v40 = vadd.f32 %v1524_v45, %v1363_v58  ;;  %v5414_v58 = vld [vmem:[#allocation52_spill] sm:$0xff] }
 0x5d7   :  { %v1816_v62 = vmul.f32 0.25, %v1768_v61  ;;  %v1519_v61 = vadd.f32 %v1518_v14, %v1357_v31  ;;  %v2133_v37 = vld [vmem:[%s4888_s0 + $0x448] sm:$0xff] }
 0x5d9   :  { %1864 = vst [vmem:[%s4889_s2 + $0xa0] sm:$0xff] %v1816_v62 }
 0x5da   :  { %v1667_v34 = vpop.f32.mrf.mxu0 }
 0x5db   :  { %v1668_v4 = vadd.f32 %v1667_v34, %v1507_v39 }
 0x5dd   :  { %v1769_v13 = vadd.f32 %v1668_v4, %v1238_v48  ;;  %1714 = vmatmul.f32.gmra.mxu0 %v2122_v36  ;;  %v1366_v9 = vpop.f32.mrf.mxu2  ;;  %v1527_v11 = vpop.f32.mrf.mxu3  ;;  %v1522_v48 = vadd.f32 %v1521_v24, %v1360_v50  ;;  %v5412_v36 = vld [vmem:[#allocation50_spill] sm:$0xff] }
 0x5df   :  { %v1817_v22 = vmul.f32 0.25, %v1769_v13 }
 0x5e1   :  { %1865 = vst [vmem:[%s4889_s2 + $0xa8] sm:$0xff] %v1817_v22 }
 0x5e2   :  { %v1670_v47 = vpop.f32.mrf.mxu0 }
 0x5e3   :  { %v1671_v32 = vadd.f32 %v1670_v47, %v1510_v17  ;;  %v2130_v17 = vld [vmem:[%s4888_s0 + $0x400] sm:$0xff] }
 0x5e5   :  { %v1770_v28 = vadd.f32 %v1671_v32, %v1239_v25  ;;  %1717 = vmatmul.f32.gmra.mxu0 %v2124_v18  ;;  %v1369_v52 = vpop.f32.mrf.mxu2  ;;  %v1530_v62 = vpop.f32.mrf.mxu3  ;;  %v5413_v25 = vld [vmem:[#allocation73_spill] sm:$0xff] }
 0x5e7   :  { %v1818_v8 = vmul.f32 0.25, %v1770_v28  ;;  %v2131_v28 = vld [vmem:[%s4888_s0 + $0x418] sm:$0xff] }
 0x5e9   :  { %1866 = vst [vmem:[%s4889_s2 + $0xb0] sm:$0xff] %v1818_v8  ;;  %v1528_v8 = vadd.f32 %v1527_v11, %v1366_v9 }
 0x5ea   :  { %v1673_v21 = vpop.f32.mrf.mxu0 }
 0x5eb   :  { %v1674_v60 = vadd.f32 %v1673_v21, %v1513_v53  ;;  %v2132_v21 = vld [vmem:[%s4888_s0 + $0x430] sm:$0xff] }
 0x5ed   :  { %v1771_v10 = vadd.f32 %v1674_v60, %v1240_v0  ;;  %1720 = vmatmul.f32.gmra.mxu0 %v2126_v49  ;;  %v1372_v31 = vpop.f32.mrf.mxu2  ;;  %v1533_v14 = vpop.f32.mrf.mxu3  ;;  %v1531_v60 = vadd.f32 %v1530_v62, %v1369_v52 }
 0x5ee   :  { %v1534_v11 = vadd.f32 %v1533_v14, %v1372_v31 }
 0x5ef   :  { %v1819_v23 = vmul.f32 0.25, %v1771_v10 }
 0x5f1   :  { %1867 = vst [vmem:[%s4889_s2 + $0xb8] sm:$0xff] %v1819_v23 }
 0x5f2   :  { %v1676_v46 = vpop.f32.mrf.mxu0 }
 0x5f3   :  { %v1677_v5 = vadd.f32 %v1676_v46, %v1516_v59 }
 0x5f5   :  { %v1772_v63 = vadd.f32 %v1677_v5, %v1241_v56  ;;  %1723 = vmatmul.f32.gmra.mxu0 %v2128_v2  ;;  %v1375_v51 = vpop.f32.mrf.mxu2  ;;  %v1536_v50 = vpop.f32.mrf.mxu3  ;;  %v5416_v2 = vld [vmem:[#allocation56_spill] sm:$0xff] }
 0x5f6   :  { %v1537_v62 = vadd.f32 %v1536_v50, %v1375_v51 }
 0x5f7   :  { %v1820_v26 = vmul.f32 0.25, %v1772_v63 }
 0x5f9   :  { %1868 = vst [vmem:[%s4889_s2 + $0xc0] sm:$0xff] %v1820_v26 }
 0x5fa   :  { %v1679_v39 = vpop.f32.mrf.mxu0 }
 0x5fb   :  { %v1680_v38 = vadd.f32 %v1679_v39, %v1519_v61  ;;  %v2134_v61 = vld [vmem:[%s4888_s0 + $0x460] sm:$0xff] }
 0x5fd   :  { %v1773_v16 = vadd.f32 %v1680_v38, %v5411_v6  ;;  %1726 = vmatmul.f32.gmra.mxu0 %v2129_v55  ;;  %v1378_v53 = vpop.f32.mrf.mxu2  ;;  %v1539_v43 = vpop.f32.mrf.mxu3  ;;  %v5417_v55 = vld [vmem:[#allocation58_spill] sm:$0xff] }
 0x5fe   :  { %v1540_v14 = vadd.f32 %v1539_v43, %v1378_v53 }
 0x5ff   :  { %v1821_v34 = vmul.f32 0.25, %v1773_v16 }
 0x601   :  { %1869 = vst [vmem:[%s4889_s2 + $0xc8] sm:$0xff] %v1821_v34 }
 0x602   :  { %v1682_v4 = vpop.f32.mrf.mxu0 }
 0x603   :  { %v1683_v13 = vadd.f32 %v1682_v4, %v1522_v48  ;;  %v2135_v48 = vld [vmem:[%s4888_s0 + $0x478] sm:$0xff]  ;;  %v2136_v4 = vld [vmem:[%s4887_s1 + $0x100] sm:$0xff] }
 0x605   :  { %v1774_v22 = vadd.f32 %v1683_v13, %v5412_v36  ;;  %1729 = vmatmul.f32.gmra.mxu0 %v2130_v17  ;;  %v1381_v10 = vpop.f32.mrf.mxu2  ;;  %v1542_v49 = vpop.f32.mrf.mxu3  ;;  %v5418_v13 = vld [vmem:[#allocation22_spill] sm:$0xff] }
 0x606   :  { %v718_v36 = vadd.f32 %v2136_v4, %v5418_v13 }
 0x607   :  { %v1822_v15 = vmul.f32 0.25, %v1774_v22 }
 0x608   :  { %v1249_v17 = vadd.f32 %v4304_v19, %v718_v36 }
 0x609   :  { %1870 = vst [vmem:[%s4889_s2 + $0xd0] sm:$0xff] %v1822_v15 }
 0x60a   :  { %v1685_v24 = vpop.f32.mrf.mxu0 }
 0x60b   :  { %v1686_v47 = vadd.f32 %v1685_v24, %v1525_v40 }
 0x60d   :  { %v1775_v32 = vadd.f32 %v1686_v47, %v5413_v25  ;;  %1732 = vmatmul.f32.gmra.mxu0 %v2131_v28  ;;  %v1384_v46 = vpop.f32.mrf.mxu2  ;;  %v1545_v5 = vpop.f32.mrf.mxu3  ;;  %v1543_v47 = vadd.f32 %v1542_v49, %v1381_v10  ;;  %v2137_v25 = vld [vmem:[%s4887_s1 + $0x108] sm:$0xff] }
 0x60f   :  { %v1823_v18 = vmul.f32 0.25, %v1775_v32  ;;  %v5419_v32 = vld [vmem:[#allocation20_spill] sm:$0xff] }
 0x610   :  { %v719_v28 = vadd.f32 %v2137_v25, %v5419_v32 }
 0x611   :  { %1871 = vst [vmem:[%s4889_s2 + $0xd8] sm:$0xff] %v1823_v18 }
 0x612   :  { %v1688_v3 = vpop.f32.mrf.mxu0 }
 0x613   :  { %v1689_v12 = vadd.f32 %v1688_v3, %v1528_v8  ;;  %v1250_v8 = vadd.f32 %v4300_v33, %v719_v28  ;;  %v1546_v3 = vadd.f32 %v1545_v5, %v1384_v46 }
 0x615   :  { %v1776_v45 = vadd.f32 %v1689_v12, %v5414_v58  ;;  %1735 = vmatmul.f32.gmra.mxu0 %v2132_v21  ;;  %v1387_v6 = vpop.f32.mrf.mxu2  ;;  %v1548_v16 = vpop.f32.mrf.mxu3  ;;  %v5420_v21 = vld [vmem:[#allocation17_spill] sm:$0xff] }
 0x617   :  { %v1824_v0 = vmul.f32 0.25, %v1776_v45  ;;  %v2138_v45 = vld [vmem:[%s4887_s1 + $0x110] sm:$0xff] }
 0x619   :  { %1872 = vst [vmem:[%s4889_s2 + $0xe0] sm:$0xff] %v1824_v0  ;;  %v720_v0 = vadd.f32 %v2138_v45, %v5420_v21 }
 0x61a   :  { %v1691_v23 = vpop.f32.mrf.mxu0 }
 0x61b   :  { %v1692_v59 = vadd.f32 %v1691_v23, %v1531_v60  ;;  %v1251_v10 = vadd.f32 %v4296_v27, %v720_v0 }
 0x61d   :  { %v1777_v1 = vadd.f32 %v1692_v59, %v5415_v7  ;;  %1738 = vmatmul.f32.gmra.mxu0 %v2133_v37  ;;  %v1390_v51 = vpop.f32.mrf.mxu2  ;;  %v1551_v50 = vpop.f32.mrf.mxu3  ;;  %v1549_v59 = vadd.f32 %v1548_v16, %v1387_v6  ;;  %v2139_v7 = vld [vmem:[%s4887_s1 + $0x118] sm:$0xff] }
 0x61f   :  { %v1825_v9 = vmul.f32 0.25, %v1777_v1  ;;  %v5421_v1 = vld [vmem:[#allocation15_spill] sm:$0xff] }
 0x620   :  { %v721_v37 = vadd.f32 %v2139_v7, %v5421_v1 }
 0x621   :  { %1873 = vst [vmem:[%s4889_s2 + $0xe8] sm:$0xff] %v1825_v9 }
 0x622   :  { %v1694_v56 = vpop.f32.mrf.mxu0 }
 0x623   :  { %v1695_v63 = vadd.f32 %v1694_v56, %v1534_v11  ;;  %v1252_v56 = vadd.f32 %v4287_v29, %v721_v37 }
 0x625   :  { %v1778_v26 = vadd.f32 %v1695_v63, %v5416_v2  ;;  %1741 = vmatmul.f32.gmra.mxu0 %v2134_v61  ;;  %v1393_v12 = vpop.f32.mrf.mxu2  ;;  %v1554_v58 = vpop.f32.mrf.mxu3  ;;  %v1552_v2 = vadd.f32 %v1551_v50, %v1390_v51  ;;  %v5422_v61 = vld [vmem:[#allocation12_spill] sm:$0xff]  ;;  %v5424_v50 = vld [vmem:[#allocation18_spill] sm:$0xff] }
 0x626   :  { %v2142_v51 = vld [vmem:[%s4887_s1 + $0x130] sm:$0xff] }
 0x627   :  { %v1826_v52 = vmul.f32 0.25, %v1778_v26  ;;  %v2140_v26 = vld [vmem:[%s4887_s1 + $0x120] sm:$0xff] }
 0x629   :  { %1874 = vst [vmem:[%s4889_s2 + $0xf0] sm:$0xff] %v1826_v52  ;;  %v722_v52 = vadd.f32 %v2140_v26, %v5422_v61 }
 0x62a   :  { %v1697_v39 = vpop.f32.mrf.mxu0 }
 0x62b   :  { %v1698_v38 = vadd.f32 %v1697_v39, %v1537_v62  ;;  %v1253_v39 = vadd.f32 %v4281_v57, %v722_v52  ;;  %v5428_v52 = vld [vmem:[#allocation62_spill] sm:$0xff] }
 0x62d   :  { %v1779_v34 = vadd.f32 %v1698_v38, %v5417_v55  ;;  %1744 = vmatmul.f32.gmra.mxu0 %v2135_v48  ;;  %v1396_v9 = vpop.f32.mrf.mxu2  ;;  %v1557_v46 = vpop.f32.mrf.mxu3  ;;  %v2141_v48 = vld [vmem:[%s4887_s1 + $0x128] sm:$0xff] }
 0x62f   :  { %v1827_v31 = vmul.f32 0.25, %v1779_v34  ;;  %v1555_v34 = vadd.f32 %v1554_v58, %v1393_v12 }
 0x631   :  { %1875 = vst [vmem:[%s4889_s2 + $0xf8] sm:$0xff] %v1827_v31  ;;  %v5423_v31 = vld [vmem:[#allocation9_spill] sm:$0xff] }
 0x632   :  { %v1700_v22 = vpop.f32.mrf.mxu0 }
 0x633   :  { %v1701_v15 = vadd.f32 %v1700_v22, %v1540_v14  ;;  %v723_v14 = vadd.f32 %v2141_v48, %v5423_v31 }
 0x635   :  { %v1780_v40 = vadd.f32 %v1701_v15, %v1249_v17  ;;  %v1399_v6 = vpop.f32.mrf.mxu2  ;;  %v1560_v29 = vpop.f32.mrf.mxu3  ;;  %v1254_v13 = vadd.f32 %v4275_v30, %v723_v14 }
 0x637   :  { %v1828_v24 = vmul.f32 0.25, %v1780_v40  ;;  %v1558_v40 = vadd.f32 %v1557_v46, %v1396_v9 }
 0x639   :  { %1876 = vst [vmem:[%s4889_s2 + $0x100] sm:$0xff] %v1828_v24  ;;  %v724_v24 = vadd.f32 %v2142_v51, %v5424_v50 }
 0x63a   :  { %v1703_v18 = vpop.f32.mrf.mxu0 }
 0x63b   :  { %v1704_v19 = vadd.f32 %v1703_v18, %v1543_v47  ;;  %v1255_v25 = vadd.f32 %v4269_v54, %v724_v24  ;;  %v1561_v18 = vadd.f32 %v1560_v29, %v1399_v6 }
 0x63d   :  { %v1781_v53 = vadd.f32 %v1704_v19, %v1250_v8  ;;  %v1402_v22 = vpop.f32.mrf.mxu2  ;;  %v1563_v17 = vpop.f32.mrf.mxu3 }
 0x63e   :  { %v1564_v0 = vadd.f32 %v1563_v17, %v1402_v22  ;;  %v5430_v22 = vld [vmem:[#allocation79_spill] sm:$0xff] }
 0x63f   :  { %v1829_v43 = vmul.f32 0.25, %v1781_v53  ;;  %v2143_v53 = vld [vmem:[%s4887_s1 + $0x138] sm:$0xff] }
 0x641   :  { %1877 = vst [vmem:[%s4889_s2 + $0x108] sm:$0xff] %v1829_v43  ;;  %v5425_v43 = vld [vmem:[#allocation7_spill] sm:$0xff] }
 0x642   :  { %v1706_v60 = vpop.f32.mrf.mxu0 }
 0x643   :  { %v1707_v33 = vadd.f32 %v1706_v60, %v1546_v3  ;;  %v725_v3 = vadd.f32 %v2143_v53, %v5425_v43  ;;  %v2144_v60 = vld [vmem:[%s4887_s1 + $0x140] sm:$0xff] }
 0x645   :  { %v1782_v49 = vadd.f32 %v1707_v33, %v1251_v10  ;;  %v1405_v8 = vpop.f32.mrf.mxu2  ;;  %v1566_v19 = vpop.f32.mrf.mxu3  ;;  %v1256_v58 = vadd.f32 %v4260_v44, %v725_v3  ;;  %v5426_v10 = vld [vmem:[#allocation16_spill] sm:$0xff] }
 0x646   :  { %v726_v33 = vadd.f32 %v2144_v60, %v5426_v10  ;;  %v1567_v9 = vadd.f32 %v1566_v19, %v1405_v8 }
 0x647   :  { %v1830_v23 = vmul.f32 0.25, %v1782_v49 }
 0x648   :  { %v1257_v7 = vadd.f32 %v4254_v20, %v726_v33 }
 0x649   :  { %1878 = vst [vmem:[%s4889_s2 + $0x110] sm:$0xff] %v1830_v23 }
 0x64a   :  { %v1709_v11 = vpop.f32.mrf.mxu0 }
 0x64b   :  { %v1710_v27 = vadd.f32 %v1709_v11, %v1549_v59 }
 0x64d   :  { %v1783_v5 = vadd.f32 %v1710_v27, %v1252_v56  ;;  %v1408_v49 = vpop.f32.mrf.mxu2  ;;  %v1569_v59 = vpop.f32.mrf.mxu3 }
 0x64e   :  { %v1570_v26 = vadd.f32 %v1569_v59, %v1408_v49 }
 0x64f   :  { %v1831_v63 = vmul.f32 0.25, %v1783_v5  ;;  %v5427_v5 = vld [vmem:[#allocation60_spill] sm:$0xff] }
 0x651   :  { %1879 = vst [vmem:[%s4889_s2 + $0x118] sm:$0xff] %v1831_v63 }
 0x652   :  { %v1712_v62 = vpop.f32.mrf.mxu0 }
 0x653   :  { %v1713_v38 = vadd.f32 %v1712_v62, %v1552_v2 }
 0x655   :  { %v1784_v16 = vadd.f32 %v1713_v38, %v1253_v39  ;;  %v1411_v56 = vpop.f32.mrf.mxu2  ;;  %v1572_v27 = vpop.f32.mrf.mxu3 }
 0x656   :  { %v1573_v29 = vadd.f32 %v1572_v27, %v1411_v56 }
 0x657   :  { %v1832_v55 = vmul.f32 0.25, %v1784_v16 }
 0x659   :  { %1880 = vst [vmem:[%s4889_s2 + $0x120] sm:$0xff] %v1832_v55 }
 0x65a   :  { %v1715_v4 = vpop.f32.mrf.mxu0 }
 0x65b   :  { %v1716_v57 = vadd.f32 %v1715_v4, %v1555_v34  ;;  %v5429_v34 = vld [vmem:[#allocation65_spill] sm:$0xff] }
 0x65d   :  { %v1785_v36 = vadd.f32 %v1716_v57, %v1254_v13  ;;  %v1414_v39 = vpop.f32.mrf.mxu2  ;;  %v1575_v38 = vpop.f32.mrf.mxu3 }
 0x65e   :  { %v1576_v14 = vadd.f32 %v1575_v38, %v1414_v39 }
 0x65f   :  { %v1833_v15 = vmul.f32 0.25, %v1785_v36 }
 0x661   :  { %1881 = vst [vmem:[%s4889_s2 + $0x128] sm:$0xff] %v1833_v15 }
 0x662   :  { %v1718_v47 = vpop.f32.mrf.mxu0 }
 0x663   :  { %v1719_v30 = vadd.f32 %v1718_v47, %v1558_v40 }
 0x665   :  { %v1786_v32 = vadd.f32 %v1719_v30, %v1255_v25  ;;  %v1417_v4 = vpop.f32.mrf.mxu2  ;;  %v1578_v13 = vpop.f32.mrf.mxu3 }
 0x666   :  { %v1579_v40 = vadd.f32 %v1578_v13, %v1417_v4 }
 0x667   :  { %v1834_v28 = vmul.f32 0.25, %v1786_v32 }
 0x669   :  { %1882 = vst [vmem:[%s4889_s2 + $0x130] sm:$0xff] %v1834_v28 }
 0x66a   :  { %v1721_v12 = vpop.f32.mrf.mxu0 }
 0x66b   :  { %v1722_v54 = vadd.f32 %v1721_v12, %v1561_v18 }
 0x66d   :  { %v1787_v45 = vadd.f32 %v1722_v54, %v1256_v58  ;;  %v1420_v51 = vpop.f32.mrf.mxu2  ;;  %v1581_v24 = vpop.f32.mrf.mxu3 }
 0x66e   :  { %v1582_v32 = vadd.f32 %v1581_v24, %v1420_v51 }
 0x66f   :  { %v1835_v21 = vmul.f32 0.25, %v1787_v45 }
 0x671   :  { %1883 = vst [vmem:[%s4889_s2 + $0x138] sm:$0xff] %v1835_v21 }
 0x672   :  { %v1724_v23 = vpop.f32.mrf.mxu0 }
 0x673   :  { %v1725_v44 = vadd.f32 %v1724_v23, %v1564_v0 }
 0x675   :  { %v1788_v1 = vadd.f32 %v1725_v44, %v1257_v7  ;;  %v1423_v8 = vpop.f32.mrf.mxu2  ;;  %v1584_v19 = vpop.f32.mrf.mxu3 }
 0x676   :  { %v1585_v3 = vadd.f32 %v1584_v19, %v1423_v8 }
 0x677   :  { %v1836_v37 = vmul.f32 0.25, %v1788_v1 }
 0x679   :  { %1884 = vst [vmem:[%s4889_s2 + $0x140] sm:$0xff] %v1836_v37 }
 0x67a   :  { %v1727_v11 = vpop.f32.mrf.mxu0 }
 0x67b   :  { %v1728_v46 = vadd.f32 %v1727_v11, %v1567_v9 }
 0x67d   :  { %v1789_v63 = vadd.f32 %v1728_v46, %v5427_v5 }
 0x67f   :  { %v1837_v2 = vmul.f32 0.25, %v1789_v63 }
 0x681   :  { %1885 = vst [vmem:[%s4889_s2 + $0x148] sm:$0xff] %v1837_v2 }
 0x682   :  { %v1730_v20 = vpop.f32.mrf.mxu0 }
 0x683   :  { %v1731_v61 = vadd.f32 %v1730_v20, %v1570_v26 }
 0x685   :  { %v1790_v62 = vadd.f32 %v1731_v61, %v5428_v52 }
 0x687   :  { %v1838_v6 = vmul.f32 0.25, %v1790_v62 }
 0x689   :  { %1886 = vst [vmem:[%s4889_s2 + $0x150] sm:$0xff] %v1838_v6 }
 0x68a   :  { %v1733_v16 = vpop.f32.mrf.mxu0 }
 0x68b   :  { %v1734_v55 = vadd.f32 %v1733_v16, %v1573_v29 }
 0x68d   :  { %v1791_v48 = vadd.f32 %v1734_v55, %v5429_v34 }
 0x68f   :  { %v1839_v31 = vmul.f32 0.25, %v1791_v48 }
 0x691   :  { %1887 = vst [vmem:[%s4889_s2 + $0x158] sm:$0xff] %v1839_v31 }
 0x692   :  { %v1736_v57 = vpop.f32.mrf.mxu0 }
 0x693   :  { %v1737_v36 = vadd.f32 %v1736_v57, %v1576_v14 }
 0x695   :  { %v1792_v17 = vadd.f32 %v1737_v36, %v5430_v22 }
 0x697   :  { %v1840_v15 = vmul.f32 0.25, %v1792_v17 }
 0x699   :  { %1888 = vst [vmem:[%s4889_s2 + $0x160] sm:$0xff] %v1840_v15 }
 0x69a   :  { %v1739_v50 = vpop.f32.mrf.mxu0 }
 0x69b   :  { %v1740_v47 = vadd.f32 %v1739_v50, %v1579_v40 }
 0x69d   :  { %v1793_v25 = vadd.f32 %v1740_v47, %v4224_v35 }
 0x69f   :  { %v1841_v30 = vmul.f32 0.25, %v1793_v25 }
 0x6a1   :  { %1889 = vst [vmem:[%s4889_s2 + $0x168] sm:$0xff] %v1841_v30 }
 0x6a2   :  { %v1742_v28 = vpop.f32.mrf.mxu0 }
 0x6a3   :  { %v1743_v18 = vadd.f32 %v1742_v28, %v1582_v32 }
 0x6a5   :  { %v1794_v53 = vadd.f32 %v1743_v18, %v4233_v41 }
 0x6a7   :  { %v1842_v43 = vmul.f32 0.25, %v1794_v53 }
 0x6a9   :  { %1890 = vst [vmem:[%s4889_s2 + $0x170] sm:$0xff] %v1842_v43 }
 0x6aa   :  { %v1745_v12 = vpop.f32.mrf.mxu0 }
 0x6ab   :  { %v1746_v35 = vadd.f32 %v1745_v12, %v1585_v3 }
 0x6ad   :  { %v1795_v58 = vadd.f32 %v1746_v35, %v4242_v42 }
 0x6af   :  { %v1843_v54 = vmul.f32 0.25, %v1795_v58 }
 0x6b1   :  { %1891 = vst [vmem:[%s4889_s2 + $0x178] sm:$0xff] %v1843_v54 }

</bundles_post_ra>
